<compile_context>
chip_gen: v7x
topology: tpu7x:2x2x1
jax: 0.10.0
libtpu: 0.0.40
codegen_flags: <defaults>
</compile_context>

<pallas_src>
import functools
import math

import jax
import jax.numpy as jnp
from jax import lax
from jax.experimental import pallas as pl
from jax.experimental.pallas import tpu as pltpu


def _round_up(x, m):
    return (x + m - 1) // m * m


# --------------------- pass 1: fused conv (per-tap matmuls) + per-tile stats ---------------------
def _fused_conv_stats_kernel(x_ref, w_ref, y_ref, stats_ref, *, n_kh, n_kw, wo, rr):
    # x_ref:     (n_kh*2, rr, WO1, Cin_p) bf16  -- stride-2 phase/shift slabs of the padded input
    # w_ref:     (n_kh*n_kw, Cin_p, Cp)   bf16  -- per-tap weight matrices (resident block)
    # y_ref:     (rr*wo, Cp)              bf16  -- conv output tile
    # stats_ref: (8, Cp)                  f32   -- row 0: tile sum, row 1: tile sum of squares
    m = rr * wo
    cp = y_ref.shape[-1]
    cin = x_ref.shape[-1]
    acc = jnp.zeros((m, cp), jnp.float32)
    for kh in range(n_kh):
        slab0 = x_ref[kh * 2]          # w-phase 0, h-shift kh
        slab1 = x_ref[kh * 2 + 1]      # w-phase 1, h-shift kh
        slabs = (slab0, slab1)
        for kw in range(n_kw):
            ow = kw // 2
            xs = slabs[kw % 2][:, ow:ow + wo, :]          # (rr, wo, cin)  static slice
            xs = xs.reshape(m, cin)                        # (rows, cin)
            acc = acc + jnp.dot(xs, w_ref[kh * n_kw + kw],
                                preferred_element_type=jnp.float32)
    y_ref[...] = acc.astype(y_ref.dtype)
    s1 = jnp.sum(acc, axis=0, keepdims=True)
    s2 = jnp.sum(acc * acc, axis=0, keepdims=True)
    stats_ref[...] = jnp.concatenate(
        [s1, s2, jnp.zeros((6, cp), jnp.float32)], axis=0)


# --------------------------- pass 2: folded BatchNorm + LeakyReLU ---------------------------
def _bn_lrelu_kernel(y_ref, scale_ref, shift_ref, o_ref, *, alpha):
    bn = y_ref[...].astype(jnp.float32) * scale_ref[...] + shift_ref[...]
    o_ref[...] = jnp.where(bn >= 0, bn, alpha * bn)


def d_block_forward(x_nchw, conv_w, gamma, beta, *, stride=2, padding=1,
                    eps=0.8, alpha=0.2):
    """x_nchw: (N, Cin, H, W); conv_w: (Cout, Cin, Kh, Kw) (PyTorch layout)."""
    if stride != 2:
        raise NotImplementedError("phase decomposition assumes stride=2 (module default)")
    N, Cin, H, W = x_nchw.shape
    Cout, _, KH, KW = conv_w.shape
    Ho = (H + 2 * padding - KH) // stride + 1
    Wo = (W + 2 * padding - KW) // stride + 1
    R = N * Ho                       # flattened (batch, output row) axis
    M = R * Wo                       # total output pixels (true BN divisor)
    WO1 = Wo + (KW - 1) // 2         # columns per w-phase slab
    HNEED = 2 * (Ho - 1) + KH        # padded rows actually touched by the taps
    WNEED = 2 * WO1

    CINP = _round_up(Cin, 8)         # sublane-friendly contraction dim (zero padded)
    CP = _round_up(Cout, 128)        # lane-dense output channels

    # ---- glue: NCHW -> bf16 NHWC -> stride-2 phase/shift slabs (~2x input, not 16x im2col) ----
    xh = jnp.transpose(x_nchw, (0, 2, 3, 1)).astype(jnp.bfloat16)
    xh = jnp.pad(xh, ((0, 0), (padding, padding), (padding, padding), (0, CINP - Cin)))
    hpad = max(0, HNEED - xh.shape[1])
    wpad = max(0, WNEED - xh.shape[2])
    if hpad or wpad:
        xh = jnp.pad(xh, ((0, 0), (0, hpad), (0, wpad), (0, 0)))
    xh = xh[:, :HNEED, :WNEED, :]
    xw = xh.reshape(N, HNEED, WO1, 2, CINP)
    slabs = [xw[:, kh:kh + 2 * Ho:2, :, pw, :]           # (N, Ho, WO1, CINP)
             for kh in range(KH) for pw in range(2)]
    xg = jnp.stack(slabs, axis=0).reshape(KH * 2, R, WO1, CINP)

    # ---- per-tap weight matrices (tiny; permute the weight, never transpose the activations) ----
    w = jnp.transpose(conv_w, (2, 3, 1, 0)).astype(jnp.float32)     # (KH, KW, Cin, Cout)
    w = jnp.pad(w, ((0, 0), (0, 0), (0, CINP - Cin), (0, CP - Cout)))
    w_flat = w.astype(jnp.bfloat16).reshape(KH * KW, CINP, CP)

    # ---- tiling over the flattened row axis: ~1024 output rows per tile, VMEM-budgeted ----
    align = 16 // math.gcd(Wo, 16)                       # keep rr*Wo a multiple of 16
    rr = max(align, min(_round_up(R, align),
                        _round_up(max(1, 1024 // Wo), align)))

    def _vmem_bytes(r_):
        x_b = 2 * (KH * 2) * r_ * WO1 * CINP * 2         # double-buffered bf16 input slabs
        w_b = 2 * KH * KW * CINP * CP * 2                # resident weights (conservative 2 bufs)
        y_b = 2 * r_ * Wo * CP * 2                       # double-buffered bf16 output tile
        a_b = r_ * Wo * CP * 4                           # f32 accumulator
        return x_b + w_b + y_b + a_b

    while rr > align and _vmem_bytes(rr) > 40 * 1024 * 1024:
        rr = max(align, _round_up(rr // 2, align))

    R_pad = _round_up(R, rr)
    n_r = R_pad // rr
    if R_pad > R:
        xg = jnp.pad(xg, ((0, 0), (0, R_pad - R), (0, 0), (0, 0)))   # zero rows: no stat impact
    TM = rr * Wo
    M_pad = R_pad * Wo

    vmem_limit = 48 * 1024 * 1024    # leaves headroom on v7x (64 MiB/TC); ample on v5e/v6e

    # ------------------------------ pass 1 ------------------------------
    kernel1 = functools.partial(_fused_conv_stats_kernel,
                                n_kh=KH, n_kw=KW, wo=Wo, rr=rr)
    y, stats = pl.pallas_call(
        kernel1,
        out_shape=(jax.ShapeDtypeStruct((M_pad, CP), jnp.bfloat16),
                   jax.ShapeDtypeStruct((n_r * 8, CP), jnp.float32)),
        grid=(n_r,),
        in_specs=[
            pl.BlockSpec((KH * 2, rr, WO1, CINP), lambda r: (0, r, 0, 0)),
            pl.BlockSpec((KH * KW, CINP, CP), lambda r: (0, 0, 0)),
        ],
        out_specs=(
            pl.BlockSpec((TM, CP), lambda r: (r, 0)),
            pl.BlockSpec((8, CP), lambda r: (r, 0)),
        ),
        compiler_params=pltpu.CompilerParams(
            dimension_semantics=("parallel",),
            vmem_limit_bytes=vmem_limit),
        cost_estimate=pl.CostEstimate(
            flops=2 * M_pad * KH * KW * CINP * CP,
            transcendentals=0,
            bytes_accessed=(xg.size * 2 + w_flat.size * 2
                            + M_pad * CP * 2 + n_r * 8 * CP * 4)),
    )(xg, w_flat)

    # ---- tiny JAX: fold stats -> scale/shift (true-M divisor, biased var = training-mode BN) ----
    stats = stats.reshape(n_r, 8, CP)
    ch_sum = jnp.sum(stats[:, 0, :], axis=0)
    ch_sumsq = jnp.sum(stats[:, 1, :], axis=0)
    mean = ch_sum / M
    var = ch_sumsq / M - mean * mean
    # TODO(synk): one-pass E[y^2]-E[y]^2 can cancel when |mean| >> std; eps=0.8 masks it here,
    #             a centered second accumulation would be safer for arbitrary layers.
    gamma_p = jnp.pad(gamma.astype(jnp.float32).reshape(-1), (0, CP - Cout))
    beta_p = jnp.pad(beta.astype(jnp.float32).reshape(-1), (0, CP - Cout))
    scale = gamma_p * lax.rsqrt(var + eps)
    shift = beta_p - mean * scale
    scale = scale.reshape(1, CP)
    shift = shift.reshape(1, CP)

    # ------------------------------ pass 2 ------------------------------
    kernel2 = functools.partial(_bn_lrelu_kernel, alpha=float(alpha))
    out_flat = pl.pallas_call(
        kernel2,
        out_shape=jax.ShapeDtypeStruct((M_pad, CP), jnp.float32),
        grid=(n_r,),
        in_specs=[
            pl.BlockSpec((TM, CP), lambda r: (r, 0)),
            pl.BlockSpec((1, CP), lambda r: (0, 0)),
            pl.BlockSpec((1, CP), lambda r: (0, 0)),
        ],
        out_specs=pl.BlockSpec((TM, CP), lambda r: (r, 0)),
        compiler_params=pltpu.CompilerParams(
            dimension_semantics=("parallel",),
            vmem_limit_bytes=vmem_limit),
        cost_estimate=pl.CostEstimate(
            flops=4 * M_pad * CP,
            transcendentals=0,
            bytes_accessed=M_pad * CP * 2 + 2 * CP * 4 + M_pad * CP * 4),
    )(y, scale, shift)

    # ---- glue: drop padding, (M, Cout) -> NCHW ----
    out = out_flat[:M, :Cout].reshape(N, Ho, Wo, Cout)
    return jnp.transpose(out, (0, 3, 1, 2))


# ------------------------------ pure-JAX reference ------------------------------
def _reference(x_nchw, conv_w, gamma, beta, *, stride=2, padding=1, eps=0.8, alpha=0.2):
    y = lax.conv_general_dilated(
        x_nchw.astype(jnp.float32), conv_w.astype(jnp.float32),
        window_strides=(stride, stride), padding=[(padding, padding)] * 2,
        dimension_numbers=("NCHW", "OIHW", "NCHW"))
    mean = jnp.mean(y, axis=(0, 2, 3), keepdims=True)
    var = jnp.mean((y - mean) ** 2, axis=(0, 2, 3), keepdims=True)
    bn = (y - mean) * lax.rsqrt(var + eps)
    bn = bn * gamma.reshape(1, -1, 1, 1) + beta.reshape(1, -1, 1, 1)
    return jnp.where(bn >= 0, bn, alpha * bn)


if __name__ == "__main__":
    key = jax.random.PRNGKey(0)
    kx, kw, kg, kb = jax.random.split(key, 4)

    N, Cin, H, W = 2, 4, 16, 16
    Cout, Kh, Kw = 8, 4, 4

    x = jax.random.normal(kx, (N, Cin, H, W), dtype=jnp.float32)
    conv_w = 0.02 * jax.random.normal(kw, (Cout, Cin, Kh, Kw), dtype=jnp.float32)
    gamma = 1.0 + 0.1 * jax.random.normal(kg, (Cout,), dtype=jnp.float32)
    beta = 0.1 * jax.random.normal(kb, (Cout,), dtype=jnp.float32)

    out = jax.block_until_ready(d_block_forward(x, conv_w, gamma, beta))
    assert out.shape == (N, Cout, H // 2, W // 2), out.shape
    assert bool(jnp.all(jnp.isfinite(out)))

    # Kernel uses bf16 MXU operands + bf16 y intermediate (f32 accumulation / stats), so compare
    # against a reference with bf16-rounded matmul inputs, then loosely against pure f32 semantics.
    ref_bf16 = jax.block_until_ready(_reference(
        x.astype(jnp.bfloat16).astype(jnp.float32),
        conv_w.astype(jnp.bfloat16).astype(jnp.float32), gamma, beta))
    err_bf16 = float(jnp.max(jnp.abs(out - ref_bf16)))
    assert err_bf16 < 1e-2, err_bf16

    ref_f32 = jax.block_until_ready(_reference(x, conv_w, gamma, beta))
    err_f32 = float(jnp.max(jnp.abs(out - ref_f32)))
    assert err_f32 < 5e-2, err_f32

    print("KERNEL_OK")
</pallas_src>

<mosaic_0001>
module attributes {stable_mosaic.version = 11 : i64} {
  func.func @_fused_conv_stats_kernel(%arg0: i32, %arg1: memref<8x16x9x8xbf16, #tpu.memory_space<vmem>>, %arg2: memref<16x8x128xbf16, #tpu.memory_space<vmem>>, %arg3: memref<128x128xbf16, #tpu.memory_space<vmem>>, %arg4: memref<8x128xf32, #tpu.memory_space<vmem>>) attributes {dimension_semantics = [#tpu.dimension_semantics<parallel>], iteration_bounds = array<i64: 1>, scalar_prefetch = 0 : i64, scratch_operands = 0 : i64, tpu.core_type = #tpu.core_type<tc>, window_params = [{transform_indices = @transform_0, window_bounds = array<i64: 8, 16, 9, 8>}, {pipeline_mode = #tpu.pipeline_mode<synchronous>, transform_indices = @transform_1, window_bounds = array<i64: 16, 8, 128>}, {transform_indices = @transform_2, window_bounds = array<i64: 128, 128>}, {transform_indices = @transform_3, window_bounds = array<i64: 8, 128>}]} {
    %cst = arith.constant 0.000000e+00 : f32
    %0 = vector.broadcast %cst : f32 to vector<128x128xf32>
    %c0 = arith.constant 0 : index
    %c0_0 = arith.constant 0 : index
    %c0_1 = arith.constant 0 : index
    %c0_2 = arith.constant 0 : index
    %1 = vector.load %arg1[%c0, %c0_0, %c0_1, %c0_2] : memref<8x16x9x8xbf16, #tpu.memory_space<vmem>>, vector<1x16x9x8xbf16>
    %2 = vector.shape_cast %1 : vector<1x16x9x8xbf16> to vector<16x9x8xbf16>
    %c1 = arith.constant 1 : index
    %c0_3 = arith.constant 0 : index
    %c0_4 = arith.constant 0 : index
    %c0_5 = arith.constant 0 : index
    %3 = vector.load %arg1[%c1, %c0_3, %c0_4, %c0_5] : memref<8x16x9x8xbf16, #tpu.memory_space<vmem>>, vector<1x16x9x8xbf16>
    %4 = vector.shape_cast %3 : vector<1x16x9x8xbf16> to vector<16x9x8xbf16>
    %5 = vector.extract_strided_slice %2 {offsets = [0, 0, 0], sizes = [16, 8, 8], strides = [1, 1, 1]} : vector<16x9x8xbf16> to vector<16x8x8xbf16>
    %6 = vector.shape_cast %5 : vector<16x8x8xbf16> to vector<128x8xbf16>
    %c0_6 = arith.constant 0 : index
    %c0_7 = arith.constant 0 : index
    %c0_8 = arith.constant 0 : index
    %7 = vector.load %arg2[%c0_6, %c0_7, %c0_8] : memref<16x8x128xbf16, #tpu.memory_space<vmem>>, vector<1x8x128xbf16>
    %8 = vector.shape_cast %7 : vector<1x8x128xbf16> to vector<8x128xbf16>
    %cst_9 = arith.constant dense<0.000000e+00> : vector<128x128xf32>
    %9 = tpu.matmul %6, %8, %cst_9 {dimension_numbers = #tpu.dot_dimension_numbers<[1], [0], [0], [1], [0, 0, 1, 1], [], []>} : vector<128x8xbf16>, vector<8x128xbf16>, vector<128x128xf32> -> vector<128x128xf32>
    %10 = arith.addf %0, %9 : vector<128x128xf32>
    %11 = vector.extract_strided_slice %4 {offsets = [0, 0, 0], sizes = [16, 8, 8], strides = [1, 1, 1]} : vector<16x9x8xbf16> to vector<16x8x8xbf16>
    %12 = vector.shape_cast %11 : vector<16x8x8xbf16> to vector<128x8xbf16>
    %c1_10 = arith.constant 1 : index
    %c0_11 = arith.constant 0 : index
    %c0_12 = arith.constant 0 : index
    %13 = vector.load %arg2[%c1_10, %c0_11, %c0_12] : memref<16x8x128xbf16, #tpu.memory_space<vmem>>, vector<1x8x128xbf16>
    %14 = vector.shape_cast %13 : vector<1x8x128xbf16> to vector<8x128xbf16>
    %cst_13 = arith.constant dense<0.000000e+00> : vector<128x128xf32>
    %15 = tpu.matmul %12, %14, %cst_13 {dimension_numbers = #tpu.dot_dimension_numbers<[1], [0], [0], [1], [0, 0, 1, 1], [], []>} : vector<128x8xbf16>, vector<8x128xbf16>, vector<128x128xf32> -> vector<128x128xf32>
    %16 = arith.addf %10, %15 : vector<128x128xf32>
    %17 = vector.extract_strided_slice %2 {offsets = [0, 1, 0], sizes = [16, 8, 8], strides = [1, 1, 1]} : vector<16x9x8xbf16> to vector<16x8x8xbf16>
    %18 = vector.shape_cast %17 : vector<16x8x8xbf16> to vector<128x8xbf16>
    %c2 = arith.constant 2 : index
    %c0_14 = arith.constant 0 : index
    %c0_15 = arith.constant 0 : index
    %19 = vector.load %arg2[%c2, %c0_14, %c0_15] : memref<16x8x128xbf16, #tpu.memory_space<vmem>>, vector<1x8x128xbf16>
    %20 = vector.shape_cast %19 : vector<1x8x128xbf16> to vector<8x128xbf16>
    %cst_16 = arith.constant dense<0.000000e+00> : vector<128x128xf32>
    %21 = tpu.matmul %18, %20, %cst_16 {dimension_numbers = #tpu.dot_dimension_numbers<[1], [0], [0], [1], [0, 0, 1, 1], [], []>} : vector<128x8xbf16>, vector<8x128xbf16>, vector<128x128xf32> -> vector<128x128xf32>
    %22 = arith.addf %16, %21 : vector<128x128xf32>
    %23 = vector.extract_strided_slice %4 {offsets = [0, 1, 0], sizes = [16, 8, 8], strides = [1, 1, 1]} : vector<16x9x8xbf16> to vector<16x8x8xbf16>
    %24 = vector.shape_cast %23 : vector<16x8x8xbf16> to vector<128x8xbf16>
    %c3 = arith.constant 3 : index
    %c0_17 = arith.constant 0 : index
    %c0_18 = arith.constant 0 : index
    %25 = vector.load %arg2[%c3, %c0_17, %c0_18] : memref<16x8x128xbf16, #tpu.memory_space<vmem>>, vector<1x8x128xbf16>
    %26 = vector.shape_cast %25 : vector<1x8x128xbf16> to vector<8x128xbf16>
    %cst_19 = arith.constant dense<0.000000e+00> : vector<128x128xf32>
    %27 = tpu.matmul %24, %26, %cst_19 {dimension_numbers = #tpu.dot_dimension_numbers<[1], [0], [0], [1], [0, 0, 1, 1], [], []>} : vector<128x8xbf16>, vector<8x128xbf16>, vector<128x128xf32> -> vector<128x128xf32>
    %28 = arith.addf %22, %27 : vector<128x128xf32>
    %c2_20 = arith.constant 2 : index
    %c0_21 = arith.constant 0 : index
    %c0_22 = arith.constant 0 : index
    %c0_23 = arith.constant 0 : index
    %29 = vector.load %arg1[%c2_20, %c0_21, %c0_22, %c0_23] : memref<8x16x9x8xbf16, #tpu.memory_space<vmem>>, vector<1x16x9x8xbf16>
    %30 = vector.shape_cast %29 : vector<1x16x9x8xbf16> to vector<16x9x8xbf16>
    %c3_24 = arith.constant 3 : index
    %c0_25 = arith.constant 0 : index
    %c0_26 = arith.constant 0 : index
    %c0_27 = arith.constant 0 : index
    %31 = vector.load %arg1[%c3_24, %c0_25, %c0_26, %c0_27] : memref<8x16x9x8xbf16, #tpu.memory_space<vmem>>, vector<1x16x9x8xbf16>
    %32 = vector.shape_cast %31 : vector<1x16x9x8xbf16> to vector<16x9x8xbf16>
    %33 = vector.extract_strided_slice %30 {offsets = [0, 0, 0], sizes = [16, 8, 8], strides = [1, 1, 1]} : vector<16x9x8xbf16> to vector<16x8x8xbf16>
    %34 = vector.shape_cast %33 : vector<16x8x8xbf16> to vector<128x8xbf16>
    %c4 = arith.constant 4 : index
    %c0_28 = arith.constant 0 : index
    %c0_29 = arith.constant 0 : index
    %35 = vector.load %arg2[%c4, %c0_28, %c0_29] : memref<16x8x128xbf16, #tpu.memory_space<vmem>>, vector<1x8x128xbf16>
    %36 = vector.shape_cast %35 : vector<1x8x128xbf16> to vector<8x128xbf16>
    %cst_30 = arith.constant dense<0.000000e+00> : vector<128x128xf32>
    %37 = tpu.matmul %34, %36, %cst_30 {dimension_numbers = #tpu.dot_dimension_numbers<[1], [0], [0], [1], [0, 0, 1, 1], [], []>} : vector<128x8xbf16>, vector<8x128xbf16>, vector<128x128xf32> -> vector<128x128xf32>
    %38 = arith.addf %28, %37 : vector<128x128xf32>
    %39 = vector.extract_strided_slice %32 {offsets = [0, 0, 0], sizes = [16, 8, 8], strides = [1, 1, 1]} : vector<16x9x8xbf16> to vector<16x8x8xbf16>
    %40 = vector.shape_cast %39 : vector<16x8x8xbf16> to vector<128x8xbf16>
    %c5 = arith.constant 5 : index
    %c0_31 = arith.constant 0 : index
    %c0_32 = arith.constant 0 : index
    %41 = vector.load %arg2[%c5, %c0_31, %c0_32] : memref<16x8x128xbf16, #tpu.memory_space<vmem>>, vector<1x8x128xbf16>
    %42 = vector.shape_cast %41 : vector<1x8x128xbf16> to vector<8x128xbf16>
    %cst_33 = arith.constant dense<0.000000e+00> : vector<128x128xf32>
    %43 = tpu.matmul %40, %42, %cst_33 {dimension_numbers = #tpu.dot_dimension_numbers<[1], [0], [0], [1], [0, 0, 1, 1], [], []>} : vector<128x8xbf16>, vector<8x128xbf16>, vector<128x128xf32> -> vector<128x128xf32>
    %44 = arith.addf %38, %43 : vector<128x128xf32>
    %45 = vector.extract_strided_slice %30 {offsets = [0, 1, 0], sizes = [16, 8, 8], strides = [1, 1, 1]} : vector<16x9x8xbf16> to vector<16x8x8xbf16>
    %46 = vector.shape_cast %45 : vector<16x8x8xbf16> to vector<128x8xbf16>
    %c6 = arith.constant 6 : index
    %c0_34 = arith.constant 0 : index
    %c0_35 = arith.constant 0 : index
    %47 = vector.load %arg2[%c6, %c0_34, %c0_35] : memref<16x8x128xbf16, #tpu.memory_space<vmem>>, vector<1x8x128xbf16>
    %48 = vector.shape_cast %47 : vector<1x8x128xbf16> to vector<8x128xbf16>
    %cst_36 = arith.constant dense<0.000000e+00> : vector<128x128xf32>
    %49 = tpu.matmul %46, %48, %cst_36 {dimension_numbers = #tpu.dot_dimension_numbers<[1], [0], [0], [1], [0, 0, 1, 1], [], []>} : vector<128x8xbf16>, vector<8x128xbf16>, vector<128x128xf32> -> vector<128x128xf32>
    %50 = arith.addf %44, %49 : vector<128x128xf32>
    %51 = vector.extract_strided_slice %32 {offsets = [0, 1, 0], sizes = [16, 8, 8], strides = [1, 1, 1]} : vector<16x9x8xbf16> to vector<16x8x8xbf16>
    %52 = vector.shape_cast %51 : vector<16x8x8xbf16> to vector<128x8xbf16>
    %c7 = arith.constant 7 : index
    %c0_37 = arith.constant 0 : index
    %c0_38 = arith.constant 0 : index
    %53 = vector.load %arg2[%c7, %c0_37, %c0_38] : memref<16x8x128xbf16, #tpu.memory_space<vmem>>, vector<1x8x128xbf16>
    %54 = vector.shape_cast %53 : vector<1x8x128xbf16> to vector<8x128xbf16>
    %cst_39 = arith.constant dense<0.000000e+00> : vector<128x128xf32>
    %55 = tpu.matmul %52, %54, %cst_39 {dimension_numbers = #tpu.dot_dimension_numbers<[1], [0], [0], [1], [0, 0, 1, 1], [], []>} : vector<128x8xbf16>, vector<8x128xbf16>, vector<128x128xf32> -> vector<128x128xf32>
    %56 = arith.addf %50, %55 : vector<128x128xf32>
    %c4_40 = arith.constant 4 : index
    %c0_41 = arith.constant 0 : index
    %c0_42 = arith.constant 0 : index
    %c0_43 = arith.constant 0 : index
    %57 = vector.load %arg1[%c4_40, %c0_41, %c0_42, %c0_43] : memref<8x16x9x8xbf16, #tpu.memory_space<vmem>>, vector<1x16x9x8xbf16>
    %58 = vector.shape_cast %57 : vector<1x16x9x8xbf16> to vector<16x9x8xbf16>
    %c5_44 = arith.constant 5 : index
    %c0_45 = arith.constant 0 : index
    %c0_46 = arith.constant 0 : index
    %c0_47 = arith.constant 0 : index
    %59 = vector.load %arg1[%c5_44, %c0_45, %c0_46, %c0_47] : memref<8x16x9x8xbf16, #tpu.memory_space<vmem>>, vector<1x16x9x8xbf16>
    %60 = vector.shape_cast %59 : vector<1x16x9x8xbf16> to vector<16x9x8xbf16>
    %61 = vector.extract_strided_slice %58 {offsets = [0, 0, 0], sizes = [16, 8, 8], strides = [1, 1, 1]} : vector<16x9x8xbf16> to vector<16x8x8xbf16>
    %62 = vector.shape_cast %61 : vector<16x8x8xbf16> to vector<128x8xbf16>
    %c8 = arith.constant 8 : index
    %c0_48 = arith.constant 0 : index
    %c0_49 = arith.constant 0 : index
    %63 = vector.load %arg2[%c8, %c0_48, %c0_49] : memref<16x8x128xbf16, #tpu.memory_space<vmem>>, vector<1x8x128xbf16>
    %64 = vector.shape_cast %63 : vector<1x8x128xbf16> to vector<8x128xbf16>
    %cst_50 = arith.constant dense<0.000000e+00> : vector<128x128xf32>
    %65 = tpu.matmul %62, %64, %cst_50 {dimension_numbers = #tpu.dot_dimension_numbers<[1], [0], [0], [1], [0, 0, 1, 1], [], []>} : vector<128x8xbf16>, vector<8x128xbf16>, vector<128x128xf32> -> vector<128x128xf32>
    %66 = arith.addf %56, %65 : vector<128x128xf32>
    %67 = vector.extract_strided_slice %60 {offsets = [0, 0, 0], sizes = [16, 8, 8], strides = [1, 1, 1]} : vector<16x9x8xbf16> to vector<16x8x8xbf16>
    %68 = vector.shape_cast %67 : vector<16x8x8xbf16> to vector<128x8xbf16>
    %c9 = arith.constant 9 : index
    %c0_51 = arith.constant 0 : index
    %c0_52 = arith.constant 0 : index
    %69 = vector.load %arg2[%c9, %c0_51, %c0_52] : memref<16x8x128xbf16, #tpu.memory_space<vmem>>, vector<1x8x128xbf16>
    %70 = vector.shape_cast %69 : vector<1x8x128xbf16> to vector<8x128xbf16>
    %cst_53 = arith.constant dense<0.000000e+00> : vector<128x128xf32>
    %71 = tpu.matmul %68, %70, %cst_53 {dimension_numbers = #tpu.dot_dimension_numbers<[1], [0], [0], [1], [0, 0, 1, 1], [], []>} : vector<128x8xbf16>, vector<8x128xbf16>, vector<128x128xf32> -> vector<128x128xf32>
    %72 = arith.addf %66, %71 : vector<128x128xf32>
    %73 = vector.extract_strided_slice %58 {offsets = [0, 1, 0], sizes = [16, 8, 8], strides = [1, 1, 1]} : vector<16x9x8xbf16> to vector<16x8x8xbf16>
    %74 = vector.shape_cast %73 : vector<16x8x8xbf16> to vector<128x8xbf16>
    %c10 = arith.constant 10 : index
    %c0_54 = arith.constant 0 : index
    %c0_55 = arith.constant 0 : index
    %75 = vector.load %arg2[%c10, %c0_54, %c0_55] : memref<16x8x128xbf16, #tpu.memory_space<vmem>>, vector<1x8x128xbf16>
    %76 = vector.shape_cast %75 : vector<1x8x128xbf16> to vector<8x128xbf16>
    %cst_56 = arith.constant dense<0.000000e+00> : vector<128x128xf32>
    %77 = tpu.matmul %74, %76, %cst_56 {dimension_numbers = #tpu.dot_dimension_numbers<[1], [0], [0], [1], [0, 0, 1, 1], [], []>} : vector<128x8xbf16>, vector<8x128xbf16>, vector<128x128xf32> -> vector<128x128xf32>
    %78 = arith.addf %72, %77 : vector<128x128xf32>
    %79 = vector.extract_strided_slice %60 {offsets = [0, 1, 0], sizes = [16, 8, 8], strides = [1, 1, 1]} : vector<16x9x8xbf16> to vector<16x8x8xbf16>
    %80 = vector.shape_cast %79 : vector<16x8x8xbf16> to vector<128x8xbf16>
    %c11 = arith.constant 11 : index
    %c0_57 = arith.constant 0 : index
    %c0_58 = arith.constant 0 : index
    %81 = vector.load %arg2[%c11, %c0_57, %c0_58] : memref<16x8x128xbf16, #tpu.memory_space<vmem>>, vector<1x8x128xbf16>
    %82 = vector.shape_cast %81 : vector<1x8x128xbf16> to vector<8x128xbf16>
    %cst_59 = arith.constant dense<0.000000e+00> : vector<128x128xf32>
    %83 = tpu.matmul %80, %82, %cst_59 {dimension_numbers = #tpu.dot_dimension_numbers<[1], [0], [0], [1], [0, 0, 1, 1], [], []>} : vector<128x8xbf16>, vector<8x128xbf16>, vector<128x128xf32> -> vector<128x128xf32>
    %84 = arith.addf %78, %83 : vector<128x128xf32>
    %c6_60 = arith.constant 6 : index
    %c0_61 = arith.constant 0 : index
    %c0_62 = arith.constant 0 : index
    %c0_63 = arith.constant 0 : index
    %85 = vector.load %arg1[%c6_60, %c0_61, %c0_62, %c0_63] : memref<8x16x9x8xbf16, #tpu.memory_space<vmem>>, vector<1x16x9x8xbf16>
    %86 = vector.shape_cast %85 : vector<1x16x9x8xbf16> to vector<16x9x8xbf16>
    %c7_64 = arith.constant 7 : index
    %c0_65 = arith.constant 0 : index
    %c0_66 = arith.constant 0 : index
    %c0_67 = arith.constant 0 : index
    %87 = vector.load %arg1[%c7_64, %c0_65, %c0_66, %c0_67] : memref<8x16x9x8xbf16, #tpu.memory_space<vmem>>, vector<1x16x9x8xbf16>
    %88 = vector.shape_cast %87 : vector<1x16x9x8xbf16> to vector<16x9x8xbf16>
    %89 = vector.extract_strided_slice %86 {offsets = [0, 0, 0], sizes = [16, 8, 8], strides = [1, 1, 1]} : vector<16x9x8xbf16> to vector<16x8x8xbf16>
    %90 = vector.shape_cast %89 : vector<16x8x8xbf16> to vector<128x8xbf16>
    %c12 = arith.constant 12 : index
    %c0_68 = arith.constant 0 : index
    %c0_69 = arith.constant 0 : index
    %91 = vector.load %arg2[%c12, %c0_68, %c0_69] : memref<16x8x128xbf16, #tpu.memory_space<vmem>>, vector<1x8x128xbf16>
    %92 = vector.shape_cast %91 : vector<1x8x128xbf16> to vector<8x128xbf16>
    %cst_70 = arith.constant dense<0.000000e+00> : vector<128x128xf32>
    %93 = tpu.matmul %90, %92, %cst_70 {dimension_numbers = #tpu.dot_dimension_numbers<[1], [0], [0], [1], [0, 0, 1, 1], [], []>} : vector<128x8xbf16>, vector<8x128xbf16>, vector<128x128xf32> -> vector<128x128xf32>
    %94 = arith.addf %84, %93 : vector<128x128xf32>
    %95 = vector.extract_strided_slice %88 {offsets = [0, 0, 0], sizes = [16, 8, 8], strides = [1, 1, 1]} : vector<16x9x8xbf16> to vector<16x8x8xbf16>
    %96 = vector.shape_cast %95 : vector<16x8x8xbf16> to vector<128x8xbf16>
    %c13 = arith.constant 13 : index
    %c0_71 = arith.constant 0 : index
    %c0_72 = arith.constant 0 : index
    %97 = vector.load %arg2[%c13, %c0_71, %c0_72] : memref<16x8x128xbf16, #tpu.memory_space<vmem>>, vector<1x8x128xbf16>
    %98 = vector.shape_cast %97 : vector<1x8x128xbf16> to vector<8x128xbf16>
    %cst_73 = arith.constant dense<0.000000e+00> : vector<128x128xf32>
    %99 = tpu.matmul %96, %98, %cst_73 {dimension_numbers = #tpu.dot_dimension_numbers<[1], [0], [0], [1], [0, 0, 1, 1], [], []>} : vector<128x8xbf16>, vector<8x128xbf16>, vector<128x128xf32> -> vector<128x128xf32>
    %100 = arith.addf %94, %99 : vector<128x128xf32>
    %101 = vector.extract_strided_slice %86 {offsets = [0, 1, 0], sizes = [16, 8, 8], strides = [1, 1, 1]} : vector<16x9x8xbf16> to vector<16x8x8xbf16>
    %102 = vector.shape_cast %101 : vector<16x8x8xbf16> to vector<128x8xbf16>
    %c14 = arith.constant 14 : index
    %c0_74 = arith.constant 0 : index
    %c0_75 = arith.constant 0 : index
    %103 = vector.load %arg2[%c14, %c0_74, %c0_75] : memref<16x8x128xbf16, #tpu.memory_space<vmem>>, vector<1x8x128xbf16>
    %104 = vector.shape_cast %103 : vector<1x8x128xbf16> to vector<8x128xbf16>
    %cst_76 = arith.constant dense<0.000000e+00> : vector<128x128xf32>
    %105 = tpu.matmul %102, %104, %cst_76 {dimension_numbers = #tpu.dot_dimension_numbers<[1], [0], [0], [1], [0, 0, 1, 1], [], []>} : vector<128x8xbf16>, vector<8x128xbf16>, vector<128x128xf32> -> vector<128x128xf32>
    %106 = arith.addf %100, %105 : vector<128x128xf32>
    %107 = vector.extract_strided_slice %88 {offsets = [0, 1, 0], sizes = [16, 8, 8], strides = [1, 1, 1]} : vector<16x9x8xbf16> to vector<16x8x8xbf16>
    %108 = vector.shape_cast %107 : vector<16x8x8xbf16> to vector<128x8xbf16>
    %c15 = arith.constant 15 : index
    %c0_77 = arith.constant 0 : index
    %c0_78 = arith.constant 0 : index
    %109 = vector.load %arg2[%c15, %c0_77, %c0_78] : memref<16x8x128xbf16, #tpu.memory_space<vmem>>, vector<1x8x128xbf16>
    %110 = vector.shape_cast %109 : vector<1x8x128xbf16> to vector<8x128xbf16>
    %cst_79 = arith.constant dense<0.000000e+00> : vector<128x128xf32>
    %111 = tpu.matmul %108, %110, %cst_79 {dimension_numbers = #tpu.dot_dimension_numbers<[1], [0], [0], [1], [0, 0, 1, 1], [], []>} : vector<128x8xbf16>, vector<8x128xbf16>, vector<128x128xf32> -> vector<128x128xf32>
    %112 = arith.addf %106, %111 : vector<128x128xf32>
    %113 = arith.truncf %112 : vector<128x128xf32> to vector<128x128xbf16>
    %c0_80 = arith.constant 0 : index
    %c0_81 = arith.constant 0 : index
    %114 = vector.load %arg3[%c0_80, %c0_81] : memref<128x128xbf16, #tpu.memory_space<vmem>>, vector<128x128xbf16>
    tpu.vector_store %arg3[%c0_80, %c0_81], %113 {strides = array<i32>} : memref<128x128xbf16, #tpu.memory_space<vmem>>, vector<128x128xbf16>,
    %cst_82 = arith.constant dense<0.000000e+00> : vector<128xf32>
    %115 = vector.multi_reduction <add>, %112, %cst_82 [0] : vector<128x128xf32> to vector<128xf32>
    %116 = vector.shape_cast %115 : vector<128xf32> to vector<1x128xf32>
    %117 = arith.mulf %112, %112 : vector<128x128xf32>
    %cst_83 = arith.constant dense<0.000000e+00> : vector<128xf32>
    %118 = vector.multi_reduction <add>, %117, %cst_83 [0] : vector<128x128xf32> to vector<128xf32>
    %119 = vector.shape_cast %118 : vector<128xf32> to vector<1x128xf32>
    %cst_84 = arith.constant 0.000000e+00 : f32
    %120 = vector.broadcast %cst_84 : f32 to vector<6x128xf32>
    %121 = tpu.concatenate %116, %119, %120 in 0 : vector<1x128xf32>, vector<1x128xf32>, vector<6x128xf32> -> vector<8x128xf32>
    %c0_85 = arith.constant 0 : index
    %c0_86 = arith.constant 0 : index
    %122 = vector.load %arg4[%c0_85, %c0_86] : memref<8x128xf32, #tpu.memory_space<vmem>>, vector<8x128xf32>
    tpu.vector_store %arg4[%c0_85, %c0_86], %121 {strides = array<i32>} : memref<8x128xf32, #tpu.memory_space<vmem>>, vector<8x128xf32>,
    return
  }
  func.func @transform_0(%arg0: i32) -> (i32, i32, i32, i32) {
    %c0_i32 = arith.constant 0 : i32
    %c0_i32_0 = arith.constant 0 : i32
    %c0_i32_1 = arith.constant 0 : i32
    %c0_i32_2 = arith.constant 0 : i32
    return %c0_i32, %arg0, %c0_i32_0, %c0_i32_1 : i32, i32, i32, i32
  }
  func.func @transform_1(%arg0: i32) -> (i32, i32, i32) {
    %c0_i32 = arith.constant 0 : i32
    %c0_i32_0 = arith.constant 0 : i32
    %c0_i32_1 = arith.constant 0 : i32
    %c0_i32_2 = arith.constant 0 : i32
    return %c0_i32, %c0_i32_0, %c0_i32_1 : i32, i32, i32
  }
  func.func @transform_2(%arg0: i32) -> (i32, i32) {
    %c0_i32 = arith.constant 0 : i32
    %c0_i32_0 = arith.constant 0 : i32
    return %arg0, %c0_i32 : i32, i32
  }
  func.func @transform_3(%arg0: i32) -> (i32, i32) {
    %c0_i32 = arith.constant 0 : i32
    %c0_i32_0 = arith.constant 0 : i32
    return %arg0, %c0_i32 : i32, i32
  }
}

</mosaic_0001>

<bundles_post_ra>
// kernel: tpu_custom_call.1
= control target key start
LH: loop header
LB: loop body
LE: loop exit
PB: predicated region body
PF: predicated region fallthrough
CT: control target
= control target key end

     0   :  { %9 = vsyncpa [#allocation3], 0  ;;  %vm149_vm0 = vcmask 1043456   ;;  %vm124_vm1 = vcmask 64512   ;;  %vm414_vm2 = vsmask.f32 3328  ;;  %s8454_s0 = inlined_call_operand.vmem [shape: bf16[8,16,9,8], index: 0, kind: input, shape index: {}]   ;;  %s8455_s1 = inlined_call_operand.vmem [shape: bf16[16,8,128], index: 1, kind: input, shape index: {}]   ;;  %s8456_s2 = inlined_call_operand.hbm [shape: bf16[128,128], index: 2, kind: output, shape index: {0}]   ;;  %s8457_s3 = inlined_call_operand.hbm [shape: f32[8,128], index: 3, kind: output, shape index: {1}]  }
   0x1   :  { %v5032_v0 = vld [vmem:[%s8455_s1 + $0x4] sm:$0xf]  ;;  %v5295_v1 = vld [vmem:[%s8455_s1 + $0x20] sm:$0xf]  ;;  %v5002_v5 = vld [vmem:[%s8454_s0 + $0x88] sm:$0xf] }
   0x2   :  { %6246 = vmatprep.subr.msk.bf16.mxu1 %vm149_vm0, %v5032_v0  ;;  %6254 = vmatprep.subr.msk.bf16.mxu0 %vm149_vm0, %v5295_v1  ;;  %v151_v2 = vsel %vm149_vm0, %v5032_v0, 0  ;;  %v2540_v3 = vsel %vm149_vm0, %v5295_v1, 0  ;;  %v5000_v4 = vld [vmem:[%s8454_s0 + $0x80] sm:$0xf]  ;;  %v822_v9 = vshrl.u32 %v5002_v5, 16  ;;  %v825_v11 = vshll.u32 %v5002_v5, 16 }
   0x3   :  { %5719 = vmatpush3.bf16.msra.mxu1 %v151_v2  ;;  %5863 = vmatpush3.bf16.msra.mxu0 %v2540_v3  ;;  %v5033_v6 = vcombine.low %v5000_v4, %v5002_v5  ;;  %v808_v7 = vshrl.u32 %v5000_v4, 16  ;;  %v811_v8 = vshll.u32 %v5000_v4, 16  ;;  %v5231_v10 = vld [vmem:[%s8454_s0 + $0x200] sm:$0xf]  ;;  %v5233_v12 = vld [vmem:[%s8454_s0 + $0x208] sm:$0xf] }
   0x4   :  { %v2838_v13 = vshrl.u32 %v5231_v10, 16  ;;  %v2841_v14 = vshll.u32 %v5231_v10, 16  ;;  %v824_v17 = vrot.slane %v822_v9, 4  ;;  %v5296_v18 = vcombine.low %v5231_v10, %v5233_v12  ;;  %v5004_v19 = vld [vmem:[%s8454_s0 + $0x90] sm:$0xf] }
   0x5   :  { %5720 = vmatprep.mubr.msk.bf16.mxu1 %vm124_vm1, %v5033_v6  ;;  %v810_v15 = vrot.slane %v808_v7, 4  ;;  %v813_v16 = vrot.slane %v811_v8, 5  ;;  %v827_v20 = vrot.slane %v825_v11, 5  ;;  %v2852_v23 = vshrl.u32 %v5233_v12, 16  ;;  %v5006_v24 = vld [vmem:[%s8454_s0 + $0x98] sm:$0xf] }
   0x6   :  { %v2840_v21 = vrot.slane %v2838_v13, 4  ;;  %v2843_v22 = vrot.slane %v2841_v14, 5  ;;  %5864 = vmatprep.mubr.msk.bf16.mxu0 %vm124_vm1, %v5296_v18  ;;  %v2855_v26 = vshll.u32 %v5233_v12, 16  ;;  %v5034_v27 = vcombine.low %v5004_v19, %v5006_v24  ;;  %v81_v29 = vld [vmem:[%s8455_s1] sm:$0xf] }
   0x7   :  { %v814_v25 = vor.u32 %v813_v16, %v810_v15  ;;  %v836_v28 = vshrl.u32 %v5004_v19, 16  ;;  %v5235_v30 = vld [vmem:[%s8454_s0 + $0x210] sm:$0xf]  ;;  %v828_v31 = vor.u32 %v827_v20, %v824_v17  ;;  %v2854_v33 = vrot.slane %v2852_v23, 4  ;;  %6247 = vmatprep.subr.msk.bf16.mxu1 %vm149_vm0, %v81_v29  ;;  %v5237_v35 = vld [vmem:[%s8454_s0 + $0x218] sm:$0xf] }
   0x8   :  { %v2844_v32 = vor.u32 %v2843_v22, %v2840_v21  ;;  %v839_v34 = vshll.u32 %v5004_v19, 16  ;;  %v5312_v36 = vld [vmem:[%s8455_s1 + $0x24] sm:$0xf]  ;;  %v2857_v38 = vrot.slane %v2855_v26, 5  ;;  %5721 = vmatmul.mubr.msk.bf16.vlgmr.msra.gmra.mrb[0].mxu1 %vm124_vm1, %v5034_v27  ;;  %v850_v40 = vshrl.u32 %v5006_v24, 16 }
   0x9   :  { %v6445_v37 = vrot.slane %v814_v25, 4  ;;  %v838_v39 = vrot.slane %v836_v28, 4  ;;  %6255 = vmatprep.subr.msk.bf16.mxu0 %vm149_vm0, %v5312_v36  ;;  %v6449_v41 = vrot.slane %v828_v31, 4  ;;  %v853_v44 = vshll.u32 %v5006_v24, 16  ;;  %v5008_v49 = vld [vmem:[%s8454_s0 + $0xa0] sm:$0xf] }
   0xa   :  { %v6451_v42 = vrot.slane %v2844_v32, 4  ;;  %v841_v43 = vrot.slane %v839_v34, 5  ;;  %v2858_v45 = vor.u32 %v2857_v38, %v2854_v33  ;;  %v852_v46 = vrot.slane %v850_v40, 4  ;;  %v5010_v54 = vld [vmem:[%s8454_s0 + $0xa8] sm:$0xf] }
   0xb   :  { %8458 = vst [vmem:[#allocation8_spill] sm:$0xff] %v6445_v37  ;;  %8459 = vst [vmem:[#allocation9_spill] sm:$0xff] %v6449_v41  ;;  %v5297_v47 = vcombine.low %v5235_v30, %v5237_v35  ;;  %v2866_v48 = vshrl.u32 %v5235_v30, 16  ;;  %v855_v51 = vrot.slane %v853_v44, 5  ;;  %v2869_v52 = vshll.u32 %v5235_v30, 16 }
   0xc   :  { %v842_v50 = vor.u32 %v841_v43, %v838_v39  ;;  %v2880_v53 = vshrl.u32 %v5237_v35, 16  ;;  %v6459_v55 = vrot.slane %v2858_v45, 4  ;;  %v2883_v57 = vshll.u32 %v5237_v35, 16  ;;  %v5239_v59 = vld [vmem:[%s8454_s0 + $0x220] sm:$0xf] }
   0xd   :  { %5865 = vmatmul.mubr.msk.bf16.vlgmr.msra.gmra.mrb[0].mxu0 %vm124_vm1, %v5297_v47  ;;  %v2868_v56 = vrot.slane %v2866_v48, 4  ;;  %v315_v58 = vsel %vm149_vm0, %v81_v29, 0  ;;  %v856_v61 = vor.u32 %v855_v51, %v852_v46  ;;  %v2871_v62 = vrot.slane %v2869_v52, 5  ;;  %v5241_v0 = vld [vmem:[%s8454_s0 + $0x228] sm:$0xf] }
   0xe   :  { %v6466_v60 = vrot.slane %v842_v50, 4  ;;  %v2882_v63 = vrot.slane %v2880_v53, 4  ;;  %5737 = vmatpush3.bf16.msra.mxu1 %v315_v58  ;;  %v2885_v1 = vrot.slane %v2883_v57, 5  ;;  %v2722_v2 = vsel %vm149_vm0, %v5312_v36, 0  ;;  %v5012_v13 = vld [vmem:[%s8454_s0 + $0xb0] sm:$0xf] }
   0xf   :  { %v5035_v3 = vcombine.low %v5008_v49, %v5010_v54  ;;  %v864_v4 = vshrl.u32 %v5008_v49, 16  ;;  %v6472_v5 = vrot.slane %v856_v61, 4  ;;  %v2872_v6 = vor.u32 %v2871_v62, %v2868_v56  ;;  %5881 = vmatpush3.bf16.msra.mxu0 %v2722_v2  ;;  %v5014_v14 = vld [vmem:[%s8454_s0 + $0xb8] sm:$0xf]  ;;  %v5243_v19 = vld [vmem:[%s8454_s0 + $0x230] sm:$0xf] }
  0x10   :  { %8460 = vst [vmem:[#allocation10_spill] sm:$0xff] %v6466_v60  ;;  %v867_v7 = vshll.u32 %v5008_v49, 16  ;;  %v878_v8 = vshrl.u32 %v5010_v54, 16  ;;  %v2886_v9 = vor.u32 %v2885_v1, %v2882_v63  ;;  %v881_v11 = vshll.u32 %v5010_v54, 16  ;;  %v5245_v24 = vld [vmem:[%s8454_s0 + $0x238] sm:$0xf] }
  0x11   :  { %8461 = vst [vmem:[#allocation11_spill] sm:$0xff] %v6472_v5  ;;  %5724 = vmatprep.mubr.msk.bf16.mxu1 %vm124_vm1, %v5035_v3  ;;  %v6475_v10 = vrot.slane %v864_v4, 4  ;;  %v5298_v12 = vcombine.low %v5239_v59, %v5241_v0  ;;  %v6483_v15 = vrot.slane %v2872_v6, 4  ;;  %v2894_v18 = vshrl.u32 %v5239_v59, 16  ;;  %v5016_v29 = vld [vmem:[%s8454_s0 + $0xc0] sm:$0xf] }
  0x12   :  { %v6485_v16 = vrot.slane %v867_v7, 5  ;;  %v6487_v17 = vrot.slane %v878_v8, 4  ;;  %v6492_v20 = vrot.slane %v2886_v9, 4  ;;  %v6494_v21 = vrot.slane %v881_v11, 5  ;;  %v5018_v34 = vld [vmem:[%s8454_s0 + $0xc8] sm:$0xf] }
  0x13   :  { %8462 = vst [vmem:[#allocation12_spill] sm:$0xff] %v6475_v10  ;;  %5868 = vmatprep.mubr.msk.bf16.mxu0 %vm124_vm1, %v5298_v12  ;;  %v2897_v22 = vshll.u32 %v5239_v59, 16  ;;  %v2908_v23 = vshrl.u32 %v5241_v0, 16  ;;  %v6500_v25 = vrot.slane %v2894_v18, 4  ;;  %v2911_v26 = vshll.u32 %v5241_v0, 16 }
  0x14   :  { %8463 = vst [vmem:[#allocation13_spill] sm:$0xff] %v6485_v16  ;;  %8464 = vst [vmem:[#allocation14_spill] sm:$0xff] %v6487_v17  ;;  %v5036_v27 = vcombine.low %v5012_v13, %v5014_v14  ;;  %v892_v28 = vshrl.u32 %v5012_v13, 16  ;;  %v895_v32 = vshll.u32 %v5012_v13, 16  ;;  %v906_v33 = vshrl.u32 %v5014_v14, 16 }
  0x15   :  { %8465 = vst [vmem:[#allocation15_spill] sm:$0xff] %v6494_v21  ;;  %v6505_v30 = vrot.slane %v2897_v22, 5  ;;  %v6507_v31 = vrot.slane %v2908_v23, 4  ;;  %v6512_v35 = vrot.slane %v2911_v26, 5  ;;  %v909_v38 = vshll.u32 %v5014_v14, 16 }
  0x16   :  { %5725 = vmatmul.mubr.msk.bf16.gmra.mrb[4].mxu1 %vm124_vm1, %v5036_v27  ;;  %v6515_v36 = vrot.slane %v892_v28, 4  ;;  %v5299_v39 = vcombine.low %v5243_v19, %v5245_v24  ;;  %v6517_v40 = vrot.slane %v895_v32, 5  ;;  %v6519_v43 = vrot.slane %v906_v33, 4  ;;  %v5247_v46 = vld [vmem:[%s8454_s0 + $0x240] sm:$0xf] }
  0x17   :  { %v2922_v44 = vshrl.u32 %v5243_v19, 16  ;;  %v2925_v45 = vshll.u32 %v5243_v19, 16  ;;  %v6524_v47 = vrot.slane %v909_v38, 5  ;;  %v2936_v48 = vshrl.u32 %v5245_v24, 16  ;;  %v5249_v51 = vld [vmem:[%s8454_s0 + $0x248] sm:$0xf] }
  0x18   :  { %8466 = vst [vmem:[#allocation16_spill] sm:$0xff] %v6515_v36  ;;  %8467 = vst [vmem:[#allocation17_spill] sm:$0xff] %v6517_v40  ;;  %5869 = vmatmul.mubr.msk.bf16.gmra.mrb[4].mxu0 %vm124_vm1, %v5299_v39  ;;  %v2939_v49 = vshll.u32 %v5245_v24, 16  ;;  %v5037_v50 = vcombine.low %v5016_v29, %v5018_v34  ;;  %v920_v54 = vshrl.u32 %v5016_v29, 16  ;;  %v923_v56 = vshll.u32 %v5016_v29, 16 }
  0x19   :  { %8468 = vst [vmem:[#allocation18_spill] sm:$0xff] %v6519_v43  ;;  %8469 = vst [vmem:[#allocation19_spill] sm:$0xff] %v6524_v47  ;;  %v6530_v52 = vrot.slane %v2922_v44, 4  ;;  %v6532_v53 = vrot.slane %v2925_v45, 5  ;;  %v5020_v57 = vld [vmem:[%s8454_s0 + $0xd0] sm:$0xf]  ;;  %v5300_v2 = vcombine.low %v5247_v46, %v5249_v51 }
  0x1a   :  { %v6537_v58 = vrot.slane %v2936_v48, 4  ;;  %v6539_v59 = vrot.slane %v2939_v49, 5  ;;  %5728 = vmatprep.mubr.msk.bf16.mxu1 %vm124_vm1, %v5037_v50  ;;  %v934_v61 = vshrl.u32 %v5018_v34, 16  ;;  %v937_v62 = vshll.u32 %v5018_v34, 16  ;;  %v5022_v63 = vld [vmem:[%s8454_s0 + $0xd8] sm:$0xf] }
  0x1b   :  { %v6545_v0 = vrot.slane %v920_v54, 4  ;;  %v6547_v1 = vrot.slane %v923_v56, 5  ;;  %v2950_v3 = vshrl.u32 %v5247_v46, 16  ;;  %v5251_v4 = vld [vmem:[%s8454_s0 + $0x250] sm:$0xf]  ;;  %v2953_v8 = vshll.u32 %v5247_v46, 16  ;;  %5872 = vmatprep.mubr.msk.bf16.mxu0 %vm124_vm1, %v5300_v2 }
  0x1c   :  { %v6552_v6 = vrot.slane %v934_v61, 4  ;;  %v6554_v7 = vrot.slane %v937_v62, 5  ;;  %v2964_v9 = vshrl.u32 %v5249_v51, 16  ;;  %v5253_v11 = vld [vmem:[%s8454_s0 + $0x258] sm:$0xf]  ;;  %v2967_v13 = vshll.u32 %v5249_v51, 16 }
  0x1d   :  { %8470 = vst [vmem:[#allocation20_spill] sm:$0xff] %v6545_v0  ;;  %8471 = vst [vmem:[#allocation21_spill] sm:$0xff] %v6547_v1  ;;  %v6560_v12 = vrot.slane %v2950_v3, 4  ;;  %v5038_v14 = vcombine.low %v5020_v57, %v5022_v63  ;;  %v948_v18 = vshrl.u32 %v5020_v57, 16  ;;  %v5024_v19 = vld [vmem:[%s8454_s0 + $0xe0] sm:$0xf]  ;;  %v5301_v33 = vcombine.low %v5251_v4, %v5253_v11 }
  0x1e   :  { %8472 = vst [vmem:[#allocation22_spill] sm:$0xff] %v6552_v6  ;;  %8473 = vst [vmem:[#allocation23_spill] sm:$0xff] %v6554_v7  ;;  %v6565_v22 = vrot.slane %v2953_v8, 5  ;;  %v6567_v23 = vrot.slane %v2964_v9, 4  ;;  %v951_v24 = vshll.u32 %v5020_v57, 16  ;;  %v962_v26 = vshrl.u32 %v5022_v63, 16 }
  0x1f   :  { %v5026_v27 = vld [vmem:[%s8454_s0 + $0xe8] sm:$0xf]  ;;  %v6572_v28 = vrot.slane %v2967_v13, 5  ;;  %5729 = vmatmul.mubr.msk.bf16.gmra.mrb[8].mxu1 %vm124_vm1, %v5038_v14  ;;  %v6575_v29 = vrot.slane %v948_v18, 4  ;;  %v965_v32 = vshll.u32 %v5022_v63, 16  ;;  %v2978_v44 = vshrl.u32 %v5251_v4, 16 }
  0x20   :  { %v5255_v34 = vld [vmem:[%s8454_s0 + $0x260] sm:$0xf]  ;;  %v6580_v38 = vrot.slane %v951_v24, 5  ;;  %v6582_v39 = vrot.slane %v962_v26, 4  ;;  %v2981_v45 = vshll.u32 %v5251_v4, 16  ;;  %5873 = vmatmul.mubr.msk.bf16.gmra.mrb[8].mxu0 %vm124_vm1, %v5301_v33  ;;  %v2992_v49 = vshrl.u32 %v5253_v11, 16 }
  0x21   :  { %8474 = vst [vmem:[#allocation24_spill] sm:$0xff] %v6575_v29  ;;  %v5257_v46 = vld [vmem:[%s8454_s0 + $0x268] sm:$0xf]  ;;  %v6587_v48 = vrot.slane %v965_v32, 5  ;;  %v2995_v50 = vshll.u32 %v5253_v11, 16  ;;  %v5039_v51 = vcombine.low %v5024_v19, %v5026_v27  ;;  %v6593_v56 = vrot.slane %v2978_v44, 4 }
  0x22   :  { %8475 = vst [vmem:[#allocation25_spill] sm:$0xff] %v6580_v38  ;;  %8476 = vst [vmem:[#allocation26_spill] sm:$0xff] %v6582_v39  ;;  %v5028_v54 = vld [vmem:[%s8454_s0 + $0xf0] sm:$0xf]  ;;  %v6595_v57 = vrot.slane %v2981_v45, 5  ;;  %v976_v61 = vshrl.u32 %v5024_v19, 16  ;;  %v5302_v14 = vcombine.low %v5255_v34, %v5257_v46 }
  0x23   :  { %8477 = vst [vmem:[#allocation27_spill] sm:$0xff] %v6587_v48  ;;  %v979_v62 = vshll.u32 %v5024_v19, 16  ;;  %v5030_v63 = vld [vmem:[%s8454_s0 + $0xf8] sm:$0xf]  ;;  %v6600_v2 = vrot.slane %v2992_v49, 4  ;;  %v6602_v3 = vrot.slane %v2995_v50, 5  ;;  %5732 = vmatprep.mubr.msk.bf16.mxu1 %vm124_vm1, %v5039_v51 }
  0x24   :  { %v990_v4 = vshrl.u32 %v5026_v27, 16  ;;  %v993_v8 = vshll.u32 %v5026_v27, 16  ;;  %v5259_v9 = vld [vmem:[%s8454_s0 + $0x270] sm:$0xf]  ;;  %v6608_v11 = vrot.slane %v976_v61, 4  ;;  %v3006_v18 = vshrl.u32 %v5255_v34, 16  ;;  %5876 = vmatprep.mubr.msk.bf16.mxu0 %vm124_vm1, %v5302_v14 }
  0x25   :  { %v6610_v13 = vrot.slane %v979_v62, 5  ;;  %v5261_v19 = vld [vmem:[%s8454_s0 + $0x278] sm:$0xf]  ;;  %v3009_v32 = vshll.u32 %v5255_v34, 16  ;;  %v3020_v27 = vshrl.u32 %v5257_v46, 16  ;;  %v3023_v45 = vshll.u32 %v5257_v46, 16 }
  0x26   :  { %8478 = vst [vmem:[#allocation28_spill] sm:$0xff] %v6608_v11  ;;  %v6615_v24 = vrot.slane %v990_v4, 4  ;;  %v6617_v26 = vrot.slane %v993_v8, 5  ;;  %v6622_v33 = vld [vmem:[%s8455_s1 + $0x8] sm:$0xf]  ;;  %v6625_v44 = vrot.slane %v3006_v18, 4  ;;  %v5040_v49 = vcombine.low %v5028_v54, %v5030_v63 }
  0x27   :  { %8479 = vst [vmem:[#allocation29_spill] sm:$0xff] %v6610_v13  ;;  %v1004_v50 = vshrl.u32 %v5028_v54, 16  ;;  %v16_v51 = vld [vmem:[%s8454_s0] sm:$0xf]  ;;  %6248 = vmatprep.subr.msk.bf16.mxu1 %vm149_vm0, %v6622_v33  ;;  %v6632_v34 = vrot.slane %v3009_v32, 5  ;;  %v6634_v61 = vrot.slane %v3020_v27, 4 }
  0x28   :  { %8480 = vst [vmem:[#allocation30_spill] sm:$0xff] %v6615_v24  ;;  %8481 = vst [vmem:[#allocation31_spill] sm:$0xff] %v6617_v26  ;;  %v1007_v62 = vshll.u32 %v5028_v54, 16  ;;  %v1018_v4 = vshrl.u32 %v5030_v63, 16  ;;  %v18_v8 = vld [vmem:[%s8454_s0 + $0x8] sm:$0xf]  ;;  %5733 = vmatmul.mubr.msk.bf16.gmra.mrb[12].mxu1 %vm124_vm1, %v5040_v49  ;;  %v5303_v26 = vcombine.low %v5259_v9, %v5261_v19 }
  0x29   :  { %8482 = vst [vmem:[#allocation32_spill] sm:$0xff] %v6625_v44  ;;  %8483 = vst [vmem:[#allocation33_spill] sm:$0xff] %v6632_v34  ;;  %v6639_v46 = vrot.slane %v3023_v45, 5  ;;  %v6642_v14 = vrot.slane %v1004_v50, 4  ;;  %v1021_v18 = vshll.u32 %v5030_v63, 16  ;;  %v3034_v24 = vshrl.u32 %v5259_v9, 16 }
  0x2a   :  { %8484 = vst [vmem:[#allocation34_spill] sm:$0xff] %v6634_v61  ;;  %v6647_v32 = vld [vmem:[%s8455_s1 + $0x28] sm:$0xf]  ;;  %v6649_v27 = vrot.slane %v1007_v62, 5  ;;  %v6651_v54 = vrot.slane %v1018_v4, 4  ;;  %v3037_v13 = vshll.u32 %v5259_v9, 16  ;;  %5877 = vmatmul.mubr.msk.bf16.gmra.mrb[12].mxu0 %vm124_vm1, %v5303_v26 }
  0x2b   :  { %8485 = vst [vmem:[#allocation35_spill] sm:$0xff] %v6639_v46  ;;  %8486 = vst [vmem:[#allocation36_spill] sm:$0xff] %v6642_v14  ;;  %v5263_v45 = vld [vmem:[%s8454_s0 + $0x280] sm:$0xf]  ;;  %6256 = vmatprep.subr.msk.bf16.mxu0 %vm149_vm0, %v6647_v32  ;;  %v6658_v63 = vrot.slane %v1021_v18, 5  ;;  %v3048_v49 = vshrl.u32 %v5261_v19, 16  ;;  %v5049_v14 = vcombine.low %v16_v51, %v18_v8 }
  0x2c   :  { %8487 = vst [vmem:[#allocation37_spill] sm:$0xff] %v6649_v27  ;;  %8488 = vst [vmem:[#allocation38_spill] sm:$0xff] %v6651_v54  ;;  %v3051_v50 = vshll.u32 %v5261_v19, 16  ;;  %v5265_v62 = vld [vmem:[%s8454_s0 + $0x288] sm:$0xf]  ;;  %v6664_v4 = vrot.slane %v3034_v24, 4 }
  0x2d   :  { %8489 = vst [vmem:[#allocation39_spill] sm:$0xff] %v6658_v63  ;;  %v6666_v9 = vrot.slane %v3037_v13, 5  ;;  %v418_v54 = vshrl.u32 %v16_v51, 16  ;;  %v421_v27 = vshll.u32 %v16_v51, 16  ;;  %v20_v18 = vld [vmem:[%s8454_s0 + $0x10] sm:$0xf]  ;;  %5738 = vmatprep.mubr.msk.bf16.mxu1 %vm124_vm1, %v5049_v14  ;;  %v5313_v51 = vcombine.low %v5263_v45, %v5265_v62 }
  0x2e   :  { %8490 = vst [vmem:[#allocation40_spill] sm:$0xff] %v6664_v4  ;;  %v6671_v63 = vrot.slane %v3048_v49, 4  ;;  %v6673_v26 = vrot.slane %v3051_v50, 5  ;;  %v432_v19 = vshrl.u32 %v18_v8, 16  ;;  %v435_v11 = vshll.u32 %v18_v8, 16 }
  0x2f   :  { %8491 = vst [vmem:[#allocation41_spill] sm:$0xff] %v6666_v9  ;;  %v22_v24 = vld [vmem:[%s8454_s0 + $0x18] sm:$0xf]  ;;  %v6679_v13 = vrot.slane %v418_v54, 4  ;;  %v6681_v48 = vrot.slane %v421_v27, 5  ;;  %v3228_v39 = vshrl.u32 %v5263_v45, 16  ;;  %5882 = vmatprep.mubr.msk.bf16.mxu0 %vm124_vm1, %v5313_v51 }
  0x30   :  { %8492 = vst [vmem:[#allocation42_spill] sm:$0xff] %v6671_v63  ;;  %8493 = vst [vmem:[#allocation43_spill] sm:$0xff] %v6673_v26  ;;  %v5267_v49 = vld [vmem:[%s8454_s0 + $0x290] sm:$0xf]  ;;  %v6686_v50 = vrot.slane %v432_v19, 4  ;;  %v6688_v38 = vrot.slane %v435_v11, 5  ;;  %v5050_v7 = vcombine.low %v20_v18, %v22_v24 }
  0x31   :  { %v3231_v14 = vshll.u32 %v5263_v45, 16  ;;  %v3242_v8 = vshrl.u32 %v5265_v62, 16  ;;  %v5269_v29 = vld [vmem:[%s8454_s0 + $0x298] sm:$0xf]  ;;  %v6694_v27 = vrot.slane %v3228_v39, 4  ;;  %v3245_v54 = vshll.u32 %v5265_v62, 16 }
  0x32   :  { %v446_v6 = vshrl.u32 %v20_v18, 16  ;;  %v449_v19 = vshll.u32 %v20_v18, 16  ;;  %v460_v11 = vshrl.u32 %v22_v24, 16  ;;  %v24_v45 = vld [vmem:[%s8454_s0 + $0x20] sm:$0xf]  ;;  %5739 = vmatmul.mubr.msk.bf16.vlgmr.msra.gmra.mrb[0].mxu1 %vm124_vm1, %v5050_v7  ;;  %v463_v39 = vshll.u32 %v22_v24, 16 }
  0x33   :  { %8494 = vst [vmem:[#allocation44_spill] sm:$0xff] %v6694_v27  ;;  %v6696_v1 = vrot.slane %v3231_v14, 5  ;;  %v6698_v0 = vrot.slane %v3242_v8, 4  ;;  %v6703_v47 = vrot.slane %v3245_v54, 5  ;;  %v5314_v62 = vcombine.low %v5267_v49, %v5269_v29  ;;  %v26_v14 = vld [vmem:[%s8454_s0 + $0x28] sm:$0xf] }
  0x34   :  { %v6706_v51 = vrot.slane %v446_v6, 4  ;;  %v6711_v8 = vrot.slane %v449_v19, 5  ;;  %v6713_v18 = vrot.slane %v460_v11, 4  ;;  %v3256_v43 = vshrl.u32 %v5267_v49, 16  ;;  %v5271_v54 = vld [vmem:[%s8454_s0 + $0x2a0] sm:$0xf] }
  0x35   :  { %8495 = vst [vmem:[#allocation45_spill] sm:$0xff] %v6696_v1  ;;  %8496 = vst [vmem:[#allocation46_spill] sm:$0xff] %v6698_v0  ;;  %v3259_v40 = vshll.u32 %v5267_v49, 16  ;;  %v6718_v36 = vrot.slane %v463_v39, 5  ;;  %5883 = vmatmul.mubr.msk.bf16.vlgmr.msra.gmra.mrb[0].mxu0 %vm124_vm1, %v5314_v62  ;;  %v3270_v6 = vshrl.u32 %v5269_v29, 16  ;;  %v3273_v7 = vshll.u32 %v5269_v29, 16 }
  0x36   :  { %8497 = vst [vmem:[#allocation47_spill] sm:$0xff] %v6703_v47  ;;  %v692_v24 = vsel %vm149_vm0, %v6622_v33, 0  ;;  %v5273_v19 = vld [vmem:[%s8454_s0 + $0x2a8] sm:$0xf]  ;;  %v6726_v11 = vrot.slane %v3256_v43, 4  ;;  %v3112_v39 = vsel %vm149_vm0, %v6647_v32, 0  ;;  %v5051_v21 = vcombine.low %v24_v45, %v26_v14 }
  0x37   :  { %v6728_v49 = vrot.slane %v3259_v40, 5  ;;  %5755 = vmatpush3.bf16.msra.mxu1 %v692_v24  ;;  %v6732_v17 = vrot.slane %v3270_v6, 4  ;;  %v6734_v62 = vrot.slane %v3273_v7, 5  ;;  %5899 = vmatpush3.bf16.msra.mxu0 %v3112_v39  ;;  %v474_v29 = vshrl.u32 %v24_v45, 16  ;;  %v28_v16 = vld [vmem:[%s8454_s0 + $0x30] sm:$0xf] }
  0x38   :  { %8498 = vst [vmem:[#allocation48_spill] sm:$0xff] %v6726_v11  ;;  %v477_v33 = vshll.u32 %v24_v45, 16  ;;  %5742 = vmatprep.mubr.msk.bf16.mxu1 %vm124_vm1, %v5051_v21  ;;  %v488_v40 = vshrl.u32 %v26_v14, 16  ;;  %v491_v43 = vshll.u32 %v26_v14, 16  ;;  %v5315_v24 = vcombine.low %v5271_v54, %v5273_v19  ;;  %v30_v32 = vld [vmem:[%s8454_s0 + $0x38] sm:$0xf] }
  0x39   :  { %8499 = vst [vmem:[#allocation49_spill] sm:$0xff] %v6728_v49  ;;  %8500 = vst [vmem:[#allocation50_spill] sm:$0xff] %v6732_v17  ;;  %v3284_v10 = vshrl.u32 %v5271_v54, 16  ;;  %v6743_v6 = vrot.slane %v474_v29, 4  ;;  %v3287_v39 = vshll.u32 %v5271_v54, 16  ;;  %v3298_v45 = vshrl.u32 %v5273_v19, 16 }
  0x3a   :  { %8501 = vst [vmem:[#allocation51_spill] sm:$0xff] %v6734_v62  ;;  %v6745_v7 = vrot.slane %v477_v33, 5  ;;  %v5275_v5 = vld [vmem:[%s8454_s0 + $0x2b0] sm:$0xf]  ;;  %v6750_v60 = vrot.slane %v488_v40, 4  ;;  %v6752_v21 = vrot.slane %v491_v43, 5  ;;  %5886 = vmatprep.mubr.msk.bf16.mxu0 %vm124_vm1, %v5315_v24  ;;  %v5052_v17 = vcombine.low %v28_v16, %v30_v32 }
  0x3b   :  { %v6755_v14 = vrot.slane %v3284_v10, 4  ;;  %v3301_v62 = vshll.u32 %v5273_v19, 16  ;;  %v5277_v29 = vld [vmem:[%s8454_s0 + $0x2b8] sm:$0xf]  ;;  %v6760_v33 = vrot.slane %v3287_v39, 5  ;;  %v6762_v54 = vrot.slane %v3298_v45, 4 }
  0x3c   :  { %v502_v49 = vshrl.u32 %v28_v16, 16  ;;  %v32_v40 = vld [vmem:[%s8454_s0 + $0x40] sm:$0xf]  ;;  %v505_v24 = vshll.u32 %v28_v16, 16  ;;  %v516_v10 = vshrl.u32 %v30_v32, 16  ;;  %5743 = vmatmul.mubr.msk.bf16.gmra.mrb[4].mxu1 %vm124_vm1, %v5052_v17  ;;  %v5316_v45 = vcombine.low %v5275_v5, %v5277_v29 }
  0x3d   :  { %8502 = vst [vmem:[#allocation52_spill] sm:$0xff] %v6755_v14  ;;  %8503 = vst [vmem:[#allocation53_spill] sm:$0xff] %v6760_v33  ;;  %v6767_v43 = vrot.slane %v3301_v62, 5  ;;  %v519_v14 = vshll.u32 %v30_v32, 16  ;;  %v34_v19 = vld [vmem:[%s8454_s0 + $0x48] sm:$0xf] }
  0x3e   :  { %8504 = vst [vmem:[#allocation54_spill] sm:$0xff] %v6762_v54  ;;  %v6773_v39 = vrot.slane %v502_v49, 4  ;;  %v3312_v54 = vshrl.u32 %v5275_v5, 16  ;;  %v3315_v33 = vshll.u32 %v5275_v5, 16  ;;  %v5279_v11 = vld [vmem:[%s8454_s0 + $0x2c0] sm:$0xf]  ;;  %5887 = vmatmul.mubr.msk.bf16.gmra.mrb[4].mxu0 %vm124_vm1, %v5316_v45  ;;  %v5053_v37 = vcombine.low %v32_v40, %v34_v19 }
  0x3f   :  { %8505 = vst [vmem:[#allocation55_spill] sm:$0xff] %v6767_v43  ;;  %v6778_v62 = vrot.slane %v505_v24, 5  ;;  %v6780_v16 = vrot.slane %v516_v10, 4  ;;  %v6782_v32 = vrot.slane %v519_v14, 5  ;;  %v3326_v43 = vshrl.u32 %v5277_v29, 16 }
  0x40   :  { %v5281_v17 = vld [vmem:[%s8454_s0 + $0x2c8] sm:$0xf]  ;;  %v6788_v49 = vrot.slane %v3312_v54, 4  ;;  %v6790_v5 = vrot.slane %v3315_v33, 5  ;;  %v3329_v41 = vshll.u32 %v5277_v29, 16  ;;  %v530_v14 = vshrl.u32 %v32_v40, 16  ;;  %5746 = vmatprep.mubr.msk.bf16.mxu1 %vm124_vm1, %v5053_v37 }
  0x41   :  { %v36_v24 = vld [vmem:[%s8454_s0 + $0x50] sm:$0xf]  ;;  %v6795_v10 = vrot.slane %v3326_v43, 4  ;;  %v533_v47 = vshll.u32 %v32_v40, 16  ;;  %v544_v0 = vshrl.u32 %v34_v19, 16  ;;  %v547_v33 = vshll.u32 %v34_v19, 16 }
  0x42   :  { %8506 = vst [vmem:[#allocation56_spill] sm:$0xff] %v6788_v49  ;;  %8507 = vst [vmem:[#allocation57_spill] sm:$0xff] %v6790_v5  ;;  %v38_v1 = vld [vmem:[%s8454_s0 + $0x58] sm:$0xf]  ;;  %v6800_v45 = vrot.slane %v3329_v41, 5  ;;  %v5317_v29 = vcombine.low %v5279_v11, %v5281_v17  ;;  %v3340_v54 = vshrl.u32 %v5279_v11, 16 }
  0x43   :  { %8508 = vst [vmem:[#allocation58_spill] sm:$0xff] %v6795_v10  ;;  %v5283_v5 = vld [vmem:[%s8454_s0 + $0x2d0] sm:$0xf]  ;;  %v6806_v43 = vrot.slane %v530_v14, 4  ;;  %v6808_v10 = vrot.slane %v533_v47, 5  ;;  %v6810_v40 = vrot.slane %v544_v0, 4  ;;  %v5054_v0 = vcombine.low %v36_v24, %v38_v1 }
  0x44   :  { %8509 = vst [vmem:[#allocation59_spill] sm:$0xff] %v6800_v45  ;;  %v3343_v49 = vshll.u32 %v5279_v11, 16  ;;  %v5285_v41 = vld [vmem:[%s8454_s0 + $0x2d8] sm:$0xf]  ;;  %v6815_v45 = vrot.slane %v547_v33, 5  ;;  %5890 = vmatprep.mubr.msk.bf16.mxu0 %vm124_vm1, %v5317_v29  ;;  %v6818_v37 = vrot.slane %v3340_v54, 4 }
  0x45   :  { %v3354_v19 = vshrl.u32 %v5281_v17, 16  ;;  %v3357_v27 = vshll.u32 %v5281_v17, 16  ;;  %v40_v47 = vld [vmem:[%s8454_s0 + $0x60] sm:$0xf]  ;;  %v558_v11 = vshrl.u32 %v36_v24, 16  ;;  %v561_v26 = vshll.u32 %v36_v24, 16  ;;  %5747 = vmatmul.mubr.msk.bf16.gmra.mrb[8].mxu1 %vm124_vm1, %v5054_v0 }
  0x46   :  { %8510 = vst [vmem:[#allocation60_spill] sm:$0xff] %v6818_v37  ;;  %v6823_v14 = vrot.slane %v3343_v49, 5  ;;  %v42_v33 = vld [vmem:[%s8454_s0 + $0x68] sm:$0xf]  ;;  %v572_v54 = vshrl.u32 %v38_v1, 16  ;;  %v575_v37 = vshll.u32 %v38_v1, 16  ;;  %v5318_v24 = vcombine.low %v5283_v5, %v5285_v41 }
  0x47   :  { %v6828_v63 = vrot.slane %v3354_v19, 4  ;;  %v6830_v29 = vrot.slane %v3357_v27, 5  ;;  %v5287_v17 = vld [vmem:[%s8454_s0 + $0x2e0] sm:$0xf]  ;;  %v6836_v49 = vrot.slane %v558_v11, 4  ;;  %v3368_v9 = vshrl.u32 %v5283_v5, 16 }
  0x48   :  { %8511 = vst [vmem:[#allocation61_spill] sm:$0xff] %v6823_v14  ;;  %v6838_v14 = vrot.slane %v561_v26, 5  ;;  %v5289_v19 = vld [vmem:[%s8454_s0 + $0x2e8] sm:$0xf]  ;;  %v6843_v27 = vrot.slane %v572_v54, 4  ;;  %v3371_v1 = vshll.u32 %v5283_v5, 16  ;;  %5891 = vmatmul.mubr.msk.bf16.gmra.mrb[8].mxu0 %vm124_vm1, %v5318_v24  ;;  %v5055_v4 = vcombine.low %v40_v47, %v42_v33 }
  0x49   :  { %8512 = vst [vmem:[#allocation62_spill] sm:$0xff] %v6828_v63  ;;  %8513 = vst [vmem:[#allocation63_spill] sm:$0xff] %v6830_v29  ;;  %v6845_v29 = vrot.slane %v575_v37, 5  ;;  %v3382_v63 = vshrl.u32 %v5285_v41, 16  ;;  %v44_v0 = vld [vmem:[%s8454_s0 + $0x70] sm:$0xf] }
  0x4a   :  { %v6851_v26 = vrot.slane %v3368_v9, 4  ;;  %v3385_v11 = vshll.u32 %v5285_v41, 16  ;;  %v586_v46 = vshrl.u32 %v40_v47, 16  ;;  %v46_v54 = vld [vmem:[%s8454_s0 + $0x78] sm:$0xf]  ;;  %v6856_v61 = vrot.slane %v3371_v1, 5  ;;  %5750 = vmatprep.mubr.msk.bf16.mxu1 %vm124_vm1, %v5055_v4 }
  0x4b   :  { %v6858_v37 = vrot.slane %v3382_v63, 4  ;;  %v589_v5 = vshll.u32 %v40_v47, 16  ;;  %v600_v34 = vshrl.u32 %v42_v33, 16  ;;  %v6863_v44 = vld [vmem:[%s8455_s1 + $0xc] sm:$0xf]  ;;  %v603_v24 = vshll.u32 %v42_v33, 16 }
  0x4c   :  { %8514 = vst [vmem:[#allocation64_spill] sm:$0xff] %v6851_v26  ;;  %8515 = vst [vmem:[#allocation65_spill] sm:$0xff] %v6856_v61  ;;  %v6865_v9 = vrot.slane %v3385_v11, 5  ;;  %v6868_v41 = vrot.slane %v586_v46, 4  ;;  %v5319_v26 = vcombine.low %v5287_v17, %v5289_v19  ;;  %v5291_v63 = vld [vmem:[%s8454_s0 + $0x2f0] sm:$0xf]  ;;  %6249 = vmatprep.subr.msk.bf16.mxu1 %vm149_vm0, %v6863_v44  ;;  %v5056_v61 = vcombine.low %v44_v0, %v46_v54 }
  0x4d   :  { %8516 = vst [vmem:[#allocation66_spill] sm:$0xff] %v6858_v37  ;;  %v6875_v47 = vrot.slane %v589_v5, 5  ;;  %v6877_v1 = vrot.slane %v600_v34, 4  ;;  %v3396_v37 = vshrl.u32 %v5287_v17, 16  ;;  %v3399_v11 = vshll.u32 %v5287_v17, 16 }
  0x4e   :  { %8517 = vst [vmem:[#allocation67_spill] sm:$0xff] %v6865_v9  ;;  %8518 = vst [vmem:[#allocation68_spill] sm:$0xff] %v6868_v41  ;;  %v5293_v46 = vld [vmem:[%s8454_s0 + $0x2f8] sm:$0xf]  ;;  %v6882_v4 = vrot.slane %v603_v24, 5  ;;  %5894 = vmatprep.mubr.msk.bf16.mxu0 %vm124_vm1, %v5319_v26  ;;  %v3410_v33 = vshrl.u32 %v5289_v19, 16  ;;  %5751 = vmatmul.mubr.msk.bf16.gmra.mrb[12].mxu1 %vm124_vm1, %v5056_v61 }
  0x4f   :  { %8519 = vst [vmem:[#allocation69_spill] sm:$0xff] %v6875_v47  ;;  %8520 = vst [vmem:[#allocation70_spill] sm:$0xff] %v6877_v1  ;;  %v3413_v9 = vshll.u32 %v5289_v19, 16  ;;  %v6888_v5 = vld [vmem:[%s8455_s1 + $0x2c] sm:$0xf]  ;;  %v6890_v34 = vrot.slane %v3396_v37, 4 }
  0x50   :  { %8521 = vst [vmem:[#allocation71_spill] sm:$0xff] %v6882_v4  ;;  %v6892_v1 = vrot.slane %v3399_v11, 5  ;;  %v614_v17 = vshrl.u32 %v44_v0, 16  ;;  %v617_v47 = vshll.u32 %v44_v0, 16  ;;  %v17_v24 = vld [vmem:[%s8454_s0 + $0x4] sm:$0x1]  ;;  %6257 = vmatprep.subr.msk.bf16.mxu0 %vm149_vm0, %v6888_v5 }
  0x51   :  { %8522 = vst [vmem:[#allocation72_spill] sm:$0xff] %v6890_v34  ;;  %v6899_v19 = vrot.slane %v3410_v33, 4  ;;  %v6901_v26 = vrot.slane %v3413_v9, 5  ;;  %v628_v4 = vshrl.u32 %v46_v54, 16  ;;  %v631_v37 = vshll.u32 %v46_v54, 16 }
  0x52   :  { %8523 = vst [vmem:[#allocation73_spill] sm:$0xff] %v6892_v1  ;;  %v19_v11 = vld [vmem:[%s8454_s0 + $0xc] sm:$0x1]  ;;  %v6907_v0 = vrot.slane %v614_v17, 4  ;;  %v6909_v1 = vrot.slane %v617_v47, 5  ;;  %v5320_v34 = vcombine.low %v5291_v63, %v5293_v46  ;;  %v3424_v41 = vshrl.u32 %v5291_v63, 16 }
  0x53   :  { %8524 = vst [vmem:[#allocation74_spill] sm:$0xff] %v6899_v19  ;;  %8525 = vst [vmem:[#allocation75_spill] sm:$0xff] %v6901_v26  ;;  %v5232_v33 = vld [vmem:[%s8454_s0 + $0x204] sm:$0x1]  ;;  %v6914_v9 = vrot.slane %v628_v4, 4  ;;  %v6916_v26 = vrot.slane %v631_v37, 5  ;;  %v424_v4 = vor.u32 %v6681_v48, %v6679_v13  ;;  %v452_v13 = vor.u32 %v6711_v8, %v6706_v51 }
  0x54   :  { %8526 = vst [vmem:[#allocation76_spill] sm:$0xff] %v6907_v0  ;;  %8527 = vst [vmem:[#allocation77_spill] sm:$0xff] %v6909_v1  ;;  %v3427_v61 = vshll.u32 %v5291_v63, 16  ;;  %v3438_v54 = vshrl.u32 %v5293_v46, 16  ;;  %v5234_v19 = vld [vmem:[%s8454_s0 + $0x20c] sm:$0x1]  ;;  %5895 = vmatmul.mubr.msk.bf16.gmra.mrb[12].mxu0 %vm124_vm1, %v5320_v34 }
  0x55   :  { %8528 = vst [vmem:[#allocation78_spill] sm:$0xff] %v6916_v26  ;;  %v6922_v47 = vrot.slane %v3424_v41, 4  ;;  %v3441_v17 = vshll.u32 %v5293_v46, 16  ;;  %vm415_vm3 = vsmask.f32 7440  ;;  %v427_v63 = vshll.u32 %v17_v24, 16 }
  0x56   :  { %v6924_v1 = vrot.slane %v3427_v61, 5  ;;  %v6926_v0 = vrot.slane %v3438_v54, 4  ;;  %v21_v37 = vld [vmem:[%s8454_s0 + $0x14] sm:$0x1]  ;;  %vm6935_vm4 = vmor %vm414_vm2, %vm415_vm3  ;;  %v438_v46 = vor.u32 %v6688_v38, %v6686_v50  ;;  %v441_v34 = vshll.u32 %v19_v11, 16 }
  0x57   :  { %8529 = vst [vmem:[#allocation79_spill] sm:$0xff] %v6922_v47  ;;  %v6933_v26 = vrot.slane %v3441_v17, 5  ;;  %v2847_v61 = vshll.u32 %v5232_v33, 16  ;;  %v425_v54 = vrot.slane %v424_v4, 4  ;;  %v23_v48 = vld [vmem:[%s8454_s0 + $0x1c] sm:$0x1]  ;;  %v466_v33 = vor.u32 %v6718_v36, %v6713_v18 }
  0x58   :  { %8530 = vst [vmem:[#allocation80_spill] sm:$0xff] %v6924_v1  ;;  %8531 = vst [vmem:[#allocation81_spill] sm:$0xff] %v6926_v0  ;;  %v429_v0 = vrot.slane %v427_v63, 5  ;;  %v2861_v1 = vshll.u32 %v5234_v19, 16  ;;  %v439_v24 = vrot.slane %v438_v46, 4  ;;  %v443_v17 = vrot.slane %v441_v34, 5 }
  0x59   :  { %8532 = vst [vmem:[#allocation82_spill] sm:$0xff] %v6933_v26  ;;  %v2849_v26 = vrot.slane %v2847_v61, 5  ;;  %v455_v47 = vshll.u32 %v21_v37, 16  ;;  %v5236_v38 = vld [vmem:[%s8454_s0 + $0x214] sm:$0x1]  ;;  %v453_v19 = vrot.slane %v452_v13, 4 }
  0x5a   :  { %v430_v50 = vsel %vm6935_vm4, %v425_v54, %v429_v0  ;;  %v2863_v11 = vrot.slane %v2861_v1, 5  ;;  %v5238_v51 = vld [vmem:[%s8454_s0 + $0x21c] sm:$0x1]  ;;  %v444_v8 = vsel %vm6935_vm4, %v439_v24, %v443_v17  ;;  %v469_v37 = vshll.u32 %v23_v48, 16  ;;  %v25_v18 = vld [vmem:[%s8454_s0 + $0x24] sm:$0x1] }
  0x5b   :  { %v2850_v4 = vsel %vm6935_vm4, %v6451_v42, %v2849_v26  ;;  %v457_v63 = vrot.slane %v455_v47, 5  ;;  %v5066_v46 = vcombine.low %v430_v50, %v444_v8  ;;  %v467_v0 = vrot.slane %v466_v33, 4  ;;  %v27_v42 = vld [vmem:[%s8454_s0 + $0x2c] sm:$0x1]  ;;  %v29_v8 = vld [vmem:[%s8454_s0 + $0x34] sm:$0x1] }
  0x5c   :  { %v2864_v1 = vsel %vm6935_vm4, %v6459_v55, %v2863_v11  ;;  %v2875_v36 = vshll.u32 %v5236_v38, 16  ;;  %v471_v54 = vrot.slane %v469_v37, 5  ;;  %v2889_v13 = vshll.u32 %v5238_v51, 16 }
  0x5d   :  { %v5330_v34 = vcombine.low %v2850_v4, %v2864_v1  ;;  %v458_v61 = vsel %vm6935_vm4, %v453_v19, %v457_v63  ;;  %5756 = vmatprep.mubr.msk.bf16.mxu1 %vm124_vm1, %v5066_v46  ;;  %v1082_v55 = vsel %vm149_vm0, %v6863_v44, 0  ;;  %v3502_v47 = vsel %vm149_vm0, %v6888_v5, 0  ;;  %v5240_v44 = vld [vmem:[%s8454_s0 + $0x224] sm:$0x1]  ;;  %v5242_v19 = vld [vmem:[%s8454_s0 + $0x22c] sm:$0x1] }
  0x5e   :  { %v2877_v26 = vrot.slane %v2875_v36, 5  ;;  %v480_v48 = vor.u32 %v6745_v7, %v6743_v6  ;;  %v472_v24 = vsel %vm6935_vm4, %v467_v0, %v471_v54  ;;  %v2891_v17 = vrot.slane %v2889_v13, 5 }
  0x5f   :  { %5900 = vmatprep.mubr.msk.bf16.mxu0 %vm124_vm1, %v5330_v34  ;;  %v483_v38 = vshll.u32 %v25_v18, 16  ;;  %v494_v50 = vor.u32 %v6752_v21, %v6750_v60  ;;  %v5067_v11 = vcombine.low %v458_v61, %v472_v24  ;;  %v497_v7 = vshll.u32 %v27_v42, 16  ;;  %v5244_v18 = vld [vmem:[%s8454_s0 + $0x234] sm:$0x1] }
  0x60   :  { %v2878_v5 = vsel %vm6935_vm4, %v6483_v15, %v2877_v26  ;;  %v481_v6 = vrot.slane %v480_v48, 4  ;;  %v2892_v33 = vsel %vm6935_vm4, %v6492_v20, %v2891_v17  ;;  %v2900_v51 = vor.u32 %v6505_v30, %v6500_v25  ;;  %v31_v25 = vld [vmem:[%s8454_s0 + $0x3c] sm:$0x1] }
  0x61   :  { %v485_v60 = vrot.slane %v483_v38, 5  ;;  %v495_v21 = vrot.slane %v494_v50, 4  ;;  %5757 = vmatmul.mubr.msk.bf16.vlgmr.msra.gmra.mrb[0].mxu1 %vm124_vm1, %v5067_v11  ;;  %v5331_v15 = vcombine.low %v2878_v5, %v2892_v33  ;;  %v499_v4 = vrot.slane %v497_v7, 5 }
  0x62   :  { %v2903_v63 = vshll.u32 %v5240_v44, 16  ;;  %v2914_v37 = vor.u32 %v6512_v35, %v6507_v31  ;;  %5773 = vmatpush3.bf16.msra.mxu1 %v1082_v55  ;;  %v2901_v46 = vrot.slane %v2900_v51, 4  ;;  %v2917_v1 = vshll.u32 %v5242_v19, 16  ;;  %v5250_v51 = vld [vmem:[%s8454_s0 + $0x24c] sm:$0x1] }
  0x63   :  { %v486_v20 = vsel %vm6935_vm4, %v481_v6, %v485_v60  ;;  %v508_v30 = vor.u32 %v6778_v62, %v6773_v39  ;;  %5901 = vmatmul.mubr.msk.bf16.vlgmr.msra.gmra.mrb[0].mxu0 %vm124_vm1, %v5331_v15  ;;  %v500_v0 = vsel %vm6935_vm4, %v495_v21, %v499_v4  ;;  %v511_v35 = vshll.u32 %v29_v8, 16  ;;  %v5246_v39 = vld [vmem:[%s8454_s0 + $0x23c] sm:$0x1]  ;;  %v5248_v21 = vld [vmem:[%s8454_s0 + $0x244] sm:$0x1] }
  0x64   :  { %v2905_v36 = vrot.slane %v2903_v63, 5  ;;  %v2915_v31 = vrot.slane %v2914_v37, 4  ;;  %5917 = vmatpush3.bf16.msra.mxu0 %v3502_v47  ;;  %v5068_v34 = vcombine.low %v486_v20, %v500_v0  ;;  %v2919_v61 = vrot.slane %v2917_v1, 5  ;;  %v33_v47 = vld [vmem:[%s8454_s0 + $0x44] sm:$0x1] }
  0x65   :  { %v509_v54 = vrot.slane %v508_v30, 4  ;;  %v522_v13 = vor.u32 %v6782_v32, %v6780_v16  ;;  %v513_v42 = vrot.slane %v511_v35, 5  ;;  %v525_v26 = vshll.u32 %v31_v25, 16  ;;  %v7032_v16 = vld [vmem:[%s8455_s1 + $0x10] sm:$0xf] }
  0x66   :  { %v2906_v62 = vsel %vm6935_vm4, %v2901_v46, %v2905_v36  ;;  %v2928_v55 = vor.u32 %v6532_v53, %v6530_v52  ;;  %5760 = vmatprep.mubr.msk.bf16.mxu1 %vm124_vm1, %v5068_v34  ;;  %v2920_v32 = vsel %vm6935_vm4, %v2915_v31, %v2919_v61  ;;  %v2931_v24 = vshll.u32 %v5244_v18, 16  ;;  %v35_v52 = vld [vmem:[%s8454_s0 + $0x4c] sm:$0x1]  ;;  %6250 = vmatprep.subr.msk.bf16.mxu1 %vm149_vm0, %v7032_v16  ;;  %v7047_v53 = vld [vmem:[%s8455_s1 + $0x30] sm:$0xf] }
  0x67   :  { %v523_v48 = vrot.slane %v522_v13, 4  ;;  %v2942_v17 = vor.u32 %v6539_v59, %v6537_v58  ;;  %v5332_v38 = vcombine.low %v2906_v62, %v2920_v32  ;;  %v514_v50 = vsel %vm6935_vm4, %v509_v54, %v513_v42  ;;  %6258 = vmatprep.subr.msk.bf16.mxu0 %vm149_vm0, %v7047_v53  ;;  %v37_v25 = vld [vmem:[%s8454_s0 + $0x54] sm:$0x1]  ;;  %v39_v30 = vld [vmem:[%s8454_s0 + $0x5c] sm:$0x1] }
  0x68   :  { %v527_v44 = vrot.slane %v525_v26, 5  ;;  %v2929_v11 = vrot.slane %v2928_v55, 4  ;;  %v2933_v58 = vrot.slane %v2931_v24, 5  ;;  %v2945_v5 = vshll.u32 %v5246_v39, 16  ;;  %v5254_v42 = vld [vmem:[%s8454_s0 + $0x25c] sm:$0x1] }
  0x69   :  { %v2943_v59 = vrot.slane %v2942_v17, 4  ;;  %v536_v6 = vor.u32 %v6808_v10, %v6806_v43  ;;  %5904 = vmatprep.mubr.msk.bf16.mxu0 %vm124_vm1, %v5332_v38  ;;  %v539_v19 = vshll.u32 %v33_v47, 16  ;;  %v550_v33 = vor.u32 %v6815_v45, %v6810_v40  ;;  %v8535_v38 = vld [vmem:[#allocation68_spill] sm:$0xff] }
  0x6a   :  { %v528_v7 = vsel %vm6935_vm4, %v523_v48, %v527_v44  ;;  %v553_v60 = vshll.u32 %v35_v52, 16  ;;  %v2934_v10 = vsel %vm6935_vm4, %v2929_v11, %v2933_v58  ;;  %v2947_v43 = vrot.slane %v2945_v5, 5  ;;  %v43_v52 = vld [vmem:[%s8454_s0 + $0x6c] sm:$0x1]  ;;  %v5256_v58 = vld [vmem:[%s8454_s0 + $0x264] sm:$0x1] }
  0x6b   :  { %v5069_v8 = vcombine.low %v514_v50, %v528_v7  ;;  %v537_v15 = vrot.slane %v536_v6, 4  ;;  %v541_v4 = vrot.slane %v539_v19, 5  ;;  %v551_v63 = vrot.slane %v550_v33, 4  ;;  %v8536_v50 = vld [vmem:[#allocation69_spill] sm:$0xff]  ;;  %v8537_v5 = vld [vmem:[#allocation70_spill] sm:$0xff]  ;;  %v8538_v6 = vld [vmem:[#allocation71_spill] sm:$0xff] }
  0x6c   :  { %v555_v37 = vrot.slane %v553_v60, 5  ;;  %v2956_v45 = vor.u32 %v6565_v22, %v6560_v12  ;;  %v2948_v40 = vsel %vm6935_vm4, %v2943_v59, %v2947_v43  ;;  %v2959_v20 = vshll.u32 %v5248_v21, 16  ;;  %v5258_v19 = vld [vmem:[%s8454_s0 + $0x26c] sm:$0x1] }
  0x6d   :  { %5761 = vmatmul.mubr.msk.bf16.gmra.mrb[4].mxu1 %vm124_vm1, %v5069_v8  ;;  %v2970_v46 = vor.u32 %v6572_v28, %v6567_v23  ;;  %v2973_v1 = vshll.u32 %v5250_v51, 16  ;;  %v5333_v0 = vcombine.low %v2934_v10, %v2948_v40  ;;  %v542_v12 = vsel %vm6935_vm4, %v537_v15, %v541_v4  ;;  %v5252_v23 = vld [vmem:[%s8454_s0 + $0x254] sm:$0x1]  ;;  %v8539_v43 = vld [vmem:[#allocation32_spill] sm:$0xff] }
  0x6e   :  { %v556_v22 = vsel %vm6935_vm4, %v551_v63, %v555_v37  ;;  %v2957_v36 = vrot.slane %v2956_v45, 4  ;;  %v2961_v31 = vrot.slane %v2959_v20, 5  ;;  %v564_v34 = vor.u32 %v6838_v14, %v6836_v49  ;;  %v8540_v15 = vld [vmem:[#allocation33_spill] sm:$0xff]  ;;  %v8541_v20 = vld [vmem:[#allocation34_spill] sm:$0xff] }
  0x6f   :  { %v5070_v28 = vcombine.low %v542_v12, %v556_v22  ;;  %v2971_v35 = vrot.slane %v2970_v46, 4  ;;  %v2975_v18 = vrot.slane %v2973_v1, 5  ;;  %5905 = vmatmul.mubr.msk.bf16.gmra.mrb[4].mxu0 %vm124_vm1, %v5333_v0  ;;  %v567_v61 = vshll.u32 %v37_v25, 16  ;;  %v45_v37 = vld [vmem:[%s8454_s0 + $0x74] sm:$0x1]  ;;  %v8542_v46 = vld [vmem:[#allocation35_spill] sm:$0xff] }
  0x70   :  { %v578_v54 = vor.u32 %v6845_v29, %v6843_v27  ;;  %v581_v13 = vshll.u32 %v39_v30, 16  ;;  %v2962_v39 = vsel %vm6935_vm4, %v2957_v36, %v2961_v31  ;;  %v2984_v14 = vor.u32 %v6595_v57, %v6593_v56  ;;  %v41_v29 = vld [vmem:[%s8454_s0 + $0x64] sm:$0x1]  ;;  %v47_v30 = vld [vmem:[%s8454_s0 + $0x7c] sm:$0x1]  ;;  %v8543_v31 = vld [vmem:[#allocation76_spill] sm:$0xff] }
  0x71   :  { %5764 = vmatprep.mubr.msk.bf16.mxu1 %vm124_vm1, %v5070_v28  ;;  %v2976_v62 = vsel %vm6935_vm4, %v2971_v35, %v2975_v18  ;;  %v2987_v49 = vshll.u32 %v5252_v23, 16  ;;  %v565_v26 = vrot.slane %v564_v34, 4  ;;  %v569_v55 = vrot.slane %v567_v61, 5  ;;  %v8544_v35 = vld [vmem:[#allocation77_spill] sm:$0xff] }
  0x72   :  { %v5334_v27 = vcombine.low %v2962_v39, %v2976_v62  ;;  %v579_v47 = vrot.slane %v578_v54, 4  ;;  %v583_v32 = vrot.slane %v581_v13, 5  ;;  %v2985_v48 = vrot.slane %v2984_v14, 4  ;;  %v8545_v13 = vld [vmem:[#allocation78_spill] sm:$0xff] }
  0x73   :  { %v2989_v24 = vrot.slane %v2987_v49, 5  ;;  %v2998_v17 = vor.u32 %v6602_v3, %v6600_v2  ;;  %v570_v56 = vsel %vm6935_vm4, %v565_v26, %v569_v55  ;;  %v3001_v57 = vshll.u32 %v5254_v42, 16  ;;  %v5260_v42 = vld [vmem:[%s8454_s0 + $0x274] sm:$0x1]  ;;  %v5262_v14 = vld [vmem:[%s8454_s0 + $0x27c] sm:$0x1] }
  0x74   :  { %5908 = vmatprep.mubr.msk.bf16.mxu0 %vm124_vm1, %v5334_v27  ;;  %v592_v44 = vor.u32 %v8536_v50, %v8535_v38  ;;  %v595_v11 = vshll.u32 %v41_v29, 16  ;;  %v584_v2 = vsel %vm6935_vm4, %v579_v47, %v583_v32  ;;  %v606_v7 = vor.u32 %v8538_v6, %v8537_v5  ;;  %v5001_v55 = vld [vmem:[%s8454_s0 + $0x84] sm:$0x1]  ;;  %v8548_v38 = vld [vmem:[#allocation42_spill] sm:$0xff]  ;;  %v5266_v6 = vld [vmem:[%s8454_s0 + $0x28c] sm:$0x1] }
  0x75   :  { %v2990_v3 = vsel %vm6935_vm4, %v2985_v48, %v2989_v24  ;;  %v2999_v59 = vrot.slane %v2998_v17, 4  ;;  %v5071_v33 = vcombine.low %v570_v56, %v584_v2  ;;  %v3003_v60 = vrot.slane %v3001_v57, 5  ;;  %v8546_v24 = vld [vmem:[#allocation40_spill] sm:$0xff]  ;;  %v8547_v17 = vld [vmem:[#allocation41_spill] sm:$0xff]  ;;  %v8549_v50 = vld [vmem:[#allocation43_spill] sm:$0xff] }
  0x76   :  { %v593_v21 = vrot.slane %v592_v44, 4  ;;  %v597_v51 = vrot.slane %v595_v11, 5  ;;  %v607_v8 = vrot.slane %v606_v7, 4  ;;  %v609_v10 = vshll.u32 %v43_v52, 16 }
  0x77   :  { %v3012_v4 = vor.u32 %v8540_v15, %v8539_v43  ;;  %v3015_v63 = vshll.u32 %v5256_v58, 16  ;;  %5765 = vmatmul.mubr.msk.bf16.gmra.mrb[8].mxu1 %vm124_vm1, %v5071_v33  ;;  %v3004_v45 = vsel %vm6935_vm4, %v2999_v59, %v3003_v60  ;;  %v3026_v1 = vor.u32 %v8542_v46, %v8541_v20  ;;  %v5264_v58 = vld [vmem:[%s8454_s0 + $0x284] sm:$0x1] }
  0x78   :  { %v598_v40 = vsel %vm6935_vm4, %v593_v21, %v597_v51  ;;  %v3029_v25 = vshll.u32 %v5258_v19, 16  ;;  %v5335_v0 = vcombine.low %v2990_v3, %v3004_v45  ;;  %v611_v12 = vrot.slane %v609_v10, 5  ;;  %v8551_v10 = vld [vmem:[#allocation45_spill] sm:$0xff]  ;;  %v8552_v45 = vld [vmem:[#allocation46_spill] sm:$0xff] }
  0x79   :  { %v3013_v22 = vrot.slane %v3012_v4, 4  ;;  %v3017_v36 = vrot.slane %v3015_v63, 5  ;;  %v3027_v23 = vrot.slane %v3026_v1, 4  ;;  %v620_v18 = vor.u32 %v8544_v35, %v8543_v31  ;;  %v5005_v4 = vld [vmem:[%s8454_s0 + $0x94] sm:$0x1] }
  0x7a   :  { %v3031_v28 = vrot.slane %v3029_v25, 5  ;;  %v623_v34 = vshll.u32 %v45_v37, 16  ;;  %5909 = vmatmul.mubr.msk.bf16.gmra.mrb[8].mxu0 %vm124_vm1, %v5335_v0  ;;  %v612_v61 = vsel %vm6935_vm4, %v607_v8, %v611_v12  ;;  %v634_v39 = vor.u32 %v8545_v13, %v6914_v9  ;;  %v5003_v9 = vld [vmem:[%s8454_s0 + $0x8c] sm:$0x1]  ;;  %v5007_v1 = vld [vmem:[%s8454_s0 + $0x9c] sm:$0x1] }
  0x7b   :  { %v3018_v54 = vsel %vm6935_vm4, %v3013_v22, %v3017_v36  ;;  %v637_v62 = vshll.u32 %v47_v30, 16  ;;  %v5072_v49 = vcombine.low %v598_v40, %v612_v61  ;;  %v621_v27 = vrot.slane %v620_v18, 4  ;;  %v8550_v8 = vld [vmem:[#allocation44_spill] sm:$0xff]  ;;  %v8553_v40 = vld [vmem:[#allocation47_spill] sm:$0xff]  ;;  %v5268_v25 = vld [vmem:[%s8454_s0 + $0x294] sm:$0x1] }
  0x7c   :  { %v3032_v29 = vsel %vm6935_vm4, %v3027_v23, %v3031_v28  ;;  %v625_v26 = vrot.slane %v623_v34, 5  ;;  %v635_v32 = vrot.slane %v634_v39, 4  ;;  %v3040_v56 = vor.u32 %v8547_v17, %v8546_v24  ;;  %v8554_v0 = vld [vmem:[#allocation8_spill] sm:$0xff]  ;;  %v8555_v22 = vld [vmem:[#allocation9_spill] sm:$0xff]  ;;  %v5270_v28 = vld [vmem:[%s8454_s0 + $0x29c] sm:$0x1] }
  0x7d   :  { %v5336_v47 = vcombine.low %v3018_v54, %v3032_v29  ;;  %v639_v48 = vrot.slane %v637_v62, 5  ;;  %5768 = vmatprep.mubr.msk.bf16.mxu1 %vm124_vm1, %v5072_v49  ;;  %v3043_v52 = vshll.u32 %v5260_v42, 16  ;;  %v3054_v44 = vor.u32 %v8549_v50, %v8548_v38  ;;  %v8556_v13 = vld [vmem:[#allocation48_spill] sm:$0xff]  ;;  %v8557_v39 = vld [vmem:[#allocation49_spill] sm:$0xff]  ;;  %v8558_v29 = vld [vmem:[#allocation50_spill] sm:$0xff] }
  0x7e   :  { %v626_v57 = vsel %vm6935_vm4, %v621_v27, %v625_v26  ;;  %v3057_v11 = vshll.u32 %v5262_v14, 16  ;;  %v3041_v3 = vrot.slane %v3040_v56, 4  ;;  %v817_v59 = vshll.u32 %v5001_v55, 16  ;;  %v8559_v27 = vld [vmem:[#allocation51_spill] sm:$0xff]  ;;  %v5011_v38 = vld [vmem:[%s8454_s0 + $0xac] sm:$0x1] }
  0x7f   :  { %5912 = vmatprep.mubr.msk.bf16.mxu0 %vm124_vm1, %v5336_v47  ;;  %v640_v2 = vsel %vm6935_vm4, %v635_v32, %v639_v48  ;;  %v831_v5 = vshll.u32 %v5003_v9, 16  ;;  %v3045_v19 = vrot.slane %v3043_v52, 5  ;;  %v3055_v33 = vrot.slane %v3054_v44, 4  ;;  %v5009_v24 = vld [vmem:[%s8454_s0 + $0xa4] sm:$0x1]  ;;  %v8560_v50 = vld [vmem:[#allocation10_spill] sm:$0xff] }
  0x80   :  { %v5073_v7 = vcombine.low %v626_v57, %v640_v2  ;;  %v3059_v60 = vrot.slane %v3057_v11, 5  ;;  %v819_v21 = vrot.slane %v817_v59, 5  ;;  %v3234_v43 = vor.u32 %v8551_v10, %v8550_v8  ;;  %v8561_v11 = vld [vmem:[#allocation11_spill] sm:$0xff]  ;;  %v8563_v59 = vld [vmem:[#allocation13_spill] sm:$0xff] }
  0x81   :  { %v833_v51 = vrot.slane %v831_v5, 5  ;;  %v3237_v15 = vshll.u32 %v5264_v58, 16  ;;  %v3046_v63 = vsel %vm6935_vm4, %v3041_v3, %v3045_v19  ;;  %v3248_v20 = vor.u32 %v8553_v40, %v8552_v45  ;;  %v8562_v3 = vld [vmem:[#allocation12_spill] sm:$0xff]  ;;  %v5272_v5 = vld [vmem:[%s8454_s0 + $0x2a4] sm:$0x1] }
  0x82   :  { %5769 = vmatmul.mubr.msk.bf16.gmra.mrb[12].mxu1 %vm124_vm1, %v5073_v7  ;;  %v3060_v37 = vsel %vm6935_vm4, %v3055_v33, %v3059_v60  ;;  %v3251_v46 = vshll.u32 %v5266_v6, 16  ;;  %v820_v12 = vsel %vm6935_vm4, %v8554_v0, %v819_v21  ;;  %v3235_v23 = vrot.slane %v3234_v43, 4  ;;  %v5274_v60 = vld [vmem:[%s8454_s0 + $0x2ac] sm:$0x1]  ;;  %v8565_v8 = vld [vmem:[#allocation15_spill] sm:$0xff] }
  0x83   :  { %v5337_v30 = vcombine.low %v3046_v63, %v3060_v37  ;;  %v834_v36 = vsel %vm6935_vm4, %v8555_v22, %v833_v51  ;;  %v3239_v35 = vrot.slane %v3237_v15, 5  ;;  %v3249_v18 = vrot.slane %v3248_v20, 4  ;;  %v8564_v51 = vld [vmem:[#allocation14_spill] sm:$0xff]  ;;  %v7253_v15 = vld [vmem:[%s8455_s1 + $0x14] sm:$0xf]  ;;  %v8566_v63 = vld [vmem:[#allocation52_spill] sm:$0xff] }
  0x84   :  { %v5083_v31 = vcombine.low %v820_v12, %v834_v36  ;;  %v3253_v34 = vrot.slane %v3251_v46, 5  ;;  %v845_v61 = vshll.u32 %v5005_v4, 16  ;;  %v859_v54 = vshll.u32 %v5007_v1, 16  ;;  %v8567_v37 = vld [vmem:[#allocation53_spill] sm:$0xff]  ;;  %v8568_v20 = vld [vmem:[#allocation54_spill] sm:$0xff]  ;;  %v8569_v46 = vld [vmem:[#allocation55_spill] sm:$0xff] }
  0x85   :  { %5913 = vmatmul.mubr.msk.bf16.gmra.mrb[12].mxu0 %vm124_vm1, %v5337_v30  ;;  %v3262_v62 = vor.u32 %v8557_v39, %v8556_v13  ;;  %v3265_v42 = vshll.u32 %v5268_v25, 16  ;;  %v3240_v14 = vsel %vm6935_vm4, %v3235_v23, %v3239_v35  ;;  %v3276_v26 = vor.u32 %v8559_v27, %v8558_v29  ;;  %v5013_v25 = vld [vmem:[%s8454_s0 + $0xb4] sm:$0x1]  ;;  %v5015_v36 = vld [vmem:[%s8454_s0 + $0xbc] sm:$0x1]  ;;  %v8570_v23 = vld [vmem:[#allocation16_spill] sm:$0xff] }
  0x86   :  { %5774 = vmatprep.mubr.msk.bf16.mxu1 %vm124_vm1, %v5083_v31  ;;  %v3254_v49 = vsel %vm6935_vm4, %v3249_v18, %v3253_v34  ;;  %v3279_v55 = vshll.u32 %v5270_v28, 16  ;;  %v847_v47 = vrot.slane %v845_v61, 5  ;;  %v861_v32 = vrot.slane %v859_v54, 5  ;;  %v7266_v30 = vld [vmem:[%s8455_s1 + $0x34] sm:$0xf]  ;;  %v8572_v29 = vld [vmem:[#allocation18_spill] sm:$0xff] }
  0x87   :  { %v5347_v9 = vcombine.low %v3240_v14, %v3254_v49  ;;  %v3263_v48 = vrot.slane %v3262_v62, 4  ;;  %v3267_v17 = vrot.slane %v3265_v42, 5  ;;  %v3277_v56 = vrot.slane %v3276_v26, 4  ;;  %v8571_v28 = vld [vmem:[#allocation17_spill] sm:$0xff]  ;;  %v8573_v27 = vld [vmem:[#allocation19_spill] sm:$0xff] }
  0x88   :  { %v3281_v57 = vrot.slane %v3279_v55, 5  ;;  %v1330_v52 = vsel %vm149_vm0, %v7032_v16, 0  ;;  %v848_v44 = vsel %vm6935_vm4, %v8560_v50, %v847_v47  ;;  %v862_v58 = vsel %vm6935_vm4, %v8561_v11, %v861_v32  ;;  %v5276_v54 = vld [vmem:[%s8454_s0 + $0x2b4] sm:$0x1]  ;;  %v8577_v11 = vld [vmem:[#allocation59_spill] sm:$0xff] }
  0x89   :  { %5918 = vmatprep.mubr.msk.bf16.mxu0 %vm124_vm1, %v5347_v9  ;;  %v3750_v2 = vsel %vm149_vm0, %v7047_v53, 0  ;;  %v870_v16 = vor.u32 %v8563_v59, %v8562_v3  ;;  %v5084_v6 = vcombine.low %v848_v44, %v862_v58  ;;  %v3268_v7 = vsel %vm6935_vm4, %v3263_v48, %v3267_v17  ;;  %v5278_v9 = vld [vmem:[%s8454_s0 + $0x2bc] sm:$0x1]  ;;  %v8574_v48 = vld [vmem:[#allocation56_spill] sm:$0xff] }
  0x8a   :  { %v3282_v19 = vsel %vm6935_vm4, %v3277_v56, %v3281_v57  ;;  %v873_v33 = vshll.u32 %v5009_v24, 16  ;;  %v884_v10 = vor.u32 %v8565_v8, %v8564_v51  ;;  %v887_v43 = vshll.u32 %v5011_v38, 16  ;;  %v8575_v24 = vld [vmem:[#allocation57_spill] sm:$0xff]  ;;  %v5017_v57 = vld [vmem:[%s8454_s0 + $0xc4] sm:$0x1]  ;;  %v8576_v44 = vld [vmem:[#allocation58_spill] sm:$0xff] }
  0x8b   :  { %v5348_v53 = vcombine.low %v3268_v7, %v3282_v19  ;;  %v871_v21 = vrot.slane %v870_v16, 4  ;;  %5775 = vmatmul.mubr.msk.bf16.vlgmr.msra.gmra.mrb[0].mxu1 %vm124_vm1, %v5084_v6  ;;  %v3290_v45 = vor.u32 %v8567_v37, %v8566_v63  ;;  %v3293_v40 = vshll.u32 %v5272_v5, 16  ;;  %v5019_v5 = vld [vmem:[%s8454_s0 + $0xcc] sm:$0x1] }
  0x8c   :  { %v875_v4 = vrot.slane %v873_v33, 5  ;;  %v3304_v1 = vor.u32 %v8569_v46, %v8568_v20  ;;  %5791 = vmatpush3.bf16.msra.mxu1 %v1330_v52  ;;  %v885_v0 = vrot.slane %v884_v10, 4  ;;  %v889_v12 = vrot.slane %v887_v43, 5  ;;  %v8578_v19 = vld [vmem:[#allocation20_spill] sm:$0xff]  ;;  %v8579_v33 = vld [vmem:[#allocation21_spill] sm:$0xff]  ;;  %v8580_v43 = vld [vmem:[#allocation22_spill] sm:$0xff] }
  0x8d   :  { %5919 = vmatmul.mubr.msk.bf16.vlgmr.msra.gmra.mrb[0].mxu0 %vm124_vm1, %v5348_v53  ;;  %v3307_v22 = vshll.u32 %v5274_v60, 16  ;;  %v898_v31 = vor.u32 %v8571_v28, %v8570_v23  ;;  %v3291_v18 = vrot.slane %v3290_v45, 4  ;;  %v3295_v34 = vrot.slane %v3293_v40, 5  ;;  %6251 = vmatprep.subr.msk.bf16.mxu1 %vm149_vm0, %v7253_v15  ;;  %v5282_v20 = vld [vmem:[%s8454_s0 + $0x2cc] sm:$0x1]  ;;  %v8585_v23 = vld [vmem:[#allocation63_spill] sm:$0xff] }
  0x8e   :  { %5935 = vmatpush3.bf16.msra.mxu0 %v3750_v2  ;;  %v876_v35 = vsel %vm6935_vm4, %v871_v21, %v875_v4  ;;  %v3305_v61 = vrot.slane %v3304_v1, 4  ;;  %v890_v13 = vsel %vm6935_vm4, %v885_v0, %v889_v12  ;;  %v901_v42 = vshll.u32 %v5013_v25, 16  ;;  %v5280_v21 = vld [vmem:[%s8454_s0 + $0x2c4] sm:$0x1]  ;;  %v8582_v46 = vld [vmem:[#allocation60_spill] sm:$0xff]  ;;  %v8583_v1 = vld [vmem:[#allocation61_spill] sm:$0xff] }
  0x8f   :  { %v3309_v39 = vrot.slane %v3307_v22, 5  ;;  %v899_v62 = vrot.slane %v898_v31, 4  ;;  %6259 = vmatprep.subr.msk.bf16.mxu0 %vm149_vm0, %v7266_v30  ;;  %v5085_v14 = vcombine.low %v876_v35, %v890_v13  ;;  %v3296_v49 = vsel %vm6935_vm4, %v3291_v18, %v3295_v34  ;;  %v8581_v4 = vld [vmem:[#allocation23_spill] sm:$0xff]  ;;  %v5021_v31 = vld [vmem:[%s8454_s0 + $0xd4] sm:$0x1] }
  0x90   :  { %v912_v26 = vor.u32 %v8573_v27, %v8572_v29  ;;  %v915_v55 = vshll.u32 %v5015_v36, 16  ;;  %v903_v32 = vrot.slane %v901_v42, 5  ;;  %v3318_v17 = vor.u32 %v8575_v24, %v8574_v48  ;;  %v8584_v36 = vld [vmem:[#allocation62_spill] sm:$0xff]  ;;  %v8586_v42 = vld [vmem:[#allocation24_spill] sm:$0xff] }
  0x91   :  { %v3310_v47 = vsel %vm6935_vm4, %v3305_v61, %v3309_v39  ;;  %v3321_v56 = vshll.u32 %v5276_v54, 16  ;;  %5778 = vmatprep.mubr.msk.bf16.mxu1 %vm124_vm1, %v5085_v14  ;;  %v3332_v58 = vor.u32 %v8577_v11, %v8576_v44  ;;  %v3335_v16 = vshll.u32 %v5278_v9, 16  ;;  %v5023_v35 = vld [vmem:[%s8454_s0 + $0xdc] sm:$0x1]  ;;  %v8587_v14 = vld [vmem:[#allocation25_spill] sm:$0xff]  ;;  %v8590_v44 = vld [vmem:[#allocation64_spill] sm:$0xff] }
  0x92   :  { %v5349_v52 = vcombine.low %v3296_v49, %v3310_v47  ;;  %v913_v38 = vrot.slane %v912_v26, 4  ;;  %v917_v50 = vrot.slane %v915_v55, 5  ;;  %v904_v2 = vsel %vm6935_vm4, %v899_v62, %v903_v32  ;;  %v8588_v26 = vld [vmem:[#allocation26_spill] sm:$0xff]  ;;  %v8589_v55 = vld [vmem:[#allocation27_spill] sm:$0xff]  ;;  %v5284_v32 = vld [vmem:[%s8454_s0 + $0x2d4] sm:$0x1] }
  0x93   :  { %v3319_v3 = vrot.slane %v3318_v17, 4  ;;  %v3323_v59 = vrot.slane %v3321_v56, 5  ;;  %v3333_v7 = vrot.slane %v3332_v58, 4  ;;  %v926_v60 = vor.u32 %v8579_v33, %v8578_v19  ;;  %v5286_v48 = vld [vmem:[%s8454_s0 + $0x2dc] sm:$0x1]  ;;  %v8591_v11 = vld [vmem:[#allocation65_spill] sm:$0xff] }
  0x94   :  { %5922 = vmatprep.mubr.msk.bf16.mxu0 %vm124_vm1, %v5349_v52  ;;  %v918_v6 = vsel %vm6935_vm4, %v913_v38, %v917_v50  ;;  %v929_v53 = vshll.u32 %v5017_v57, 16  ;;  %v3337_v10 = vrot.slane %v3335_v16, 5  ;;  %v940_v63 = vor.u32 %v8581_v4, %v8580_v43  ;;  %v8593_v16 = vld [vmem:[#allocation67_spill] sm:$0xff]  ;;  %v5027_v19 = vld [vmem:[%s8454_s0 + $0xec] sm:$0x1] }
  0x95   :  { %v5086_v51 = vcombine.low %v904_v2, %v918_v6  ;;  %v3324_v8 = vsel %vm6935_vm4, %v3319_v3, %v3323_v59  ;;  %v927_v37 = vrot.slane %v926_v60, 4  ;;  %v943_v40 = vshll.u32 %v5019_v5, 16  ;;  %v8592_v59 = vld [vmem:[#allocation66_spill] sm:$0xff] }
  0x96   :  { %v931_v45 = vrot.slane %v929_v53, 5  ;;  %v3346_v25 = vor.u32 %v8583_v1, %v8582_v46  ;;  %v3338_v0 = vsel %vm6935_vm4, %v3333_v7, %v3337_v10  ;;  %v941_v12 = vrot.slane %v940_v63, 4  ;;  %v5025_v7 = vld [vmem:[%s8454_s0 + $0xe4] sm:$0x1]  ;;  %v8594_v63 = vld [vmem:[#allocation28_spill] sm:$0xff] }
  0x97   :  { %5779 = vmatmul.mubr.msk.bf16.gmra.mrb[4].mxu1 %vm124_vm1, %v5086_v51  ;;  %v3349_v22 = vshll.u32 %v5280_v21, 16  ;;  %v3360_v28 = vor.u32 %v8585_v23, %v8584_v36  ;;  %v5350_v18 = vcombine.low %v3324_v8, %v3338_v0  ;;  %v945_v61 = vrot.slane %v943_v40, 5  ;;  %v5288_v51 = vld [vmem:[%s8454_s0 + $0x2e4] sm:$0x1]  ;;  %v8598_v36 = vld [vmem:[#allocation72_spill] sm:$0xff]  ;;  %v8599_v23 = vld [vmem:[#allocation73_spill] sm:$0xff] }
  0x98   :  { %v932_v34 = vsel %vm6935_vm4, %v927_v37, %v931_v45  ;;  %v3347_v54 = vrot.slane %v3346_v25, 4  ;;  %v3363_v62 = vshll.u32 %v5282_v20, 16  ;;  %v954_v49 = vor.u32 %v8587_v14, %v8586_v42  ;;  %v8595_v37 = vld [vmem:[#allocation29_spill] sm:$0xff]  ;;  %v8596_v20 = vld [vmem:[#allocation30_spill] sm:$0xff]  ;;  %v8597_v46 = vld [vmem:[#allocation31_spill] sm:$0xff] }
  0x99   :  { %v3351_v13 = vrot.slane %v3349_v22, 5  ;;  %v3361_v39 = vrot.slane %v3360_v28, 4  ;;  %5923 = vmatmul.mubr.msk.bf16.gmra.mrb[4].mxu0 %vm124_vm1, %v5350_v18  ;;  %v946_v29 = vsel %vm6935_vm4, %v941_v12, %v945_v61  ;;  %v957_v27 = vshll.u32 %v5021_v31, 16  ;;  %v5290_v22 = vld [vmem:[%s8454_s0 + $0x2ec] sm:$0x1]  ;;  %v8600_v42 = vld [vmem:[#allocation74_spill] sm:$0xff] }
  0x9a   :  { %v968_v9 = vor.u32 %v8589_v55, %v8588_v26  ;;  %v971_v47 = vshll.u32 %v5023_v35, 16  ;;  %v5087_v24 = vcombine.low %v932_v34, %v946_v29  ;;  %v3365_v56 = vrot.slane %v3363_v62, 5  ;;  %v5029_v35 = vld [vmem:[%s8454_s0 + $0xf4] sm:$0x1]  ;;  %v8601_v14 = vld [vmem:[#allocation75_spill] sm:$0xff]  ;;  %v8602_v55 = vld [vmem:[#allocation36_spill] sm:$0xff] }
  0x9b   :  { %v3352_v17 = vsel %vm6935_vm4, %v3347_v54, %v3351_v13  ;;  %v955_v57 = vrot.slane %v954_v49, 4  ;;  %v959_v52 = vrot.slane %v957_v27, 5  ;;  %v3374_v58 = vor.u32 %v8591_v11, %v8590_v44  ;;  %v5031_v26 = vld [vmem:[%s8454_s0 + $0xfc] sm:$0x1] }
  0x9c   :  { %v969_v38 = vrot.slane %v968_v9, 4  ;;  %v973_v50 = vrot.slane %v971_v47, 5  ;;  %5782 = vmatprep.mubr.msk.bf16.mxu1 %vm124_vm1, %v5087_v24  ;;  %v3366_v2 = vsel %vm6935_vm4, %v3361_v39, %v3365_v56  ;;  %v3377_v3 = vshll.u32 %v5284_v32, 16  ;;  %v8603_v9 = vld [vmem:[#allocation37_spill] sm:$0xff] }
  0x9d   :  { %v3388_v5 = vor.u32 %v8593_v16, %v8592_v59  ;;  %v3391_v6 = vshll.u32 %v5286_v48, 16  ;;  %v5351_v33 = vcombine.low %v3352_v17, %v3366_v2  ;;  %v960_v60 = vsel %vm6935_vm4, %v955_v57, %v959_v52  ;;  %v5292_v48 = vld [vmem:[%s8454_s0 + $0x2f4] sm:$0x1]  ;;  %v8604_v57 = vld [vmem:[#allocation38_spill] sm:$0xff]  ;;  %v8605_v52 = vld [vmem:[#allocation39_spill] sm:$0xff] }
  0x9e   :  { %v974_v53 = vsel %vm6935_vm4, %v969_v38, %v973_v50  ;;  %v3375_v21 = vrot.slane %v3374_v58, 4  ;;  %v3379_v10 = vrot.slane %v3377_v3, 5  ;;  %v982_v45 = vor.u32 %v8595_v37, %v8594_v63  ;;  %v5294_v50 = vld [vmem:[%s8454_s0 + $0x2fc] sm:$0x1]  ;;  %v5099_v3 = vld [vmem:[%s8454_s0 + $0x100] sm:$0xf] }
  0x9f   :  { %v5088_v8 = vcombine.low %v960_v60, %v974_v53  ;;  %v3389_v43 = vrot.slane %v3388_v5, 4  ;;  %v3393_v4 = vrot.slane %v3391_v6, 5  ;;  %5926 = vmatprep.mubr.msk.bf16.mxu0 %vm124_vm1, %v5351_v33  ;;  %v985_v40 = vshll.u32 %v5025_v7, 16  ;;  %v8606_v5 = vld [vmem:[#allocation79_spill] sm:$0xff]  ;;  %v8607_v6 = vld [vmem:[#allocation80_spill] sm:$0xff] }
  0xa0   :  { %v996_v1 = vor.u32 %v8597_v46, %v8596_v20  ;;  %v999_v25 = vshll.u32 %v5027_v19, 16  ;;  %v3380_v0 = vsel %vm6935_vm4, %v3375_v21, %v3379_v10  ;;  %v3402_v28 = vor.u32 %v8599_v23, %v8598_v36  ;;  %v5101_v33 = vld [vmem:[%s8454_s0 + $0x108] sm:$0xf]  ;;  %v8608_v21 = vld [vmem:[#allocation81_spill] sm:$0xff] }
  0xa1   :  { %5783 = vmatmul.mubr.msk.bf16.gmra.mrb[8].mxu1 %vm124_vm1, %v5088_v8  ;;  %v3394_v12 = vsel %vm6935_vm4, %v3389_v43, %v3393_v4  ;;  %v3405_v31 = vshll.u32 %v5288_v51, 16  ;;  %v983_v34 = vrot.slane %v982_v45, 4  ;;  %v987_v61 = vrot.slane %v985_v40, 5  ;;  %v8609_v51 = vld [vmem:[#allocation82_spill] sm:$0xff]  ;;  %v5363_v45 = vld [vmem:[%s8454_s0 + $0x300] sm:$0xf] }
  0xa2   :  { %v5352_v18 = vcombine.low %v3380_v0, %v3394_v12  ;;  %v997_v54 = vrot.slane %v996_v1, 4  ;;  %v1001_v13 = vrot.slane %v999_v25, 5  ;;  %v3403_v39 = vrot.slane %v3402_v28, 4  ;;  %v5365_v25 = vld [vmem:[%s8454_s0 + $0x308] sm:$0xf] }
  0xa3   :  { %v3407_v62 = vrot.slane %v3405_v31, 5  ;;  %v3416_v49 = vor.u32 %v8601_v14, %v8600_v42  ;;  %v988_v29 = vsel %vm6935_vm4, %v983_v34, %v987_v61  ;;  %v3419_v27 = vshll.u32 %v5290_v22, 16  ;;  %v5105_v34 = vld [vmem:[%s8454_s0 + $0x118] sm:$0xf] }
  0xa4   :  { %5927 = vmatmul.mubr.msk.bf16.gmra.mrb[8].mxu0 %vm124_vm1, %v5352_v18  ;;  %v1010_v47 = vor.u32 %v8603_v9, %v8602_v55  ;;  %v1013_v32 = vshll.u32 %v5029_v35, 16  ;;  %v1002_v24 = vsel %vm6935_vm4, %v997_v54, %v1001_v13  ;;  %v1024_v38 = vor.u32 %v8605_v52, %v8604_v57  ;;  %v5103_v18 = vld [vmem:[%s8454_s0 + $0x110] sm:$0xf] }
  0xa5   :  { %v3408_v17 = vsel %vm6935_vm4, %v3403_v39, %v3407_v62  ;;  %v3417_v56 = vrot.slane %v3416_v49, 4  ;;  %v5089_v44 = vcombine.low %v988_v29, %v1002_v24  ;;  %v3421_v11 = vrot.slane %v3419_v27, 5  ;;  %v5367_v29 = vld [vmem:[%s8454_s0 + $0x310] sm:$0xf] }
  0xa6   :  { %v1011_v58 = vrot.slane %v1010_v47, 4  ;;  %v1015_v2 = vrot.slane %v1013_v32, 5  ;;  %v1025_v59 = vrot.slane %v1024_v38, 4  ;;  %v1027_v16 = vshll.u32 %v5031_v26, 16  ;;  %v5369_v47 = vld [vmem:[%s8454_s0 + $0x318] sm:$0xf] }
  0xa7   :  { %v3430_v7 = vor.u32 %v8607_v6, %v8606_v5  ;;  %v3433_v19 = vshll.u32 %v5292_v48, 16  ;;  %5786 = vmatprep.mubr.msk.bf16.mxu1 %vm124_vm1, %v5089_v44  ;;  %v3422_v60 = vsel %vm6935_vm4, %v3417_v56, %v3421_v11  ;;  %v3444_v8 = vor.u32 %v8609_v51, %v8608_v21  ;;  %v5107_v56 = vld [vmem:[%s8454_s0 + $0x120] sm:$0xf]  ;;  %v5109_v44 = vld [vmem:[%s8454_s0 + $0x128] sm:$0xf] }
  0xa8   :  { %v1016_v53 = vsel %vm6935_vm4, %v1011_v58, %v1015_v2  ;;  %v3447_v10 = vshll.u32 %v5294_v50, 16  ;;  %v5353_v43 = vcombine.low %v3408_v17, %v3422_v60  ;;  %v1029_v4 = vrot.slane %v1027_v16, 5  ;;  %v5111_v51 = vld [vmem:[%s8454_s0 + $0x130] sm:$0xf] }
  0xa9   :  { %v3431_v63 = vrot.slane %v3430_v7, 4  ;;  %v3435_v37 = vrot.slane %v3433_v19, 5  ;;  %v3445_v40 = vrot.slane %v3444_v8, 4  ;;  %v5164_v46 = vcombine.low %v5099_v3, %v5101_v33  ;;  %v5373_v19 = vld [vmem:[%s8454_s0 + $0x328] sm:$0xf] }
  0xaa   :  { %v3449_v20 = vrot.slane %v3447_v10, 5  ;;  %v1628_v1 = vshrl.u32 %v5099_v3, 16  ;;  %5930 = vmatprep.mubr.msk.bf16.mxu0 %vm124_vm1, %v5353_v43  ;;  %v1030_v0 = vsel %vm6935_vm4, %v1025_v59, %v1029_v4  ;;  %v1631_v22 = vshll.u32 %v5099_v3, 16  ;;  %v5371_v59 = vld [vmem:[%s8454_s0 + $0x320] sm:$0xf] }
  0xab   :  { %v3436_v12 = vsel %vm6935_vm4, %v3431_v63, %v3435_v37  ;;  %v1642_v36 = vshrl.u32 %v5101_v33, 16  ;;  %v5090_v23 = vcombine.low %v1016_v53, %v1030_v0  ;;  %v1645_v35 = vshll.u32 %v5101_v33, 16  ;;  %v5113_v4 = vld [vmem:[%s8454_s0 + $0x138] sm:$0xf] }
  0xac   :  { %v3450_v28 = vsel %vm6935_vm4, %v3445_v40, %v3449_v20  ;;  %v7440_v31 = vrot.slane %v1628_v1, 4  ;;  %v7448_v54 = vrot.slane %v1631_v22, 5  ;;  %v5428_v39 = vcombine.low %v5363_v45, %v5365_v25  ;;  %v5375_v40 = vld [vmem:[%s8454_s0 + $0x330] sm:$0xf]  ;;  %v7517_v20 = vld [vmem:[%s8455_s1 + $0x18] sm:$0xf] }
  0xad   :  { %v5354_v61 = vcombine.low %v3436_v12, %v3450_v28  ;;  %v7450_v13 = vrot.slane %v1642_v36, 4  ;;  %5787 = vmatmul.mubr.msk.bf16.gmra.mrb[12].mxu1 %vm124_vm1, %v5090_v23  ;;  %v7453_v62 = vrot.slane %v1645_v35, 5  ;;  %v4048_v42 = vshrl.u32 %v5363_v45, 16  ;;  %v7527_v12 = vld [vmem:[%s8455_s1 + $0x38] sm:$0xf] }
  0xae   :  { %v4051_v14 = vshll.u32 %v5363_v45, 16  ;;  %v4062_v49 = vshrl.u32 %v5365_v25, 16  ;;  %5792 = vmatprep.mubr.msk.bf16.mxu1 %vm124_vm1, %v5164_v46  ;;  %v4065_v27 = vshll.u32 %v5365_v25, 16  ;;  %v5165_v26 = vcombine.low %v5103_v18, %v5105_v34  ;;  %v5377_v35 = vld [vmem:[%s8454_s0 + $0x338] sm:$0xf] }
  0xaf   :  { %5931 = vmatmul.mubr.msk.bf16.gmra.mrb[12].mxu0 %vm124_vm1, %v5354_v61  ;;  %v1656_v55 = vshrl.u32 %v5103_v18, 16  ;;  %v1659_v9 = vshll.u32 %v5103_v18, 16  ;;  %v7464_v32 = vrot.slane %v4048_v42, 4  ;;  %v1670_v17 = vshrl.u32 %v5105_v34, 16  ;;  %v5115_v42 = vld [vmem:[%s8454_s0 + $0x140] sm:$0xf] }
  0xb0   :  { %5936 = vmatprep.mubr.msk.bf16.mxu0 %vm124_vm1, %v5428_v39  ;;  %v7466_v48 = vrot.slane %v4051_v14, 5  ;;  %v7468_v24 = vrot.slane %v4062_v49, 4  ;;  %v7473_v57 = vrot.slane %v4065_v27, 5  ;;  %v1673_v50 = vshll.u32 %v5105_v34, 16 }
  0xb1   :  { %v7475_v52 = vrot.slane %v1656_v55, 4  ;;  %v7477_v38 = vrot.slane %v1659_v9, 5  ;;  %v7482_v11 = vrot.slane %v1670_v17, 4  ;;  %v5429_v58 = vcombine.low %v5367_v29, %v5369_v47 }
  0xb2   :  { %v4076_v2 = vshrl.u32 %v5367_v29, 16  ;;  %v4079_v3 = vshll.u32 %v5367_v29, 16  ;;  %v7487_v16 = vrot.slane %v1673_v50, 5  ;;  %v4090_v5 = vshrl.u32 %v5369_v47, 16 }
  0xb3   :  { %v4093_v6 = vshll.u32 %v5369_v47, 16  ;;  %v1512_v7 = vsel %vm149_vm0, %v7253_v15, 0  ;;  %v3932_v53 = vsel %vm149_vm0, %v7266_v30, 0  ;;  %v5166_v21 = vcombine.low %v5107_v56, %v5109_v44 }
  0xb4   :  { %v7494_v33 = vrot.slane %v4076_v2, 4  ;;  %v7496_v60 = vrot.slane %v4079_v3, 5  ;;  %v7503_v8 = vrot.slane %v4090_v5, 4  ;;  %v1684_v15 = vshrl.u32 %v5107_v56, 16  ;;  %v5381_v3 = vld [vmem:[%s8454_s0 + $0x348] sm:$0xf] }
  0xb5   :  { %v7505_v10 = vrot.slane %v4093_v6, 5  ;;  %v1687_v43 = vshll.u32 %v5107_v56, 16  ;;  %5793 = vmatmul.mubr.msk.bf16.vlgmr.msra.gmra.mrb[0].mxu1 %vm124_vm1, %v5165_v26  ;;  %v1698_v63 = vshrl.u32 %v5109_v44, 16  ;;  %v1701_v37 = vshll.u32 %v5109_v44, 16  ;;  %v5117_v26 = vld [vmem:[%s8454_s0 + $0x148] sm:$0xf] }
  0xb6   :  { %v5430_v30 = vcombine.low %v5371_v59, %v5373_v19  ;;  %v4104_v45 = vshrl.u32 %v5371_v59, 16  ;;  %5809 = vmatpush3.bf16.msra.mxu1 %v1512_v7  ;;  %v7520_v46 = vrot.slane %v1684_v15, 4  ;;  %v4107_v25 = vshll.u32 %v5371_v59, 16  ;;  %5796 = vmatprep.mubr.msk.bf16.mxu1 %vm124_vm1, %v5166_v21  ;;  %v5379_v56 = vld [vmem:[%s8454_s0 + $0x340] sm:$0xf] }
  0xb7   :  { %5937 = vmatmul.mubr.msk.bf16.vlgmr.msra.gmra.mrb[0].mxu0 %vm124_vm1, %v5429_v58  ;;  %v7522_v1 = vrot.slane %v1687_v43, 5  ;;  %v4118_v0 = vshrl.u32 %v5373_v19, 16  ;;  %v7530_v22 = vrot.slane %v1698_v63, 4  ;;  %v7532_v36 = vrot.slane %v1701_v37, 5  ;;  %6252 = vmatprep.subr.msk.bf16.mxu1 %vm149_vm0, %v7517_v20  ;;  %v5119_v15 = vld [vmem:[%s8454_s0 + $0x150] sm:$0xf] }
  0xb8   :  { %5953 = vmatpush3.bf16.msra.mxu0 %v3932_v53  ;;  %v7534_v23 = vrot.slane %v4104_v45, 4  ;;  %v4121_v28 = vshll.u32 %v5373_v19, 16  ;;  %5940 = vmatprep.mubr.msk.bf16.mxu0 %vm124_vm1, %v5430_v30  ;;  %v7540_v18 = vrot.slane %v4107_v25, 5  ;;  %v5167_v61 = vcombine.low %v5111_v51, %v5113_v4  ;;  %v5121_v30 = vld [vmem:[%s8454_s0 + $0x158] sm:$0xf] }
  0xb9   :  { %v7542_v34 = vrot.slane %v4118_v0, 4  ;;  %v1712_v39 = vshrl.u32 %v5111_v51, 16  ;;  %v1715_v49 = vshll.u32 %v5111_v51, 16  ;;  %v1726_v29 = vshrl.u32 %v5113_v4, 16  ;;  %6260 = vmatprep.subr.msk.bf16.mxu0 %vm149_vm0, %v7527_v12 }
  0xba   :  { %v7549_v14 = vrot.slane %v4121_v28, 5  ;;  %v1729_v27 = vshll.u32 %v5113_v4, 16  ;;  %v5431_v9 = vcombine.low %v5375_v40, %v5377_v35  ;;  %v4132_v47 = vshrl.u32 %v5375_v40, 16  ;;  %v5383_v28 = vld [vmem:[%s8454_s0 + $0x350] sm:$0xf] }
  0xbb   :  { %v7556_v55 = vrot.slane %v1712_v39, 4  ;;  %v4135_v17 = vshll.u32 %v5375_v40, 16  ;;  %v7561_v50 = vrot.slane %v1715_v49, 5  ;;  %v7563_v44 = vrot.slane %v1726_v29, 4  ;;  %v5385_v49 = vld [vmem:[%s8454_s0 + $0x358] sm:$0xf] }
  0xbc   :  { %v7565_v58 = vrot.slane %v1729_v27, 5  ;;  %v4146_v2 = vshrl.u32 %v5377_v35, 16  ;;  %v7570_v59 = vrot.slane %v4132_v47, 4  ;;  %v4149_v6 = vshll.u32 %v5377_v35, 16  ;;  %v5123_v47 = vld [vmem:[%s8454_s0 + $0x160] sm:$0xf] }
  0xbd   :  { %v7572_v5 = vrot.slane %v4135_v17, 5  ;;  %v5168_v7 = vcombine.low %v5115_v42, %v5117_v26  ;;  %5797 = vmatmul.mubr.msk.bf16.gmra.mrb[4].mxu1 %vm124_vm1, %v5167_v61  ;;  %v1740_v53 = vshrl.u32 %v5115_v42, 16  ;;  %v1743_v21 = vshll.u32 %v5115_v42, 16 }
  0xbe   :  { %v7575_v19 = vrot.slane %v4146_v2, 4  ;;  %v1754_v51 = vshrl.u32 %v5117_v26, 16  ;;  %v7581_v43 = vrot.slane %v4149_v6, 5  ;;  %v1757_v4 = vshll.u32 %v5117_v26, 16 }
  0xbf   :  { %5941 = vmatmul.mubr.msk.bf16.gmra.mrb[4].mxu0 %vm124_vm1, %v5431_v9  ;;  %5800 = vmatprep.mubr.msk.bf16.mxu1 %vm124_vm1, %v5168_v7  ;;  %v5432_v63 = vcombine.low %v5379_v56, %v5381_v3  ;;  %v4160_v37 = vshrl.u32 %v5379_v56, 16  ;;  %v7587_v45 = vrot.slane %v1740_v53, 4  ;;  %v7589_v40 = vrot.slane %v1743_v21, 5 }
  0xc0   :  { %v7591_v25 = vrot.slane %v1754_v51, 4  ;;  %v4163_v0 = vshll.u32 %v5379_v56, 16  ;;  %v7596_v35 = vrot.slane %v1757_v4, 5  ;;  %v4174_v39 = vshrl.u32 %v5381_v3, 16 }
  0xc1   :  { %5944 = vmatprep.mubr.msk.bf16.mxu0 %vm124_vm1, %v5432_v63  ;;  %v7599_v61 = vrot.slane %v4160_v37, 4  ;;  %v4177_v42 = vshll.u32 %v5381_v3, 16  ;;  %v5169_v27 = vcombine.low %v5119_v15, %v5121_v30  ;;  %v1768_v26 = vshrl.u32 %v5119_v15, 16  ;;  %v5125_v3 = vld [vmem:[%s8454_s0 + $0x168] sm:$0xf] }
  0xc2   :  { %v7604_v29 = vrot.slane %v4163_v0, 5  ;;  %v1771_v9 = vshll.u32 %v5119_v15, 16  ;;  %v7609_v17 = vrot.slane %v4174_v39, 4  ;;  %v1782_v2 = vshrl.u32 %v5121_v30, 16  ;;  %v5387_v15 = vld [vmem:[%s8454_s0 + $0x360] sm:$0xf] }
  0xc3   :  { %v7611_v56 = vrot.slane %v4177_v42, 5  ;;  %v1785_v6 = vshll.u32 %v5121_v30, 16  ;;  %v7616_v7 = vrot.slane %v1768_v26, 4  ;;  %v5433_v21 = vcombine.low %v5383_v28, %v5385_v49  ;;  %v5389_v0 = vld [vmem:[%s8454_s0 + $0x368] sm:$0xf] }
  0xc4   :  { %v7618_v53 = vrot.slane %v1771_v9, 5  ;;  %v4188_v51 = vshrl.u32 %v5383_v28, 16  ;;  %v7623_v4 = vrot.slane %v1782_v2, 4  ;;  %v4191_v37 = vshll.u32 %v5383_v28, 16  ;;  %v5127_v2 = vld [vmem:[%s8454_s0 + $0x170] sm:$0xf] }
  0xc5   :  { %8610 = vst [vmem:[#allocation68_spill] sm:$0xff] %v7616_v7  ;;  %v7625_v63 = vrot.slane %v1785_v6, 5  ;;  %v4202_v30 = vshrl.u32 %v5385_v49, 16  ;;  %5801 = vmatmul.mubr.msk.bf16.gmra.mrb[8].mxu1 %vm124_vm1, %v5169_v27  ;;  %v4205_v42 = vshll.u32 %v5385_v49, 16  ;;  %v5170_v26 = vcombine.low %v5123_v47, %v5125_v3  ;;  %v5129_v27 = vld [vmem:[%s8454_s0 + $0x178] sm:$0xf] }
  0xc6   :  { %8611 = vst [vmem:[#allocation69_spill] sm:$0xff] %v7618_v53  ;;  %8612 = vst [vmem:[#allocation70_spill] sm:$0xff] %v7623_v4  ;;  %v7631_v39 = vrot.slane %v4188_v51, 4  ;;  %v1796_v9 = vshrl.u32 %v5123_v47, 16  ;;  %v7637_v6 = vrot.slane %v4191_v37, 5  ;;  %v1810_v4 = vshrl.u32 %v5125_v3, 16 }
  0xc7   :  { %8613 = vst [vmem:[#allocation71_spill] sm:$0xff] %v7625_v63  ;;  %5945 = vmatmul.mubr.msk.bf16.gmra.mrb[8].mxu0 %vm124_vm1, %v5433_v21  ;;  %v7639_v28 = vrot.slane %v4202_v30, 4  ;;  %v1799_v63 = vshll.u32 %v5123_v47, 16  ;;  %v7644_v51 = vrot.slane %v4205_v42, 5  ;;  %5804 = vmatprep.mubr.msk.bf16.mxu1 %vm124_vm1, %v5170_v26  ;;  %v5434_v53 = vcombine.low %v5387_v15, %v5389_v0  ;;  %v5391_v47 = vld [vmem:[%s8454_s0 + $0x370] sm:$0xf] }
  0xc8   :  { %8614 = vst [vmem:[#allocation32_spill] sm:$0xff] %v7631_v39  ;;  %8615 = vst [vmem:[#allocation33_spill] sm:$0xff] %v7637_v6  ;;  %v7647_v49 = vrot.slane %v1796_v9, 4  ;;  %v1813_v39 = vshll.u32 %v5125_v3, 16  ;;  %v7651_v21 = vrot.slane %v1810_v4, 4  ;;  %v4216_v37 = vshrl.u32 %v5387_v15, 16 }
  0xc9   :  { %8616 = vst [vmem:[#allocation34_spill] sm:$0xff] %v7639_v28  ;;  %8617 = vst [vmem:[#allocation35_spill] sm:$0xff] %v7644_v51  ;;  %v7649_v7 = vrot.slane %v1799_v63, 5  ;;  %v4219_v30 = vshll.u32 %v5387_v15, 16  ;;  %5948 = vmatprep.mubr.msk.bf16.mxu0 %vm124_vm1, %v5434_v53  ;;  %v4230_v42 = vshrl.u32 %v5389_v0, 16  ;;  %v4233_v26 = vshll.u32 %v5389_v0, 16 }
  0xca   :  { %8618 = vst [vmem:[#allocation76_spill] sm:$0xff] %v7647_v49  ;;  %8620 = vst [vmem:[#allocation78_spill] sm:$0xff] %v7651_v21  ;;  %v7656_v28 = vrot.slane %v1813_v39, 5  ;;  %v5171_v9 = vcombine.low %v5127_v2, %v5129_v27  ;;  %v5393_v3 = vld [vmem:[%s8454_s0 + $0x378] sm:$0xf]  ;;  %v7662_v63 = vrot.slane %v4216_v37, 4 }
  0xcb   :  { %8619 = vst [vmem:[#allocation77_spill] sm:$0xff] %v7649_v7  ;;  %v7664_v4 = vrot.slane %v4219_v30, 5  ;;  %v1824_v15 = vshrl.u32 %v5127_v2, 16  ;;  %v1827_v21 = vshll.u32 %v5127_v2, 16  ;;  %v5131_v39 = vld [vmem:[%s8454_s0 + $0x180] sm:$0xf] }
  0xcc   :  { %8621 = vst [vmem:[#allocation40_spill] sm:$0xff] %v7656_v28  ;;  %8622 = vst [vmem:[#allocation41_spill] sm:$0xff] %v7662_v63  ;;  %v7669_v28 = vrot.slane %v4230_v42, 4  ;;  %v7671_v53 = vrot.slane %v4233_v26, 5  ;;  %v1838_v0 = vshrl.u32 %v5129_v27, 16  ;;  %v1841_v7 = vshll.u32 %v5129_v27, 16 }
  0xcd   :  { %8623 = vst [vmem:[#allocation42_spill] sm:$0xff] %v7664_v4  ;;  %v5133_v49 = vld [vmem:[%s8454_s0 + $0x188] sm:$0xf]  ;;  %v7676_v37 = vrot.slane %v1824_v15, 4  ;;  %v7678_v30 = vrot.slane %v1827_v21, 5  ;;  %v5435_v4 = vcombine.low %v5391_v47, %v5393_v3  ;;  %v4244_v2 = vshrl.u32 %v5391_v47, 16  ;;  %5805 = vmatmul.mubr.msk.bf16.gmra.mrb[12].mxu1 %vm124_vm1, %v5171_v9 }
  0xce   :  { %8624 = vst [vmem:[#allocation43_spill] sm:$0xff] %v7669_v28  ;;  %8625 = vst [vmem:[#allocation44_spill] sm:$0xff] %v7671_v53  ;;  %v5395_v63 = vld [vmem:[%s8454_s0 + $0x380] sm:$0xf]  ;;  %v7684_v42 = vrot.slane %v1838_v0, 4  ;;  %v7686_v26 = vrot.slane %v1841_v7, 5 }
  0xcf   :  { %8626 = vst [vmem:[#allocation45_spill] sm:$0xff] %v7676_v37  ;;  %8627 = vst [vmem:[#allocation46_spill] sm:$0xff] %v7678_v30  ;;  %v4247_v27 = vshll.u32 %v5391_v47, 16  ;;  %v4258_v53 = vshrl.u32 %v5393_v3, 16  ;;  %v5397_v15 = vld [vmem:[%s8454_s0 + $0x388] sm:$0xf]  ;;  %5949 = vmatmul.mubr.msk.bf16.gmra.mrb[12].mxu0 %vm124_vm1, %v5435_v4  ;;  %v5181_v37 = vcombine.low %v5131_v39, %v5133_v49 }
  0xd0   :  { %8628 = vst [vmem:[#allocation47_spill] sm:$0xff] %v7684_v42  ;;  %8629 = vst [vmem:[#allocation8_spill] sm:$0xff] %v7686_v26  ;;  %v7692_v21 = vrot.slane %v4244_v2, 4  ;;  %v4261_v30 = vshll.u32 %v5393_v3, 16  ;;  %v2018_v28 = vshrl.u32 %v5131_v39, 16  ;;  %v2021_v47 = vshll.u32 %v5131_v39, 16 }
  0xd1   :  { %v5135_v9 = vld [vmem:[%s8454_s0 + $0x190] sm:$0xf]  ;;  %v7697_v0 = vrot.slane %v4247_v27, 5  ;;  %v7699_v7 = vrot.slane %v4258_v53, 4  ;;  %v2032_v26 = vshrl.u32 %v5133_v49, 16  ;;  %5810 = vmatprep.mubr.msk.bf16.mxu1 %vm124_vm1, %v5181_v37  ;;  %v2035_v2 = vshll.u32 %v5133_v49, 16 }
  0xd2   :  { %8630 = vst [vmem:[#allocation9_spill] sm:$0xff] %v7692_v21  ;;  %v5137_v42 = vld [vmem:[%s8454_s0 + $0x198] sm:$0xf]  ;;  %v7704_v4 = vrot.slane %v4261_v30, 5  ;;  %v7707_v3 = vrot.slane %v2018_v28, 4  ;;  %v5445_v21 = vcombine.low %v5395_v63, %v5397_v15  ;;  %v7709_v51 = vrot.slane %v2021_v47, 5 }
  0xd3   :  { %8631 = vst [vmem:[#allocation48_spill] sm:$0xff] %v7697_v0  ;;  %8632 = vst [vmem:[#allocation49_spill] sm:$0xff] %v7699_v7  ;;  %v7711_v27 = vrot.slane %v2032_v26, 4  ;;  %v4438_v53 = vshrl.u32 %v5395_v63, 16  ;;  %v4441_v7 = vshll.u32 %v5395_v63, 16  ;;  %v7716_v0 = vrot.slane %v2035_v2, 5 }
  0xd4   :  { %8633 = vst [vmem:[#allocation50_spill] sm:$0xff] %v7704_v4  ;;  %8634 = vst [vmem:[#allocation51_spill] sm:$0xff] %v7707_v3  ;;  %v5399_v39 = vld [vmem:[%s8454_s0 + $0x390] sm:$0xf]  ;;  %5954 = vmatprep.mubr.msk.bf16.mxu0 %vm124_vm1, %v5445_v21  ;;  %v4452_v30 = vshrl.u32 %v5397_v15, 16  ;;  %v4455_v37 = vshll.u32 %v5397_v15, 16  ;;  %v5182_v28 = vcombine.low %v5135_v9, %v5137_v42 }
  0xd5   :  { %8635 = vst [vmem:[#allocation10_spill] sm:$0xff] %v7709_v51  ;;  %8636 = vst [vmem:[#allocation11_spill] sm:$0xff] %v7711_v27  ;;  %v5401_v49 = vld [vmem:[%s8454_s0 + $0x398] sm:$0xf]  ;;  %v7722_v47 = vrot.slane %v4438_v53, 4  ;;  %v7724_v26 = vrot.slane %v4441_v7, 5 }
  0xd6   :  { %8637 = vst [vmem:[#allocation12_spill] sm:$0xff] %v7716_v0  ;;  %v2046_v63 = vshrl.u32 %v5135_v9, 16  ;;  %v2049_v27 = vshll.u32 %v5135_v9, 16  ;;  %v5139_v2 = vld [vmem:[%s8454_s0 + $0x1a0] sm:$0xf]  ;;  %v7729_v0 = vrot.slane %v4452_v30, 4  ;;  %5811 = vmatmul.mubr.msk.bf16.vlgmr.msra.gmra.mrb[0].mxu1 %vm124_vm1, %v5182_v28  ;;  %v5446_v9 = vcombine.low %v5399_v39, %v5401_v49 }
  0xd7   :  { %8638 = vst [vmem:[#allocation13_spill] sm:$0xff] %v7722_v47  ;;  %8639 = vst [vmem:[#allocation14_spill] sm:$0xff] %v7724_v26  ;;  %v7731_v21 = vrot.slane %v4455_v37, 5  ;;  %v2060_v15 = vshrl.u32 %v5137_v42, 16  ;;  %v2063_v51 = vshll.u32 %v5137_v42, 16  ;;  %v4466_v26 = vshrl.u32 %v5399_v39, 16 }
  0xd8   :  { %8640 = vst [vmem:[#allocation15_spill] sm:$0xff] %v7729_v0  ;;  %v5141_v3 = vld [vmem:[%s8454_s0 + $0x1a8] sm:$0xf]  ;;  %v7737_v7 = vrot.slane %v2046_v63, 4  ;;  %v7739_v53 = vrot.slane %v2049_v27, 5  ;;  %v4469_v28 = vshll.u32 %v5399_v39, 16  ;;  %5955 = vmatmul.mubr.msk.bf16.vlgmr.msra.gmra.mrb[0].mxu0 %vm124_vm1, %v5446_v9 }
  0xd9   :  { %8641 = vst [vmem:[#allocation52_spill] sm:$0xff] %v7731_v21  ;;  %v5403_v30 = vld [vmem:[%s8454_s0 + $0x3a0] sm:$0xf]  ;;  %v7747_v42 = vld [vmem:[%s8455_s1 + $0x1c] sm:$0xf]  ;;  %v7749_v37 = vrot.slane %v2060_v15, 4  ;;  %v5183_v9 = vcombine.low %v5139_v2, %v5141_v3 }
  0xda   :  { %8642 = vst [vmem:[#allocation53_spill] sm:$0xff] %v7737_v7  ;;  %8643 = vst [vmem:[#allocation54_spill] sm:$0xff] %v7739_v53  ;;  %v7751_v21 = vrot.slane %v2063_v51, 5  ;;  %v4480_v63 = vshrl.u32 %v5401_v49, 16  ;;  %v7756_v27 = vld [vmem:[%s8455_s1 + $0x3c] sm:$0xf] }
  0xdb   :  { %8644 = vst [vmem:[#allocation55_spill] sm:$0xff] %v7749_v37  ;;  %v7759_v53 = vrot.slane %v4466_v26, 4  ;;  %v4483_v7 = vshll.u32 %v5401_v49, 16  ;;  %v1902_v0 = vsel %vm149_vm0, %v7517_v20, 0  ;;  %v4322_v15 = vsel %vm149_vm0, %v7527_v12, 0  ;;  %5814 = vmatprep.mubr.msk.bf16.mxu1 %vm124_vm1, %v5183_v9 }
  0xdc   :  { %8645 = vst [vmem:[#allocation16_spill] sm:$0xff] %v7751_v21  ;;  %v5405_v51 = vld [vmem:[%s8454_s0 + $0x3a8] sm:$0xf]  ;;  %v7768_v39 = vrot.slane %v4469_v28, 5  ;;  %v7770_v21 = vrot.slane %v4480_v63, 4  ;;  %5827 = vmatpush3.bf16.msra.mxu1 %v1902_v0  ;;  %5971 = vmatpush3.bf16.msra.mxu0 %v4322_v15  ;;  %v2074_v26 = vshrl.u32 %v5139_v2, 16 }
  0xdd   :  { %8646 = vst [vmem:[#allocation17_spill] sm:$0xff] %v7759_v53  ;;  %v5143_v49 = vld [vmem:[%s8454_s0 + $0x1b0] sm:$0xf]  ;;  %v7775_v20 = vrot.slane %v4483_v7, 5  ;;  %v2077_v53 = vshll.u32 %v5139_v2, 16  ;;  %v2088_v12 = vshrl.u32 %v5141_v3, 16  ;;  %6253 = vmatprep.subr.msk.bf16.mxu1 %vm149_vm0, %v7747_v42  ;;  %6261 = vmatprep.subr.msk.bf16.mxu0 %vm149_vm0, %v7756_v27  ;;  %v5447_v63 = vcombine.low %v5403_v30, %v5405_v51 }
  0xde   :  { %8647 = vst [vmem:[#allocation18_spill] sm:$0xff] %v7768_v39  ;;  %8648 = vst [vmem:[#allocation19_spill] sm:$0xff] %v7770_v21  ;;  %v2091_v37 = vshll.u32 %v5141_v3, 16  ;;  %v5145_v28 = vld [vmem:[%s8454_s0 + $0x1b8] sm:$0xf]  ;;  %v7785_v0 = vrot.slane %v2074_v26, 4 }
  0xdf   :  { %8649 = vst [vmem:[#allocation56_spill] sm:$0xff] %v7775_v20  ;;  %v4494_v7 = vshrl.u32 %v5403_v30, 16  ;;  %v4497_v15 = vshll.u32 %v5403_v30, 16  ;;  %v5407_v3 = vld [vmem:[%s8454_s0 + $0x3b0] sm:$0xf]  ;;  %v7790_v2 = vrot.slane %v2077_v53, 5  ;;  %5958 = vmatprep.mubr.msk.bf16.mxu0 %vm124_vm1, %v5447_v63  ;;  %v5184_v47 = vcombine.low %v5143_v49, %v5145_v28 }
  0xe0   :  { %8650 = vst [vmem:[#allocation57_spill] sm:$0xff] %v7785_v0  ;;  %v7792_v20 = vrot.slane %v2088_v12, 4  ;;  %v7794_v21 = vrot.slane %v2091_v37, 5  ;;  %v4508_v39 = vshrl.u32 %v5405_v51, 16  ;;  %v5409_v9 = vld [vmem:[%s8454_s0 + $0x3b8] sm:$0xf] }
  0xe1   :  { %8651 = vst [vmem:[#allocation58_spill] sm:$0xff] %v7790_v2  ;;  %v7800_v26 = vrot.slane %v4494_v7, 4  ;;  %v7802_v30 = vrot.slane %v4497_v15, 5  ;;  %v4511_v0 = vshll.u32 %v5405_v51, 16  ;;  %v5147_v53 = vld [vmem:[%s8454_s0 + $0x1c0] sm:$0xf] }
  0xe2   :  { %8652 = vst [vmem:[#allocation59_spill] sm:$0xff] %v7792_v20  ;;  %8653 = vst [vmem:[#allocation20_spill] sm:$0xff] %v7794_v21  ;;  %v7807_v12 = vrot.slane %v4508_v39, 4  ;;  %v2102_v37 = vshrl.u32 %v5143_v49, 16  ;;  %v2105_v21 = vshll.u32 %v5143_v49, 16  ;;  %v2116_v20 = vshrl.u32 %v5145_v28, 16 }
  0xe3   :  { %8654 = vst [vmem:[#allocation21_spill] sm:$0xff] %v7800_v26  ;;  %8655 = vst [vmem:[#allocation22_spill] sm:$0xff] %v7802_v30 }
  0xe4   :  { %8656 = vst [vmem:[#allocation23_spill] sm:$0xff] %v7807_v12 }
  0xe5   :  { %10 = vsyncpa [#allocation5], 0  ;;  %v7809_v2 = vrot.slane %v4511_v0, 5  ;;  %5815 = vmatmul.mubr.msk.bf16.gmra.mrb[4].mxu1 %vm124_vm1, %v5184_v47  ;;  %v2119_v63 = vshll.u32 %v5145_v28, 16  ;;  %v5448_v7 = vcombine.low %v5407_v3, %v5409_v9  ;;  %v4522_v15 = vshrl.u32 %v5407_v3, 16 }
  0xe6   :  { %v5149_v51 = vld [vmem:[%s8454_s0 + $0x1c8] sm:$0xf]  ;;  %v7815_v30 = vrot.slane %v2102_v37, 4  ;;  %v7817_v26 = vrot.slane %v2105_v21, 5  ;;  %v7819_v39 = vrot.slane %v2116_v20, 4  ;;  %v4525_v49 = vshll.u32 %v5407_v3, 16 }
  0xe7   :  { %8657 = vst [vmem:[#allocation60_spill] sm:$0xff] %v7809_v2  ;;  %v5411_v0 = vld [vmem:[%s8454_s0 + $0x3c0] sm:$0xf]  ;;  %v7824_v2 = vrot.slane %v2119_v63, 5  ;;  %5959 = vmatmul.mubr.msk.bf16.gmra.mrb[4].mxu0 %vm124_vm1, %v5448_v7  ;;  %v7827_v47 = vrot.slane %v4522_v15, 4  ;;  %v4536_v28 = vshrl.u32 %v5409_v9, 16  ;;  %v5185_v20 = vcombine.low %v5147_v53, %v5149_v51 }
  0xe8   :  { %8658 = vst [vmem:[#allocation61_spill] sm:$0xff] %v7815_v30  ;;  %8659 = vst [vmem:[#allocation62_spill] sm:$0xff] %v7817_v26  ;;  %v4539_v12 = vshll.u32 %v5409_v9, 16  ;;  %v5413_v21 = vld [vmem:[%s8454_s0 + $0x3c8] sm:$0xf]  ;;  %v7832_v37 = vrot.slane %v4525_v49, 5 }
  0xe9   :  { %8660 = vst [vmem:[#allocation63_spill] sm:$0xff] %v7819_v39  ;;  %8661 = vst [vmem:[#allocation24_spill] sm:$0xff] %v7824_v2  ;;  %v2130_v3 = vshrl.u32 %v5147_v53, 16  ;;  %v2133_v39 = vshll.u32 %v5147_v53, 16  ;;  %v5151_v63 = vld [vmem:[%s8454_s0 + $0x1d0] sm:$0xf]  ;;  %5818 = vmatprep.mubr.msk.bf16.mxu1 %vm124_vm1, %v5185_v20  ;;  %v5449_v53 = vcombine.low %v5411_v0, %v5413_v21 }
  0xea   :  { %8662 = vst [vmem:[#allocation25_spill] sm:$0xff] %v7827_v47  ;;  %8663 = vst [vmem:[#allocation26_spill] sm:$0xff] %v7832_v37  ;;  %v7837_v2 = vrot.slane %v4536_v28, 4  ;;  %v7839_v7 = vrot.slane %v4539_v12, 5  ;;  %v2144_v15 = vshrl.u32 %v5149_v51, 16  ;;  %v2147_v47 = vshll.u32 %v5149_v51, 16 }
  0xeb   :  { %v5153_v9 = vld [vmem:[%s8454_s0 + $0x1d8] sm:$0xf]  ;;  %v7845_v49 = vrot.slane %v2130_v3, 4  ;;  %v7847_v37 = vrot.slane %v2133_v39, 5  ;;  %v4550_v26 = vshrl.u32 %v5411_v0, 16  ;;  %v4553_v51 = vshll.u32 %v5411_v0, 16  ;;  %5962 = vmatprep.mubr.msk.bf16.mxu0 %vm124_vm1, %v5449_v53 }
  0xec   :  { %8664 = vst [vmem:[#allocation27_spill] sm:$0xff] %v7837_v2  ;;  %8665 = vst [vmem:[#allocation64_spill] sm:$0xff] %v7839_v7  ;;  %v5415_v28 = vld [vmem:[%s8454_s0 + $0x3d0] sm:$0xf]  ;;  %v7852_v12 = vrot.slane %v2144_v15, 4  ;;  %v7854_v7 = vrot.slane %v2147_v47, 5 }
  0xed   :  { %8666 = vst [vmem:[#allocation65_spill] sm:$0xff] %v7845_v49  ;;  %8667 = vst [vmem:[#allocation66_spill] sm:$0xff] %v7847_v37  ;;  %v4564_v2 = vshrl.u32 %v5413_v21, 16  ;;  %v5417_v20 = vld [vmem:[%s8454_s0 + $0x3d8] sm:$0xf]  ;;  %v7860_v39 = vrot.slane %v4550_v26, 4  ;;  %v5186_v37 = vcombine.low %v5151_v63, %v5153_v9 }
  0xee   :  { %8668 = vst [vmem:[#allocation67_spill] sm:$0xff] %v7852_v12  ;;  %8669 = vst [vmem:[#allocation28_spill] sm:$0xff] %v7854_v7  ;;  %v4567_v3 = vshll.u32 %v5413_v21, 16  ;;  %v2158_v49 = vshrl.u32 %v5151_v63, 16  ;;  %v5155_v15 = vld [vmem:[%s8454_s0 + $0x1e0] sm:$0xf] }
  0xef   :  { %8670 = vst [vmem:[#allocation29_spill] sm:$0xff] %v7860_v39  ;;  %v7865_v12 = vrot.slane %v4553_v51, 5  ;;  %v7867_v47 = vrot.slane %v4564_v2, 4  ;;  %v2161_v0 = vshll.u32 %v5151_v63, 16  ;;  %v2172_v7 = vshrl.u32 %v5153_v9, 16  ;;  %5819 = vmatmul.mubr.msk.bf16.gmra.mrb[8].mxu1 %vm124_vm1, %v5186_v37 }
  0xf0   :  { %v5157_v30 = vld [vmem:[%s8454_s0 + $0x1e8] sm:$0xf]  ;;  %v7872_v53 = vrot.slane %v4567_v3, 5  ;;  %v7875_v26 = vrot.slane %v2158_v49, 4  ;;  %v2175_v21 = vshll.u32 %v5153_v9, 16  ;;  %v5450_v39 = vcombine.low %v5415_v28, %v5417_v20 }
  0xf1   :  { %8671 = vst [vmem:[#allocation30_spill] sm:$0xff] %v7865_v12  ;;  %8672 = vst [vmem:[#allocation31_spill] sm:$0xff] %v7867_v47  ;;  %v7877_v4 = vrot.slane %v2161_v0, 5  ;;  %v7879_v51 = vrot.slane %v2172_v7, 4  ;;  %v4578_v2 = vshrl.u32 %v5415_v28, 16  ;;  %v4581_v47 = vshll.u32 %v5415_v28, 16 }
  0xf2   :  { %8673 = vst [vmem:[#allocation72_spill] sm:$0xff] %v7872_v53  ;;  %8674 = vst [vmem:[#allocation73_spill] sm:$0xff] %v7875_v26  ;;  %v5419_v63 = vld [vmem:[%s8454_s0 + $0x3e0] sm:$0xf]  ;;  %v7884_v12 = vrot.slane %v2175_v21, 5  ;;  %5963 = vmatmul.mubr.msk.bf16.gmra.mrb[8].mxu0 %vm124_vm1, %v5450_v39  ;;  %v4592_v3 = vshrl.u32 %v5417_v20, 16  ;;  %v5187_v49 = vcombine.low %v5155_v15, %v5157_v30 }
  0xf3   :  { %8675 = vst [vmem:[#allocation74_spill] sm:$0xff] %v7877_v4  ;;  %8676 = vst [vmem:[#allocation75_spill] sm:$0xff] %v7879_v51  ;;  %v4595_v37 = vshll.u32 %v5417_v20, 16  ;;  %v5421_v9 = vld [vmem:[%s8454_s0 + $0x3e8] sm:$0xf]  ;;  %v7890_v0 = vrot.slane %v4578_v2, 4 }
  0xf4   :  { %8677 = vst [vmem:[#allocation36_spill] sm:$0xff] %v7884_v12  ;;  %v7892_v7 = vrot.slane %v4581_v47, 5  ;;  %v2186_v28 = vshrl.u32 %v5155_v15, 16  ;;  %v2189_v51 = vshll.u32 %v5155_v15, 16  ;;  %v5159_v21 = vld [vmem:[%s8454_s0 + $0x1f0] sm:$0xf]  ;;  %5822 = vmatprep.mubr.msk.bf16.mxu1 %vm124_vm1, %v5187_v49  ;;  %v5451_v15 = vcombine.low %v5419_v63, %v5421_v9 }
  0xf5   :  { %8678 = vst [vmem:[#allocation37_spill] sm:$0xff] %v7890_v0  ;;  %v7897_v12 = vrot.slane %v4592_v3, 4  ;;  %v7899_v39 = vrot.slane %v4595_v37, 5  ;;  %v2200_v20 = vshrl.u32 %v5157_v30, 16  ;;  %v2203_v4 = vshll.u32 %v5157_v30, 16 }
  0xf6   :  { %8679 = vst [vmem:[#allocation38_spill] sm:$0xff] %v7892_v7  ;;  %v5161_v2 = vld [vmem:[%s8454_s0 + $0x1f8] sm:$0xf]  ;;  %v7905_v47 = vrot.slane %v2186_v28, 4  ;;  %v7907_v7 = vrot.slane %v2189_v51, 5  ;;  %v4606_v0 = vshrl.u32 %v5419_v63, 16  ;;  %5966 = vmatprep.mubr.msk.bf16.mxu0 %vm124_vm1, %v5451_v15 }
  0xf7   :  { %8680 = vst [vmem:[#allocation39_spill] sm:$0xff] %v7897_v12  ;;  %8681 = vst [vmem:[#allocation79_spill] sm:$0xff] %v7899_v39  ;;  %v5423_v3 = vld [vmem:[%s8454_s0 + $0x3f0] sm:$0xf]  ;;  %v7912_v37 = vrot.slane %v2200_v20, 4  ;;  %v7914_v39 = vrot.slane %v2203_v4, 5 }
  0xf8   :  { %8682 = vst [vmem:[#allocation80_spill] sm:$0xff] %v7905_v47  ;;  %8683 = vst [vmem:[#allocation81_spill] sm:$0xff] %v7907_v7  ;;  %v4609_v49 = vshll.u32 %v5419_v63, 16  ;;  %v4620_v30 = vshrl.u32 %v5421_v9, 16  ;;  %v5425_v12 = vld [vmem:[%s8454_s0 + $0x3f8] sm:$0xf]  ;;  %v5188_v7 = vcombine.low %v5159_v21, %v5161_v2 }
  0xf9   :  { %8684 = vst [vmem:[#allocation82_spill] sm:$0xff] %v7912_v37  ;;  %8685 = vst [vmem:[#allocation83_spill] sm:$0xff] %v7914_v39  ;;  %v7920_v51 = vrot.slane %v4606_v0, 4  ;;  %v4623_v28 = vshll.u32 %v5421_v9, 16  ;;  %v2214_v47 = vshrl.u32 %v5159_v21, 16  ;;  %v2217_v20 = vshll.u32 %v5159_v21, 16 }
  0xfa   :  { %v7922_v26 = vrot.slane %v4609_v49, 5  ;;  %v7924_v53 = vrot.slane %v4620_v30, 4  ;;  %v2228_v4 = vshrl.u32 %v5161_v2, 16  ;;  %5823 = vmatmul.mubr.msk.bf16.gmra.mrb[12].mxu1 %vm124_vm1, %v5188_v7  ;;  %v2231_v37 = vshll.u32 %v5161_v2, 16  ;;  %v5100_v9 = vld [vmem:[%s8454_s0 + $0x104] sm:$0x1] }
  0xfb   :  { %v7926_v39 = vrot.slane %v4623_v28, 5  ;;  %v7929_v63 = vrot.slane %v2214_v47, 4  ;;  %v5452_v6 = vcombine.low %v5423_v3, %v5425_v12  ;;  %v7934_v0 = vrot.slane %v2217_v20, 5  ;;  %v5102_v21 = vld [vmem:[%s8454_s0 + $0x10c] sm:$0x1] }
  0xfc   :  { %v7936_v15 = vrot.slane %v2228_v4, 4  ;;  %v4634_v49 = vshrl.u32 %v5423_v3, 16  ;;  %v4637_v30 = vshll.u32 %v5423_v3, 16  ;;  %v7941_v28 = vrot.slane %v2231_v37, 5  ;;  %v5364_v20 = vld [vmem:[%s8454_s0 + $0x304] sm:$0x1] }
  0xfd   :  { %5967 = vmatmul.mubr.msk.bf16.gmra.mrb[12].mxu0 %vm124_vm1, %v5452_v6  ;;  %v4648_v7 = vshrl.u32 %v5425_v12, 16  ;;  %v4651_v2 = vshll.u32 %v5425_v12, 16  ;;  %v1634_v47 = vor.u32 %v7448_v54, %v7440_v31  ;;  %v1648_v37 = vor.u32 %v7453_v62, %v7450_v13  ;;  %v5366_v6 = vld [vmem:[%s8454_s0 + $0x30c] sm:$0x1] }
  0xfe   :  { %8686 = vst [vmem:[#allocation84_spill] sm:$0xff] %v7936_v15  ;;  %8687 = vst [vmem:[#allocation85_spill] sm:$0xff] %v7941_v28  ;;  %v7949_v4 = vrot.slane %v4634_v49, 4  ;;  %v7951_v3 = vrot.slane %v4637_v30, 5  ;;  %v1637_v15 = vshll.u32 %v5100_v9, 16  ;;  %v1651_v54 = vshll.u32 %v5102_v21, 16 }
  0xff   :  { %v7958_v12 = vrot.slane %v4648_v7, 4  ;;  %v7960_v28 = vrot.slane %v4651_v2, 5  ;;  %v1635_v31 = vrot.slane %v1634_v47, 4  ;;  %v5104_v49 = vld [vmem:[%s8454_s0 + $0x114] sm:$0x1]  ;;  %v4054_v9 = vor.u32 %v7466_v48, %v7464_v32 }
 0x100   :  { %8688 = vst [vmem:[#allocation86_spill] sm:$0xff] %v7949_v4  ;;  %8689 = vst [vmem:[#allocation87_spill] sm:$0xff] %v7951_v3  ;;  %v1639_v30 = vrot.slane %v1637_v15, 5  ;;  %v1649_v3 = vrot.slane %v1648_v37, 4  ;;  %v4057_v13 = vshll.u32 %v5364_v20, 16  ;;  %v1653_v62 = vrot.slane %v1651_v54, 5 }
 0x101   :  { %8690 = vst [vmem:[#allocation88_spill] sm:$0xff] %v7960_v28  ;;  %v4068_v4 = vor.u32 %v7473_v57, %v7468_v24  ;;  %v4071_v7 = vshll.u32 %v5366_v6, 16  ;;  %v5106_v2 = vld [vmem:[%s8454_s0 + $0x11c] sm:$0x1]  ;;  %v1662_v21 = vor.u32 %v7477_v38, %v7475_v52  ;;  %v4055_v47 = vrot.slane %v4054_v9, 4 }
 0x102   :  { %v1640_v15 = vsel %vm6935_vm4, %v1635_v31, %v1639_v30  ;;  %v4059_v37 = vrot.slane %v4057_v13, 5  ;;  %v1665_v28 = vshll.u32 %v5104_v49, 16  ;;  %v5368_v32 = vld [vmem:[%s8454_s0 + $0x314] sm:$0x1]  ;;  %v1654_v48 = vsel %vm6935_vm4, %v1649_v3, %v1653_v62  ;;  %v5370_v54 = vld [vmem:[%s8454_s0 + $0x31c] sm:$0x1] }
 0x103   :  { %v4069_v24 = vrot.slane %v4068_v4, 4  ;;  %v4073_v57 = vrot.slane %v4071_v7, 5  ;;  %v1663_v20 = vrot.slane %v1662_v21, 4  ;;  %v5198_v6 = vcombine.low %v1640_v15, %v1654_v48 }
 0x104   :  { %v4060_v52 = vsel %vm6935_vm4, %v4055_v47, %v4059_v37  ;;  %v1667_v38 = vrot.slane %v1665_v28, 5  ;;  %v1676_v31 = vor.u32 %v7487_v16, %v7482_v11  ;;  %v1679_v30 = vshll.u32 %v5106_v2, 16  ;;  %v5108_v16 = vld [vmem:[%s8454_s0 + $0x124] sm:$0x1] }
 0x105   :  { %v4074_v49 = vsel %vm6935_vm4, %v4069_v24, %v4073_v57  ;;  %v4082_v4 = vor.u32 %v7496_v60, %v7494_v33  ;;  %v4085_v3 = vshll.u32 %v5368_v32, 16  ;;  %5828 = vmatprep.mubr.msk.bf16.mxu1 %vm124_vm1, %v5198_v6  ;;  %v4096_v11 = vor.u32 %v7505_v10, %v7503_v8  ;;  %v5110_v33 = vld [vmem:[%s8454_s0 + $0x12c] sm:$0x1]  ;;  %v5372_v47 = vld [vmem:[%s8454_s0 + $0x324] sm:$0x1] }
 0x106   :  { %v5462_v9 = vcombine.low %v4060_v52, %v4074_v49  ;;  %v1668_v28 = vsel %vm6935_vm4, %v1663_v20, %v1667_v38  ;;  %v1677_v13 = vrot.slane %v1676_v31, 4  ;;  %v1681_v62 = vrot.slane %v1679_v30, 5  ;;  %v5112_v31 = vld [vmem:[%s8454_s0 + $0x134] sm:$0x1] }
 0x107   :  { %v4083_v7 = vrot.slane %v4082_v4, 4  ;;  %v4087_v2 = vrot.slane %v4085_v3, 5  ;;  %v4099_v21 = vshll.u32 %v5370_v54, 16  ;;  %v4097_v60 = vrot.slane %v4096_v11, 4 }
 0x108   :  { %5972 = vmatprep.mubr.msk.bf16.mxu0 %vm124_vm1, %v5462_v9  ;;  %v2292_v15 = vsel %vm149_vm0, %v7747_v42, 0  ;;  %v4712_v8 = vsel %vm149_vm0, %v7756_v27, 0  ;;  %v1690_v10 = vor.u32 %v7522_v1, %v7520_v46  ;;  %v1682_v37 = vsel %vm6935_vm4, %v1677_v13, %v1681_v62  ;;  %v5374_v46 = vld [vmem:[%s8454_s0 + $0x32c] sm:$0x1]  ;;  %v5376_v13 = vld [vmem:[%s8454_s0 + $0x334] sm:$0x1] }
 0x109   :  { %v4088_v32 = vsel %vm6935_vm4, %v4083_v7, %v4087_v2  ;;  %v4101_v48 = vrot.slane %v4099_v21, 5  ;;  %v1693_v24 = vshll.u32 %v5108_v16, 16  ;;  %v5199_v57 = vcombine.low %v1668_v28, %v1682_v37 }
 0x10a   :  { %v1691_v42 = vrot.slane %v1690_v10, 4  ;;  %v1704_v27 = vor.u32 %v7532_v36, %v7530_v22  ;;  %v1707_v20 = vshll.u32 %v5110_v33, 16  ;;  %v4110_v52 = vor.u32 %v7540_v18, %v7534_v23  ;;  %v5114_v18 = vld [vmem:[%s8454_s0 + $0x13c] sm:$0x1]  ;;  %v5118_v10 = vld [vmem:[%s8454_s0 + $0x14c] sm:$0x1] }
 0x10b   :  { %v4102_v1 = vsel %vm6935_vm4, %v4097_v60, %v4101_v48  ;;  %v1695_v6 = vrot.slane %v1693_v24, 5  ;;  %v4113_v38 = vshll.u32 %v5372_v47, 16  ;;  %5829 = vmatmul.mubr.msk.bf16.vlgmr.msra.gmra.mrb[0].mxu1 %vm124_vm1, %v5199_v57  ;;  %v4124_v49 = vor.u32 %v7549_v14, %v7542_v34 }
 0x10c   :  { %v5463_v22 = vcombine.low %v4088_v32, %v4102_v1  ;;  %v1705_v36 = vrot.slane %v1704_v27, 4  ;;  %v1709_v54 = vrot.slane %v1707_v20, 5  ;;  %5845 = vmatpush3.bf16.msra.mxu1 %v2292_v15  ;;  %v4111_v4 = vrot.slane %v4110_v52, 4  ;;  %v5380_v20 = vld [vmem:[%s8454_s0 + $0x344] sm:$0x1] }
 0x10d   :  { %v1696_v30 = vsel %vm6935_vm4, %v1691_v42, %v1695_v6  ;;  %v4115_v3 = vrot.slane %v4113_v38, 5  ;;  %v4127_v23 = vshll.u32 %v5374_v46, 16  ;;  %v4125_v28 = vrot.slane %v4124_v49, 4  ;;  %v5382_v46 = vld [vmem:[%s8454_s0 + $0x34c] sm:$0x1] }
 0x10e   :  { %5973 = vmatmul.mubr.msk.bf16.vlgmr.msra.gmra.mrb[0].mxu0 %vm124_vm1, %v5463_v22  ;;  %v1710_v9 = vsel %vm6935_vm4, %v1705_v36, %v1709_v54  ;;  %v1718_v34 = vor.u32 %v7561_v50, %v7556_v55  ;;  %v1721_v14 = vshll.u32 %v5112_v31, 16  ;;  %v1732_v7 = vor.u32 %v7565_v58, %v7563_v44  ;;  %v5378_v55 = vld [vmem:[%s8454_s0 + $0x33c] sm:$0x1]  ;;  %v5116_v58 = vld [vmem:[%s8454_s0 + $0x144] sm:$0x1] }
 0x10f   :  { %5989 = vmatpush3.bf16.msra.mxu0 %v4712_v8  ;;  %v5200_v11 = vcombine.low %v1696_v30, %v1710_v9  ;;  %v4116_v16 = vsel %vm6935_vm4, %v4111_v4, %v4115_v3  ;;  %v4129_v62 = vrot.slane %v4127_v23, 5  ;;  %v1735_v33 = vshll.u32 %v5114_v18, 16  ;;  %v5120_v49 = vld [vmem:[%s8454_s0 + $0x154] sm:$0x1]  ;;  %v5122_v30 = vld [vmem:[%s8454_s0 + $0x15c] sm:$0x1] }
 0x110   :  { %v1719_v2 = vrot.slane %v1718_v34, 4  ;;  %v1723_v21 = vrot.slane %v1721_v14, 5  ;;  %v4138_v50 = vor.u32 %v7572_v5, %v7570_v59  ;;  %v1733_v15 = vrot.slane %v1732_v7, 4  ;;  %v8692_v34 = vld [vmem:[#allocation69_spill] sm:$0xff] }
 0x111   :  { %5832 = vmatprep.mubr.msk.bf16.mxu1 %vm124_vm1, %v5200_v11  ;;  %v4130_v60 = vsel %vm6935_vm4, %v4125_v28, %v4129_v62  ;;  %v4141_v8 = vshll.u32 %v5376_v13, 16  ;;  %v4152_v44 = vor.u32 %v7581_v43, %v7575_v19  ;;  %v1737_v5 = vrot.slane %v1735_v33, 5  ;;  %v8691_v28 = vld [vmem:[#allocation68_spill] sm:$0xff]  ;;  %v8693_v11 = vld [vmem:[#allocation70_spill] sm:$0xff] }
 0x112   :  { %v5464_v47 = vcombine.low %v4116_v16, %v4130_v60  ;;  %v1724_v59 = vsel %vm6935_vm4, %v1719_v2, %v1723_v21  ;;  %v4139_v37 = vrot.slane %v4138_v50, 4  ;;  %v4155_v24 = vshll.u32 %v5378_v55, 16  ;;  %v8694_v16 = vld [vmem:[#allocation71_spill] sm:$0xff]  ;;  %v5386_v33 = vld [vmem:[%s8454_s0 + $0x35c] sm:$0x1]  ;;  %v8695_v55 = vld [vmem:[#allocation32_spill] sm:$0xff] }
 0x113   :  { %v4143_v32 = vrot.slane %v4141_v8, 5  ;;  %v4153_v48 = vrot.slane %v4152_v44, 4  ;;  %v1746_v19 = vor.u32 %v7589_v40, %v7587_v45  ;;  %v1738_v43 = vsel %vm6935_vm4, %v1733_v15, %v1737_v5  ;;  %v8696_v50 = vld [vmem:[#allocation33_spill] sm:$0xff]  ;;  %v5124_v8 = vld [vmem:[%s8454_s0 + $0x164] sm:$0x1] }
 0x114   :  { %5976 = vmatprep.mubr.msk.bf16.mxu0 %vm124_vm1, %v5464_v47  ;;  %v1749_v57 = vshll.u32 %v5116_v58, 16  ;;  %v1760_v42 = vor.u32 %v7596_v35, %v7591_v25  ;;  %v1763_v27 = vshll.u32 %v5118_v10, 16  ;;  %v5201_v1 = vcombine.low %v1724_v59, %v1738_v43 }
 0x115   :  { %v4144_v45 = vsel %vm6935_vm4, %v4139_v37, %v4143_v32  ;;  %v4157_v40 = vrot.slane %v4155_v24, 5  ;;  %v1747_v6 = vrot.slane %v1746_v19, 4  ;;  %v4166_v25 = vor.u32 %v7604_v29, %v7599_v61  ;;  %v8697_v32 = vld [vmem:[#allocation34_spill] sm:$0xff] }
 0x116   :  { %v1751_v52 = vrot.slane %v1749_v57, 5  ;;  %v1761_v38 = vrot.slane %v1760_v42, 4  ;;  %v1765_v31 = vrot.slane %v1763_v27, 5  ;;  %5833 = vmatmul.mubr.msk.bf16.gmra.mrb[4].mxu1 %vm124_vm1, %v5201_v1  ;;  %v4169_v22 = vshll.u32 %v5380_v20, 16  ;;  %v5126_v57 = vld [vmem:[%s8454_s0 + $0x16c] sm:$0x1] }
 0x117   :  { %v4158_v35 = vsel %vm6935_vm4, %v4153_v48, %v4157_v40  ;;  %v4180_v36 = vor.u32 %v7611_v56, %v7609_v17  ;;  %v4183_v54 = vshll.u32 %v5382_v46, 16  ;;  %v4167_v3 = vrot.slane %v4166_v25, 4  ;;  %v5384_v17 = vld [vmem:[%s8454_s0 + $0x354] sm:$0x1]  ;;  %v8698_v48 = vld [vmem:[#allocation35_spill] sm:$0xff]  ;;  %v8699_v42 = vld [vmem:[#allocation76_spill] sm:$0xff] }
 0x118   :  { %v5465_v4 = vcombine.low %v4144_v45, %v4158_v35  ;;  %v1752_v61 = vsel %vm6935_vm4, %v1747_v6, %v1751_v52  ;;  %v1766_v29 = vsel %vm6935_vm4, %v1761_v38, %v1765_v31  ;;  %v4171_v23 = vrot.slane %v4169_v22, 5  ;;  %v8700_v27 = vld [vmem:[#allocation77_spill] sm:$0xff]  ;;  %v5388_v1 = vld [vmem:[%s8454_s0 + $0x364] sm:$0x1]  ;;  %v8701_v52 = vld [vmem:[#allocation78_spill] sm:$0xff] }
 0x119   :  { %v5202_v56 = vcombine.low %v1752_v61, %v1766_v29  ;;  %v4181_v18 = vrot.slane %v4180_v36, 4  ;;  %v4185_v9 = vrot.slane %v4183_v54, 5  ;;  %v1774_v14 = vor.u32 %v8692_v34, %v8691_v28  ;;  %v8702_v38 = vld [vmem:[#allocation40_spill] sm:$0xff]  ;;  %v8704_v61 = vld [vmem:[#allocation42_spill] sm:$0xff] }
 0x11a   :  { %5977 = vmatmul.mubr.msk.bf16.gmra.mrb[4].mxu0 %vm124_vm1, %v5465_v4  ;;  %v1777_v13 = vshll.u32 %v5120_v49, 16  ;;  %v1788_v62 = vor.u32 %v8694_v16, %v8693_v11  ;;  %v1791_v7 = vshll.u32 %v5122_v30, 16  ;;  %v4172_v2 = vsel %vm6935_vm4, %v4167_v3, %v4171_v23  ;;  %v5390_v25 = vld [vmem:[%s8454_s0 + $0x36c] sm:$0x1]  ;;  %v8703_v4 = vld [vmem:[#allocation41_spill] sm:$0xff] }
 0x11b   :  { %5836 = vmatprep.mubr.msk.bf16.mxu1 %vm124_vm1, %v5202_v56  ;;  %v4186_v21 = vsel %vm6935_vm4, %v4181_v18, %v4185_v9  ;;  %v4194_v60 = vor.u32 %v8696_v50, %v8695_v55  ;;  %v4197_v15 = vshll.u32 %v5384_v17, 16  ;;  %v1775_v58 = vrot.slane %v1774_v14, 4  ;;  %v5128_v17 = vld [vmem:[%s8454_s0 + $0x174] sm:$0x1]  ;;  %v8705_v18 = vld [vmem:[#allocation43_spill] sm:$0xff]  ;;  %v8706_v9 = vld [vmem:[#allocation44_spill] sm:$0xff] }
 0x11c   :  { %v5466_v44 = vcombine.low %v4172_v2, %v4186_v21  ;;  %v1779_v10 = vrot.slane %v1777_v13, 5  ;;  %v1789_v47 = vrot.slane %v1788_v62, 4  ;;  %v1793_v59 = vrot.slane %v1791_v7, 5  ;;  %v5130_v14 = vld [vmem:[%s8454_s0 + $0x17c] sm:$0x1]  ;;  %v8707_v21 = vld [vmem:[#allocation45_spill] sm:$0xff] }
 0x11d   :  { %v4195_v5 = vrot.slane %v4194_v60, 4  ;;  %v4199_v37 = vrot.slane %v4197_v15, 5  ;;  %v4208_v24 = vor.u32 %v8698_v48, %v8697_v32  ;;  %v4211_v43 = vshll.u32 %v5386_v33, 16  ;;  %v8708_v33 = vld [vmem:[#allocation46_spill] sm:$0xff] }
 0x11e   :  { %5980 = vmatprep.mubr.msk.bf16.mxu0 %vm124_vm1, %v5466_v44  ;;  %v1780_v19 = vsel %vm6935_vm4, %v1775_v58, %v1779_v10  ;;  %v1802_v20 = vor.u32 %v8700_v27, %v8699_v42  ;;  %v1805_v46 = vshll.u32 %v5124_v8, 16  ;;  %v1794_v45 = vsel %vm6935_vm4, %v1789_v47, %v1793_v59  ;;  %v8709_v8 = vld [vmem:[#allocation47_spill] sm:$0xff]  ;;  %v8710_v44 = vld [vmem:[#allocation8_spill] sm:$0xff]  ;;  %v5392_v47 = vld [vmem:[%s8454_s0 + $0x374] sm:$0x1] }
 0x11f   :  { %v4200_v40 = vsel %vm6935_vm4, %v4195_v5, %v4199_v37  ;;  %v4209_v6 = vrot.slane %v4208_v24, 4  ;;  %v1816_v31 = vor.u32 %v8702_v38, %v8701_v52  ;;  %v5203_v35 = vcombine.low %v1780_v19, %v1794_v45  ;;  %v5394_v59 = vld [vmem:[%s8454_s0 + $0x37c] sm:$0x1]  ;;  %v5132_v24 = vld [vmem:[%s8454_s0 + $0x184] sm:$0x1]  ;;  %v8711_v42 = vld [vmem:[#allocation9_spill] sm:$0xff] }
 0x120   :  { %v4213_v22 = vrot.slane %v4211_v43, 5  ;;  %v1803_v36 = vrot.slane %v1802_v20, 4  ;;  %v1807_v54 = vrot.slane %v1805_v46, 5  ;;  %v1819_v30 = vshll.u32 %v5126_v57, 16  ;;  %v8712_v27 = vld [vmem:[#allocation48_spill] sm:$0xff]  ;;  %v8713_v45 = vld [vmem:[#allocation49_spill] sm:$0xff] }
 0x121   :  { %v1817_v49 = vrot.slane %v1816_v31, 4  ;;  %v4222_v29 = vor.u32 %v8704_v61, %v8703_v4  ;;  %v4225_v3 = vshll.u32 %v5388_v1, 16  ;;  %5837 = vmatmul.mubr.msk.bf16.gmra.mrb[8].mxu1 %vm124_vm1, %v5203_v35  ;;  %v4236_v28 = vor.u32 %v8706_v9, %v8705_v18  ;;  %v5134_v38 = vld [vmem:[%s8454_s0 + $0x18c] sm:$0x1]  ;;  %v8715_v35 = vld [vmem:[#allocation51_spill] sm:$0xff] }
 0x122   :  { %v4214_v56 = vsel %vm6935_vm4, %v4209_v6, %v4213_v22  ;;  %v1808_v23 = vsel %vm6935_vm4, %v1803_v36, %v1807_v54  ;;  %v4239_v34 = vshll.u32 %v5390_v25, 16  ;;  %v1821_v11 = vrot.slane %v1819_v30, 5  ;;  %v8716_v22 = vld [vmem:[#allocation10_spill] sm:$0xff] }
 0x123   :  { %v5467_v13 = vcombine.low %v4200_v40, %v4214_v56  ;;  %v4223_v16 = vrot.slane %v4222_v29, 4  ;;  %v4227_v62 = vrot.slane %v4225_v3, 5  ;;  %v4237_v7 = vrot.slane %v4236_v28, 4  ;;  %v8714_v40 = vld [vmem:[#allocation50_spill] sm:$0xff]  ;;  %v8717_v56 = vld [vmem:[#allocation11_spill] sm:$0xff] }
 0x124   :  { %v4241_v2 = vrot.slane %v4239_v34, 5  ;;  %v1830_v55 = vor.u32 %v8708_v33, %v8707_v21  ;;  %v1833_v50 = vshll.u32 %v5128_v17, 16  ;;  %v1822_v60 = vsel %vm6935_vm4, %v1817_v49, %v1821_v11  ;;  %v5396_v49 = vld [vmem:[%s8454_s0 + $0x384] sm:$0x1]  ;;  %v5398_v28 = vld [vmem:[%s8454_s0 + $0x38c] sm:$0x1] }
 0x125   :  { %5981 = vmatmul.mubr.msk.bf16.gmra.mrb[8].mxu0 %vm124_vm1, %v5467_v13  ;;  %v4228_v15 = vsel %vm6935_vm4, %v4223_v16, %v4227_v62  ;;  %v1844_v58 = vor.u32 %v8710_v44, %v8709_v8  ;;  %v1847_v10 = vshll.u32 %v5130_v14, 16  ;;  %v5204_v5 = vcombine.low %v1808_v23, %v1822_v60  ;;  %v8718_v23 = vld [vmem:[#allocation12_spill] sm:$0xff]  ;;  %v8719_v13 = vld [vmem:[#allocation13_spill] sm:$0xff]  ;;  %v8720_v11 = vld [vmem:[#allocation14_spill] sm:$0xff] }
 0x126   :  { %v4242_v37 = vsel %vm6935_vm4, %v4237_v7, %v4241_v2  ;;  %v1831_v32 = vrot.slane %v1830_v55, 4  ;;  %v1835_v48 = vrot.slane %v1833_v50, 5  ;;  %v4250_v20 = vor.u32 %v8712_v27, %v8711_v42  ;;  %v5136_v7 = vld [vmem:[%s8454_s0 + $0x194] sm:$0x1]  ;;  %v8722_v8 = vld [vmem:[#allocation52_spill] sm:$0xff] }
 0x127   :  { %v5468_v19 = vcombine.low %v4228_v15, %v4242_v37  ;;  %v1845_v43 = vrot.slane %v1844_v58, 4  ;;  %v1849_v57 = vrot.slane %v1847_v10, 5  ;;  %5840 = vmatprep.mubr.msk.bf16.mxu1 %vm124_vm1, %v5204_v5  ;;  %v4253_v1 = vshll.u32 %v5392_v47, 16  ;;  %v8721_v15 = vld [vmem:[#allocation15_spill] sm:$0xff]  ;;  %v5138_v10 = vld [vmem:[%s8454_s0 + $0x19c] sm:$0x1] }
 0x128   :  { %v1836_v46 = vsel %vm6935_vm4, %v1831_v32, %v1835_v48  ;;  %v4264_v6 = vor.u32 %v8714_v40, %v8713_v45  ;;  %v4267_v52 = vshll.u32 %v5394_v59, 16  ;;  %v4251_v25 = vrot.slane %v4250_v20, 4  ;;  %v8723_v59 = vld [vmem:[#allocation53_spill] sm:$0xff]  ;;  %v8724_v5 = vld [vmem:[#allocation54_spill] sm:$0xff]  ;;  %v8725_v48 = vld [vmem:[#allocation55_spill] sm:$0xff] }
 0x129   :  { %5984 = vmatprep.mubr.msk.bf16.mxu0 %vm124_vm1, %v5468_v19  ;;  %v1850_v31 = vsel %vm6935_vm4, %v1845_v43, %v1849_v57  ;;  %v2024_v36 = vor.u32 %v8716_v22, %v8715_v35  ;;  %v2027_v54 = vshll.u32 %v5132_v24, 16  ;;  %v4255_v4 = vrot.slane %v4253_v1, 5  ;;  %v8726_v24 = vld [vmem:[#allocation16_spill] sm:$0xff]  ;;  %v5400_v43 = vld [vmem:[%s8454_s0 + $0x394] sm:$0x1]  ;;  %v8729_v22 = vld [vmem:[#allocation19_spill] sm:$0xff] }
 0x12a   :  { %v5205_v30 = vcombine.low %v1836_v46, %v1850_v31  ;;  %v4265_v61 = vrot.slane %v4264_v6, 4  ;;  %v4269_v29 = vrot.slane %v4267_v52, 5  ;;  %v2038_v18 = vor.u32 %v8718_v23, %v8717_v56  ;;  %v5402_v46 = vld [vmem:[%s8454_s0 + $0x39c] sm:$0x1] }
 0x12b   :  { %v2025_v3 = vrot.slane %v2024_v36, 4  ;;  %v2029_v17 = vrot.slane %v2027_v54, 5  ;;  %v2041_v9 = vshll.u32 %v5134_v38, 16  ;;  %v4256_v34 = vsel %vm6935_vm4, %v4251_v25, %v4255_v4  ;;  %v8727_v38 = vld [vmem:[#allocation17_spill] sm:$0xff]  ;;  %v8728_v31 = vld [vmem:[#allocation18_spill] sm:$0xff]  ;;  %v8730_v36 = vld [vmem:[#allocation56_spill] sm:$0xff] }
 0x12c   :  { %5841 = vmatmul.mubr.msk.bf16.gmra.mrb[12].mxu1 %vm124_vm1, %v5205_v30  ;;  %v4270_v14 = vsel %vm6935_vm4, %v4265_v61, %v4269_v29  ;;  %v4444_v16 = vor.u32 %v8720_v11, %v8719_v13  ;;  %v4447_v62 = vshll.u32 %v5396_v49, 16  ;;  %v2039_v33 = vrot.slane %v2038_v18, 4  ;;  %v5140_v49 = vld [vmem:[%s8454_s0 + $0x1a4] sm:$0x1]  ;;  %v8731_v18 = vld [vmem:[#allocation57_spill] sm:$0xff] }
 0x12d   :  { %v5469_v2 = vcombine.low %v4256_v34, %v4270_v14  ;;  %v2030_v21 = vsel %vm6935_vm4, %v2025_v3, %v2029_v17  ;;  %v2043_v55 = vrot.slane %v2041_v9, 5  ;;  %v4458_v44 = vor.u32 %v8722_v8, %v8721_v15  ;;  %v5142_v3 = vld [vmem:[%s8454_s0 + $0x1ac] sm:$0x1]  ;;  %v8732_v9 = vld [vmem:[#allocation58_spill] sm:$0xff]  ;;  %v8733_v11 = vld [vmem:[#allocation59_spill] sm:$0xff] }
 0x12e   :  { %v4445_v50 = vrot.slane %v4444_v16, 4  ;;  %v4449_v60 = vrot.slane %v4447_v62, 5  ;;  %v4461_v58 = vshll.u32 %v5398_v28, 16  ;;  %v2052_v37 = vor.u32 %v8724_v5, %v8723_v59  ;;  %v8734_v16 = vld [vmem:[#allocation20_spill] sm:$0xff] }
 0x12f   :  { %5985 = vmatmul.mubr.msk.bf16.gmra.mrb[12].mxu0 %vm124_vm1, %v5469_v2  ;;  %v2044_v47 = vsel %vm6935_vm4, %v2039_v33, %v2043_v55  ;;  %v2055_v32 = vshll.u32 %v5136_v7, 16  ;;  %v2066_v19 = vor.u32 %v8726_v24, %v8725_v48  ;;  %v4459_v27 = vrot.slane %v4458_v44, 4  ;;  %v5404_v7 = vld [vmem:[%s8454_s0 + $0x3a4] sm:$0x1]  ;;  %v8735_v44 = vld [vmem:[#allocation21_spill] sm:$0xff]  ;;  %v8738_v48 = vld [vmem:[#allocation60_spill] sm:$0xff] }
 0x130   :  { %v5215_v57 = vcombine.low %v2030_v21, %v2044_v47  ;;  %v4450_v42 = vsel %vm6935_vm4, %v4445_v50, %v4449_v60  ;;  %v4463_v20 = vrot.slane %v4461_v58, 5  ;;  %v2053_v1 = vrot.slane %v2052_v37, 4  ;;  %v5406_v50 = vld [vmem:[%s8454_s0 + $0x3ac] sm:$0x1]  ;;  %v8736_v58 = vld [vmem:[#allocation22_spill] sm:$0xff] }
 0x131   :  { %v2057_v45 = vrot.slane %v2055_v32, 5  ;;  %v2067_v40 = vrot.slane %v2066_v19, 4  ;;  %v2069_v6 = vshll.u32 %v5138_v10, 16  ;;  %v4472_v25 = vor.u32 %v8728_v31, %v8727_v38  ;;  %v5144_v47 = vld [vmem:[%s8454_s0 + $0x1b4] sm:$0x1]  ;;  %v8737_v32 = vld [vmem:[#allocation23_spill] sm:$0xff] }
 0x132   :  { %5846 = vmatprep.mubr.msk.bf16.mxu1 %vm124_vm1, %v5215_v57  ;;  %v4464_v52 = vsel %vm6935_vm4, %v4459_v27, %v4463_v20  ;;  %v4475_v35 = vshll.u32 %v5400_v43, 16  ;;  %v4486_v54 = vor.u32 %v8730_v36, %v8729_v22  ;;  %v4489_v29 = vshll.u32 %v5402_v46, 16  ;;  %v8739_v27 = vld [vmem:[#allocation61_spill] sm:$0xff]  ;;  %v8740_v20 = vld [vmem:[#allocation62_spill] sm:$0xff]  ;;  %v8742_v22 = vld [vmem:[#allocation24_spill] sm:$0xff] }
 0x133   :  { %v5479_v30 = vcombine.low %v4450_v42, %v4464_v52  ;;  %v2058_v4 = vsel %vm6935_vm4, %v2053_v1, %v2057_v45  ;;  %v2071_v61 = vrot.slane %v2069_v6, 5  ;;  %v4473_v17 = vrot.slane %v4472_v25, 4  ;;  %v5146_v42 = vld [vmem:[%s8454_s0 + $0x1bc] sm:$0x1]  ;;  %v5408_v52 = vld [vmem:[%s8454_s0 + $0x3b4] sm:$0x1] }
 0x134   :  { %v4477_v56 = vrot.slane %v4475_v35, 5  ;;  %v4487_v23 = vrot.slane %v4486_v54, 4  ;;  %v2080_v28 = vor.u32 %v8732_v9, %v8731_v18  ;;  %v4491_v14 = vrot.slane %v4489_v29, 5  ;;  %v8741_v35 = vld [vmem:[#allocation63_spill] sm:$0xff]  ;;  %v8744_v29 = vld [vmem:[#allocation26_spill] sm:$0xff]  ;;  %v8746_v9 = vld [vmem:[#allocation64_spill] sm:$0xff] }
 0x135   :  { %5990 = vmatprep.mubr.msk.bf16.mxu0 %vm124_vm1, %v5479_v30  ;;  %v2072_v34 = vsel %vm6935_vm4, %v2067_v40, %v2071_v61  ;;  %v2083_v13 = vshll.u32 %v5140_v49, 16  ;;  %v2094_v62 = vor.u32 %v8734_v16, %v8733_v11  ;;  %v2097_v55 = vshll.u32 %v5142_v3, 16  ;;  %v8743_v61 = vld [vmem:[#allocation25_spill] sm:$0xff]  ;;  %v8745_v18 = vld [vmem:[#allocation27_spill] sm:$0xff] }
 0x136   :  { %v5216_v2 = vcombine.low %v2058_v4, %v2072_v34  ;;  %v4478_v21 = vsel %vm6935_vm4, %v4473_v17, %v4477_v56  ;;  %v2081_v33 = vrot.slane %v2080_v28, 4  ;;  %v4492_v60 = vsel %vm6935_vm4, %v4487_v23, %v4491_v14  ;;  %v5410_v4 = vld [vmem:[%s8454_s0 + $0x3bc] sm:$0x1]  ;;  %v5148_v34 = vld [vmem:[%s8454_s0 + $0x1c4] sm:$0x1] }
 0x137   :  { %v2085_v15 = vrot.slane %v2083_v13, 5  ;;  %v2095_v8 = vrot.slane %v2094_v62, 4  ;;  %v4500_v10 = vor.u32 %v8736_v58, %v8735_v44  ;;  %v5480_v59 = vcombine.low %v4478_v21, %v4492_v60  ;;  %v5150_v14 = vld [vmem:[%s8454_s0 + $0x1cc] sm:$0x1] }
 0x138   :  { %5847 = vmatmul.mubr.msk.bf16.vlgmr.msra.gmra.mrb[0].mxu1 %vm124_vm1, %v5216_v2  ;;  %v2099_v5 = vrot.slane %v2097_v55, 5  ;;  %v4503_v37 = vshll.u32 %v5404_v7, 16  ;;  %v4514_v24 = vor.u32 %v8738_v48, %v8737_v32  ;;  %v4517_v57 = vshll.u32 %v5406_v50, 16  ;;  %v8748_v55 = vld [vmem:[#allocation66_spill] sm:$0xff]  ;;  %v8750_v44 = vld [vmem:[#allocation28_spill] sm:$0xff] }
 0x139   :  { %v2086_v19 = vsel %vm6935_vm4, %v2081_v33, %v2085_v15  ;;  %v4501_v43 = vrot.slane %v4500_v10, 4  ;;  %v2108_v46 = vor.u32 %v8740_v20, %v8739_v27  ;;  %5991 = vmatmul.mubr.msk.bf16.vlgmr.msra.gmra.mrb[0].mxu0 %vm124_vm1, %v5480_v59  ;;  %v2111_v6 = vshll.u32 %v5144_v47, 16  ;;  %v8747_v33 = vld [vmem:[#allocation65_spill] sm:$0xff]  ;;  %v5412_v47 = vld [vmem:[%s8454_s0 + $0x3c4] sm:$0x1] }
 0x13a   :  { %v2100_v1 = vsel %vm6935_vm4, %v2095_v8, %v2099_v5  ;;  %v4505_v45 = vrot.slane %v4503_v37, 5  ;;  %v4515_v40 = vrot.slane %v4514_v24, 4  ;;  %v4519_v31 = vrot.slane %v4517_v57, 5  ;;  %v8749_v8 = vld [vmem:[#allocation67_spill] sm:$0xff]  ;;  %v5414_v59 = vld [vmem:[%s8454_s0 + $0x3cc] sm:$0x1] }
 0x13b   :  { %v5217_v38 = vcombine.low %v2086_v19, %v2100_v1  ;;  %v2109_v25 = vrot.slane %v2108_v46, 4  ;;  %v2122_v36 = vor.u32 %v8742_v22, %v8741_v35  ;;  %v2113_v49 = vrot.slane %v2111_v6, 5  ;;  %v8751_v57 = vld [vmem:[#allocation29_spill] sm:$0xff]  ;;  %v8753_v1 = vld [vmem:[#allocation31_spill] sm:$0xff] }
 0x13c   :  { %v4506_v54 = vsel %vm6935_vm4, %v4501_v43, %v4505_v45  ;;  %v2125_v30 = vshll.u32 %v5146_v42, 16  ;;  %v4528_v3 = vor.u32 %v8744_v29, %v8743_v61  ;;  %v4520_v17 = vsel %vm6935_vm4, %v4515_v40, %v4519_v31  ;;  %v8752_v42 = vld [vmem:[#allocation30_spill] sm:$0xff]  ;;  %v8754_v45 = vld [vmem:[#allocation72_spill] sm:$0xff]  ;;  %v8755_v61 = vld [vmem:[#allocation73_spill] sm:$0xff] }
 0x13d   :  { %5850 = vmatprep.mubr.msk.bf16.mxu1 %vm124_vm1, %v5217_v38  ;;  %v2123_v56 = vrot.slane %v2122_v36, 4  ;;  %v4531_v23 = vshll.u32 %v5408_v52, 16  ;;  %v4542_v28 = vor.u32 %v8746_v9, %v8745_v18  ;;  %v5481_v13 = vcombine.low %v4506_v54, %v4520_v17  ;;  %v5152_v52 = vld [vmem:[%s8454_s0 + $0x1d4] sm:$0x1]  ;;  %v5154_v38 = vld [vmem:[%s8454_s0 + $0x1dc] sm:$0x1] }
 0x13e   :  { %v2114_v11 = vsel %vm6935_vm4, %v2109_v25, %v2113_v49  ;;  %v2127_v16 = vrot.slane %v2125_v30, 5  ;;  %v4529_v62 = vrot.slane %v4528_v3, 4  ;;  %v4545_v21 = vshll.u32 %v5410_v4, 16  ;;  %v5416_v36 = vld [vmem:[%s8454_s0 + $0x3d4] sm:$0x1]  ;;  %v8756_v29 = vld [vmem:[#allocation74_spill] sm:$0xff] }
 0x13f   :  { %v4533_v7 = vrot.slane %v4531_v23, 5  ;;  %v4543_v2 = vrot.slane %v4542_v28, 4  ;;  %v2136_v50 = vor.u32 %v8748_v55, %v8747_v33  ;;  %5994 = vmatprep.mubr.msk.bf16.mxu0 %vm124_vm1, %v5481_v13  ;;  %v2139_v15 = vshll.u32 %v5148_v34, 16  ;;  %v8758_v23 = vld [vmem:[#allocation36_spill] sm:$0xff]  ;;  %v8759_v13 = vld [vmem:[#allocation37_spill] sm:$0xff] }
 0x140   :  { %v2128_v60 = vsel %vm6935_vm4, %v2123_v56, %v2127_v16  ;;  %v2150_v58 = vor.u32 %v8750_v44, %v8749_v8  ;;  %v2153_v10 = vshll.u32 %v5150_v14, 16  ;;  %v4547_v32 = vrot.slane %v4545_v21, 5  ;;  %v8757_v56 = vld [vmem:[#allocation75_spill] sm:$0xff]  ;;  %v5418_v14 = vld [vmem:[%s8454_s0 + $0x3dc] sm:$0x1] }
 0x141   :  { %v5218_v5 = vcombine.low %v2114_v11, %v2128_v60  ;;  %v4534_v37 = vsel %vm6935_vm4, %v4529_v62, %v4533_v7  ;;  %v2137_v48 = vrot.slane %v2136_v50, 4  ;;  %v2141_v24 = vrot.slane %v2139_v15, 5  ;;  %v8760_v11 = vld [vmem:[#allocation38_spill] sm:$0xff]  ;;  %v5156_v7 = vld [vmem:[%s8454_s0 + $0x1e4] sm:$0x1] }
 0x142   :  { %v2151_v19 = vrot.slane %v2150_v58, 4  ;;  %v2155_v43 = vrot.slane %v2153_v10, 5  ;;  %v4556_v27 = vor.u32 %v8752_v42, %v8751_v57  ;;  %v4548_v20 = vsel %vm6935_vm4, %v4543_v2, %v4547_v32  ;;  %v8761_v8 = vld [vmem:[#allocation39_spill] sm:$0xff]  ;;  %v8765_v42 = vld [vmem:[#allocation82_spill] sm:$0xff] }
 0x143   :  { %5851 = vmatmul.mubr.msk.bf16.gmra.mrb[4].mxu1 %vm124_vm1, %v5218_v5  ;;  %v4559_v46 = vshll.u32 %v5412_v47, 16  ;;  %v4570_v40 = vor.u32 %v8754_v45, %v8753_v1  ;;  %v4573_v6 = vshll.u32 %v5414_v59, 16  ;;  %v5482_v31 = vcombine.low %v4534_v37, %v4548_v20  ;;  %v8762_v44 = vld [vmem:[#allocation79_spill] sm:$0xff]  ;;  %v5158_v59 = vld [vmem:[%s8454_s0 + $0x1ec] sm:$0x1]  ;;  %v8764_v37 = vld [vmem:[#allocation81_spill] sm:$0xff] }
 0x144   :  { %v2142_v25 = vsel %vm6935_vm4, %v2137_v48, %v2141_v24  ;;  %v2156_v35 = vsel %vm6935_vm4, %v2151_v19, %v2155_v43  ;;  %v4557_v22 = vrot.slane %v4556_v27, 4  ;;  %v2164_v3 = vor.u32 %v8756_v29, %v8755_v61  ;;  %v8763_v5 = vld [vmem:[#allocation80_spill] sm:$0xff]  ;;  %v5420_v24 = vld [vmem:[%s8454_s0 + $0x3e4] sm:$0x1] }
 0x145   :  { %v5219_v54 = vcombine.low %v2142_v25, %v2156_v35  ;;  %v4561_v49 = vrot.slane %v4559_v46, 5  ;;  %v4571_v30 = vrot.slane %v4570_v40, 4  ;;  %v4575_v4 = vrot.slane %v4573_v6, 5  ;;  %5995 = vmatmul.mubr.msk.bf16.gmra.mrb[4].mxu0 %vm124_vm1, %v5482_v31  ;;  %v8766_v27 = vld [vmem:[#allocation83_spill] sm:$0xff]  ;;  %v5422_v46 = vld [vmem:[%s8454_s0 + $0x3ec] sm:$0x1] }
 0x146   :  { %v2167_v17 = vshll.u32 %v5152_v52, 16  ;;  %v2178_v18 = vor.u32 %v8758_v23, %v8757_v56  ;;  %v2181_v9 = vshll.u32 %v5154_v38, 16  ;;  %v4584_v16 = vor.u32 %v8760_v11, %v8759_v13  ;;  %v5160_v35 = vld [vmem:[%s8454_s0 + $0x1f4] sm:$0x1]  ;;  %v8767_v23 = vld [vmem:[#allocation84_spill] sm:$0xff] }
 0x147   :  { %5854 = vmatprep.mubr.msk.bf16.mxu1 %vm124_vm1, %v5219_v54  ;;  %v4562_v28 = vsel %vm6935_vm4, %v4557_v22, %v4561_v49  ;;  %v4576_v34 = vsel %vm6935_vm4, %v4571_v30, %v4575_v4  ;;  %v4587_v62 = vshll.u32 %v5416_v36, 16  ;;  %v2165_v21 = vrot.slane %v2164_v3, 4 }
 0x148   :  { %v5483_v2 = vcombine.low %v4562_v28, %v4576_v34  ;;  %v2169_v33 = vrot.slane %v2167_v17, 5  ;;  %v2179_v55 = vrot.slane %v2178_v18, 4  ;;  %v2183_v50 = vrot.slane %v2181_v9, 5  ;;  %v8768_v18 = vld [vmem:[#allocation85_spill] sm:$0xff] }
 0x149   :  { %v4585_v60 = vrot.slane %v4584_v16, 4  ;;  %v4589_v15 = vrot.slane %v4587_v62, 5  ;;  %v4598_v58 = vor.u32 %v8762_v44, %v8761_v8  ;;  %v4601_v47 = vshll.u32 %v5418_v14, 16  ;;  %v5424_v34 = vld [vmem:[%s8454_s0 + $0x3f4] sm:$0x1] }
 0x14a   :  { %5998 = vmatprep.mubr.msk.bf16.mxu0 %vm124_vm1, %v5483_v2  ;;  %v2170_v10 = vsel %vm6935_vm4, %v2165_v21, %v2169_v33  ;;  %v2192_v32 = vor.u32 %v8764_v37, %v8763_v5  ;;  %v2195_v48 = vshll.u32 %v5156_v7, 16  ;;  %v2184_v19 = vsel %vm6935_vm4, %v2179_v55, %v2183_v50  ;;  %v8769_v2 = vld [vmem:[#allocation86_spill] sm:$0xff]  ;;  %v8770_v21 = vld [vmem:[#allocation87_spill] sm:$0xff] }
 0x14b   :  { %v4590_v43 = vsel %vm6935_vm4, %v4585_v60, %v4589_v15  ;;  %v4599_v57 = vrot.slane %v4598_v58, 4  ;;  %v2206_v20 = vor.u32 %v8766_v27, %v8765_v42  ;;  %v5220_v1 = vcombine.low %v2170_v10, %v2184_v19  ;;  %v8771_v60 = vld [vmem:[#allocation88_spill] sm:$0xff] }
 0x14c   :  { %v4603_v45 = vrot.slane %v4601_v47, 5  ;;  %v2193_v40 = vrot.slane %v2192_v32, 4  ;;  %v2197_v6 = vrot.slane %v2195_v48, 5  ;;  %v2209_v38 = vshll.u32 %v5158_v59, 16 }
 0x14d   :  { %v2207_v52 = vrot.slane %v2206_v20, 4  ;;  %v4612_v31 = vor.u32 %v7922_v26, %v7920_v51  ;;  %v4615_v25 = vshll.u32 %v5420_v24, 16  ;;  %5855 = vmatmul.mubr.msk.bf16.gmra.mrb[8].mxu1 %vm124_vm1, %v5220_v1  ;;  %v4626_v54 = vor.u32 %v7926_v39, %v7924_v53  ;;  %v5162_v26 = vld [vmem:[%s8454_s0 + $0x1fc] sm:$0x1] }
 0x14e   :  { %v4604_v22 = vsel %vm6935_vm4, %v4599_v57, %v4603_v45  ;;  %v2198_v36 = vsel %vm6935_vm4, %v2193_v40, %v2197_v6  ;;  %v4629_v49 = vshll.u32 %v5422_v46, 16  ;;  %v2211_v30 = vrot.slane %v2209_v38, 5 }
 0x14f   :  { %v5484_v51 = vcombine.low %v4590_v43, %v4604_v22  ;;  %v4613_v4 = vrot.slane %v4612_v31, 4  ;;  %v4617_v61 = vrot.slane %v4615_v25, 5  ;;  %v4627_v29 = vrot.slane %v4626_v54, 4 }
 0x150   :  { %v4631_v3 = vrot.slane %v4629_v49, 5  ;;  %v2220_v17 = vor.u32 %v7934_v0, %v7929_v63  ;;  %v2223_v56 = vshll.u32 %v5160_v35, 16  ;;  %v2212_v53 = vsel %vm6935_vm4, %v2207_v52, %v2211_v30  ;;  %v5426_v63 = vld [vmem:[%s8454_s0 + $0x3fc] sm:$0x1]  ;;  %s6378_s0 = smov [#allocation2]  }
 0x151   :  { %5999 = vmatmul.mubr.msk.bf16.gmra.mrb[8].mxu0 %vm124_vm1, %v5484_v51  ;;  %v4618_v39 = vsel %vm6935_vm4, %v4613_v4, %v4617_v61  ;;  %v2234_v9 = vor.u32 %v8768_v18, %v8767_v23  ;;  %v2237_v28 = vshll.u32 %v5162_v26, 16  ;;  %v5221_v0 = vcombine.low %v2198_v36, %v2212_v53  ;;  %s4975_s1 = sshll.u32 %s6378_s0, 4  ;;  %s4976_s1 = int_to_ptr.vmem [resolvable:$true] %s4975_s1 }
 0x152   :  { %v4632_v14 = vsel %vm6935_vm4, %v4627_v29, %v4631_v3  ;;  %v2221_v13 = vrot.slane %v2220_v17, 4  ;;  %v2225_v11 = vrot.slane %v2223_v56, 5  ;;  %v4640_v33 = vor.u32 %v8770_v21, %v8769_v2  ;;  %s6330_s10 = scalar_lea.vmem %s4976_s1, 1024  ;;  %p6335_p1 = scmp.lt.s32.totalorder %s4976_s1, %s4976_s1 }
 0x153   :  { %v5485_v16 = vcombine.low %v4618_v39, %v4632_v14  ;;  %v2235_v62 = vrot.slane %v2234_v9, 4  ;;  %v2239_v7 = vrot.slane %v2237_v28, 5  ;;  %5858 = vmatprep.mubr.msk.bf16.mxu1 %vm124_vm1, %v5221_v0  ;;  %v4643_v50 = vshll.u32 %v5424_v34, 16  ;;  %p6331_p0 = scmp.ne.s32.totalorder %s4976_s1, %s6330_s10  ;;  %p6336_p2 = scmp.lt.s32.totalorder %s6330_s10, %s6330_s10 }
 0x154   :  { %v2226_v55 = vsel %vm6935_vm4, %v2221_v13, %v2225_v11  ;;  %v4654_v15 = vor.u32 %v8771_v60, %v7958_v12  ;;  %v4657_v8 = vshll.u32 %v5426_v63, 16  ;;  %v4641_v58 = vrot.slane %v4640_v33, 4 }
 0x155   :  { %6002 = vmatprep.mubr.msk.bf16.mxu0 %vm124_vm1, %v5485_v16  ;;  %v2240_v44 = vsel %vm6935_vm4, %v2235_v62, %v2239_v7  ;;  %v4645_v47 = vrot.slane %v4643_v50, 5  ;;  %p6337_p3 = por %p6336_p2, %p6335_p1 }
 0x156   :  { %v5222_v10 = vcombine.low %v2226_v55, %v2240_v44  ;;  %v4655_v59 = vrot.slane %v4654_v15, 4  ;;  %v4659_v5 = vrot.slane %v4657_v8, 5 }
 0x157   :  { %v4646_v37 = vsel %vm6935_vm4, %v4641_v58, %v4645_v47  ;;  %p6338_p4 = pnand %p6337_p3, %p6331_p0 }
 0x158   :  { %5859 = vmatmul.mubr.msk.bf16.gmra.mrb[12].mxu1 %vm124_vm1, %v5222_v10  ;;  %v4660_v32 = vsel %vm6935_vm4, %v4655_v59, %v4659_v5 }
 0x159   :  { %v5486_v12 = vcombine.low %v4646_v37, %v4660_v32 }
 0x15b   :  { %6003 = vmatmul.mubr.msk.bf16.gmra.mrb[12].mxu0 %vm124_vm1, %v5486_v12 }
 0x20b   :  { %v5848_v48 = vpop.f32.mrb[0].mxu1 }
 0x20c   :  { %v2328_v24 = vpop.f32.mrb[1].mxu1  ;;  %v5992_v19 = vpop.f32.mrb[0].mxu0 }
 0x20d   :  { %v5849_v43 = vpop.f32.mrb[2].mxu1  ;;  %v6006_v57 = vadd.f32 %v5992_v19, %v5848_v48  ;;  %v4748_v42 = vpop.f32.mrb[1].mxu0 }
 0x20e   :  { %v2331_v27 = vpop.f32.mrb[3].mxu1  ;;  %v6007_v20 = vadd.f32 %v4748_v42, %v2328_v24  ;;  %v5993_v46 = vpop.f32.mrb[2].mxu0 }
 0x20f   :  { %v6008_v1 = vadd.f32 %v5993_v46, %v5849_v43  ;;  %v4751_v45 = vpop.f32.mrb[3].mxu0  ;;  %v4930_v25 = vmul.f32 %v6006_v57, %v6006_v57 }
 0x210   :  { %v6009_v40 = vadd.f32 %v4751_v45, %v2331_v27  ;;  %v4928_v52 = vmul.f32 %v6007_v20, %v6007_v20 }
 0x211   :  { %v5535_v6 = vpack.c.bf16 %v6008_v1, %v6006_v57  ;;  %v4931_v54 = vmul.f32 %v6008_v1, %v6008_v1 }
 0x212   :  { %v5530_v38 = vpack.c.bf16 %v6009_v40, %v6007_v20  ;;  %v4907_v41 = vadd.f32 %v6009_v40, %v6007_v20  ;;  %v4929_v31 = vmul.f32 %v6009_v40, %v6009_v40 }
 0x213   :  { %5567 = vst [vmem:[#allocation2 + $0x8] sm:$0xff] %v5535_v6  }
 0x214   :  { %5531 = vst [vmem:[#allocation2] sm:$0xff] %v5530_v38   ;;  %v4908_v35 = vadd.f32 %v6006_v57, %v4907_v41  ;;  %v4944_v22 = vadd.f32 %v4929_v31, %v4928_v52 }
 0x216   :  { %v5852_v36 = vpop.f32.mrb[4].mxu1  ;;  %v4945_v49 = vadd.f32 %v4944_v22, %v4930_v25  ;;  %v4909_v51 = vadd.f32 %v6008_v1, %v4908_v35 }
 0x217   :  { %v2344_v26 = vpop.f32.mrb[5].mxu1 }
 0x218   :  { %v5853_v30 = vpop.f32.mrb[6].mxu1  ;;  %v5996_v4 = vpop.f32.mrb[4].mxu0  ;;  %v4946_v61 = vadd.f32 %v4945_v49, %v4931_v54 }
 0x219   :  { %v2347_v29 = vpop.f32.mrb[7].mxu1  ;;  %v6010_v3 = vadd.f32 %v5996_v4, %v5852_v36  ;;  %v4764_v17 = vpop.f32.mrb[5].mxu0 }
 0x21a   :  { %v6011_v56 = vadd.f32 %v4764_v17, %v2344_v26  ;;  %v5997_v53 = vpop.f32.mrb[6].mxu0 }
 0x21b   :  { %v6012_v39 = vadd.f32 %v5997_v53, %v5853_v30  ;;  %v4767_v23 = vpop.f32.mrb[7].mxu0  ;;  %v4934_v11 = vmul.f32 %v6010_v3, %v6010_v3 }
 0x21c   :  { %v4910_v18 = vadd.f32 %v6011_v56, %v4909_v51  ;;  %v4932_v9 = vmul.f32 %v6011_v56, %v6011_v56  ;;  %v6013_v28 = vadd.f32 %v4767_v23, %v2347_v29 }
 0x21d   :  { %v5545_v34 = vpack.c.bf16 %v6012_v39, %v6010_v3  ;;  %v4935_v21 = vmul.f32 %v6012_v39, %v6012_v39 }
 0x21e   :  { %v4947_v63 = vadd.f32 %v4946_v61, %v4932_v9  ;;  %v5540_v0 = vpack.c.bf16 %v6013_v28, %v6011_v56  ;;  %v4911_v14 = vadd.f32 %v6013_v28, %v4910_v18  ;;  %v4933_v13 = vmul.f32 %v6013_v28, %v6013_v28 }
 0x21f   :  { %5569 = vst [vmem:[#allocation2 + $0x18] sm:$0xff] %v5545_v34  }
 0x220   :  { %5568 = vst [vmem:[#allocation2 + $0x10] sm:$0xff] %v5540_v0   ;;  %v4912_v16 = vadd.f32 %v6010_v3, %v4911_v14  ;;  %v4948_v62 = vadd.f32 %v4947_v63, %v4933_v13  ;;  %v5856_v7 = vpop.f32.mrb[8].mxu1 }
 0x221   :  { %v2360_v2 = vpop.f32.mrb[9].mxu1 }
 0x222   :  { %v4949_v33 = vadd.f32 %v4948_v62, %v4934_v11  ;;  %v4913_v55 = vadd.f32 %v6012_v39, %v4912_v16  ;;  %v5857_v50 = vpop.f32.mrb[10].mxu1 }
 0x223   :  { %v2363_v15 = vpop.f32.mrb[11].mxu1 }
 0x224   :  { %v6000_v60 = vpop.f32.mrb[8].mxu0  ;;  %v4950_v58 = vadd.f32 %v4949_v33, %v4935_v21 }
 0x225   :  { %v6014_v8 = vadd.f32 %v6000_v60, %v5856_v7  ;;  %v4780_v44 = vpop.f32.mrb[9].mxu0 }
 0x226   :  { %v6015_v10 = vadd.f32 %v4780_v44, %v2360_v2  ;;  %v6001_v47 = vpop.f32.mrb[10].mxu0 }
 0x227   :  { %v6016_v59 = vadd.f32 %v6001_v47, %v5857_v50  ;;  %v4783_v5 = vpop.f32.mrb[11].mxu0  ;;  %v4938_v27 = vmul.f32 %v6014_v8, %v6014_v8 }
 0x228   :  { %v4914_v37 = vadd.f32 %v6015_v10, %v4913_v55  ;;  %v4936_v32 = vmul.f32 %v6015_v10, %v6015_v10  ;;  %v6017_v12 = vadd.f32 %v4783_v5, %v2363_v15 }
 0x229   :  { %v5555_v48 = vpack.c.bf16 %v6016_v59, %v6014_v8  ;;  %v4939_v40 = vmul.f32 %v6016_v59, %v6016_v59 }
 0x22a   :  { %v4951_v24 = vadd.f32 %v4950_v58, %v4936_v32  ;;  %v5550_v19 = vpack.c.bf16 %v6017_v12, %v6015_v10  ;;  %v4915_v43 = vadd.f32 %v6017_v12, %v4914_v37  ;;  %v4937_v57 = vmul.f32 %v6017_v12, %v6017_v12 }
 0x22b   :  { %5571 = vst [vmem:[#allocation2 + $0x28] sm:$0xff] %v5555_v48   ;;  %v5860_v42 = vpop.f32.mrb[12].mxu1 }
 0x22c   :  { %5570 = vst [vmem:[#allocation2 + $0x20] sm:$0xff] %v5550_v19   ;;  %v4916_v20 = vadd.f32 %v6014_v8, %v4915_v43  ;;  %v4952_v46 = vadd.f32 %v4951_v24, %v4937_v57  ;;  %v2376_v1 = vpop.f32.mrb[13].mxu1 }
 0x22d   :  { %v5861_v45 = vpop.f32.mrb[14].mxu1 }
 0x22e   :  { %v4953_v6 = vadd.f32 %v4952_v46, %v4938_v27  ;;  %v6004_v52 = vpop.f32.mrb[12].mxu0  ;;  %v4917_v38 = vadd.f32 %v6016_v59, %v4916_v20  ;;  %v2379_v41 = vpop.f32.mrb[15].mxu1 }
 0x22f   :  { %v6018_v31 = vadd.f32 %v6004_v52, %v5860_v42  ;;  %v4796_v25 = vpop.f32.mrb[13].mxu0 }
 0x230   :  { %v6019_v35 = vadd.f32 %v4796_v25, %v2376_v1  ;;  %v4954_v22 = vadd.f32 %v4953_v6, %v4939_v40  ;;  %v6005_v36 = vpop.f32.mrb[14].mxu0 }
 0x231   :  { %v6020_v54 = vadd.f32 %v6005_v36, %v5861_v45  ;;  %v4799_v49 = vpop.f32.mrb[15].mxu0  ;;  %v4942_v56 = vmul.f32 %v6018_v31, %v6018_v31 }
 0x232   :  { %v4918_v26 = vadd.f32 %v6019_v35, %v4917_v38  ;;  %v4940_v51 = vmul.f32 %v6019_v35, %v6019_v35  ;;  %v6021_v30 = vadd.f32 %v4799_v49, %v2379_v41 }
 0x233   :  { %v5565_v4 = vpack.c.bf16 %v6020_v54, %v6018_v31 }
 0x234   :  { %v4955_v61 = vadd.f32 %v4954_v22, %v4940_v51  ;;  %v5560_v29 = vpack.c.bf16 %v6021_v30, %v6019_v35  ;;  %v4919_v3 = vadd.f32 %v6021_v30, %v4918_v26  ;;  %v4941_v17 = vmul.f32 %v6021_v30, %v6021_v30 }
 0x235   :  { %5573 = vst [vmem:[#allocation2 + $0x38] sm:$0xff] %v5565_v4  }
 0x236   :  { %5572 = vst [vmem:[#allocation2 + $0x30] sm:$0xff] %v5560_v29   ;;  %v4920_v53 = vadd.f32 %v6018_v31, %v4919_v3  ;;  %v4956_v39 = vadd.f32 %v4955_v61, %v4941_v17 }
 0x237   :  { %6341 = shalt.err (!%p6338_p4)
}
 0x238   :  { %s6342_s13 = scalar_lea.hbm %s8456_s2, 1024 }
 0x239   :  { %p6343_p5 = scmp.ne.s32.totalorder %s8456_s2, %s6342_s13  ;;  %p6346_p6 = scmp.lt.u32.totalorder %s6342_s13, %s8456_s2 }
 0x23b   :  { %p6348_p7 = pnand %p6346_p6, %p6343_p5 }
 0x23d   :  { %6351 = shalt.err (!%p6348_p7)
}
 0x23e   :  { %s6379_s18 = smov 64   ;;  %s6380_s19 = smov 4   ;;  %v4943_v23 = vmul.f32 %v6020_v54, %v6020_v54  ;;  %v4921_v18 = vadd.f32 %v6020_v54, %v4920_v53  ;;  %v4957_v9 = vadd.f32 %v4956_v39, %v4942_v56  ;;  %vm4965_vm5 = vcmask 1040384  }
 0x23f   :  { %4981 = dma.vmem_to_hbm [thread:$0]  %s4976_s1, 1024, %s8456_s2, [#allocation3], %s6379_s18, %s6379_s18, %s6380_s19   ;;  %vm4967_vm6 = vcmask 1041408  }
 0x240   :  { %v4922_v28 = vrot.slane %v4921_v18, 4  ;;  %v4958_v34 = vadd.f32 %v4957_v9, %v4943_v23  ;;  %s6381_s22 = smov [#allocation4]  }
 0x241   :  { %s4988_s23 = sshll.u32 %s6381_s22, 4  ;;  %s4989_s23 = int_to_ptr.vmem [resolvable:$true] %s4988_s23 }
 0x242   :  { %v4923_v63 = vadd.f32 %v4922_v28, %v4921_v18  ;;  %v4959_v0 = vrot.slane %v4958_v34, 4  ;;  %s6352_s2 = scalar_lea.vmem %s4989_s23, 128  ;;  %p6357_p9 = scmp.lt.s32.totalorder %s4989_s23, %s4989_s23 }
 0x243   :  { %p6353_p8 = scmp.ne.s32.totalorder %s4989_s23, %s6352_s2  ;;  %p6358_p10 = scmp.lt.s32.totalorder %s6352_s2, %s6352_s2 }
 0x244   :  { %v4924_v14 = vrot.slane %v4923_v63, 2  ;;  %v4960_v13 = vadd.f32 %v4959_v0, %v4958_v34 }
 0x245   :  { %p6359_p11 = por %p6358_p10, %p6357_p9 }
 0x246   :  { %v4925_v11 = vadd.f32 %v4924_v14, %v4923_v63  ;;  %v4961_v16 = vrot.slane %v4960_v13, 2 }
 0x247   :  { %p6360_p12 = pnand %p6359_p11, %p6353_p8 }
 0x248   :  { %v4926_v62 = vrot.slane %v4925_v11, 1  ;;  %v4962_v7 = vadd.f32 %v4961_v16, %v4960_v13 }
 0x24a   :  { %v4963_v2 = vrot.slane %v4962_v7, 1  ;;  %v4927_v21 = vadd.f32 %v4926_v62, %v4925_v11 }
 0x24c   :  { %v4964_v33 = vadd.f32 %v4963_v2, %v4962_v7 }
 0x24e   :  { %v4966_v55 = vsel %vm4965_vm5, %v4927_v21, %v4964_v33 }
 0x24f   :  { %v4968_v50 = vsel %vm4967_vm6, %v4966_v55, 0.0 }
 0x250   :  { %4969 = vst [vmem:[#allocation4] sm:$0xff] %v4968_v50 }
 0x251   :  { %6363 = shalt.err (!%p6360_p12)
}
 0x252   :  { %s6364_s26 = scalar_lea.hbm %s8457_s3, 128 }
 0x253   :  { %p6365_p13 = scmp.ne.s32.totalorder %s8457_s3, %s6364_s26  ;;  %p6368_p0 = scmp.lt.u32.totalorder %s6364_s26, %s8457_s3 }
 0x255   :  { %p6370_p1 = pnand %p6368_p0, %p6365_p13 }
 0x257   :  { %6373 = shalt.err (!%p6370_p1)
}
 0x258   :  { %4991 = dma.vmem_to_hbm [thread:$0]  %s4989_s23, 128, %s8457_s3, [#allocation5]  }
 0x259   :  { %6374 = dma.done.wait [#allocation3], 1024  }
 0x25a   :  { %6375 = vsyncadd [#allocation3], 4294966272 }
 0x25b   :  { %6376 = dma.done.wait [#allocation5], 128  }
 0x25c   :  { %6377 = vsyncadd [#allocation5], 4294967168 }
 0x25d   :  { %4998 = vsyncpa [#allocation3], 1 }
 0x25e   :  { %4999 = vsyncpa [#allocation5], 1 }

</bundles_post_ra>
